<compile_context>
chip_gen: v7x
topology: tpu7x:2x2x1
jax: 0.10.0
libtpu: 0.0.40
codegen_flags: <defaults>
</compile_context>

<pallas_src>
import jax
import jax.numpy as jnp
from jax import lax
from jax.experimental import pallas as pl
from jax.experimental.pallas import tpu as pltpu

D_MODEL = 64
NHEAD = 8
NUM_LAYERS = 2
DIM_FF = 256
LN_EPS = 1e-5  # nn.LayerNorm default

# rows in the packed vector slab:
#   [b_in_fused, w_out_fused_row, b_out_fused,
#    then per layer: (b_attn_fused, g1, be1, b_f1, b_f2, g2, be2)]
_VEC_PER_LAYER = 7
_N_VEC_ROWS = 3 + NUM_LAYERS * _VEC_PER_LAYER  # 17


def _round_up(n, m):
    return ((n + m - 1) // m) * m


def _layernorm(x, gamma=None, beta=None):
    """Single-pass LayerNorm (biased variance, like PyTorch).  Affine optional:
    the last layer's affine is folded into the output head at prepare time."""
    mu = jnp.mean(x, axis=-1, keepdims=True)
    ms = jnp.mean(x * x, axis=-1, keepdims=True)
    var = jnp.maximum(ms - mu * mu, 0.0)
    y = (x - mu) * lax.rsqrt(var + LN_EPS)
    if gamma is None:
        return y
    return y * gamma + beta


def transformer_kernel(x_ref, w_in_ref, w_attn_ref, w_f1_ref, w_f2_ref,
                       vec_ref, out_ref):
    h = None
    for l in range(NUM_LAYERS):  # static unroll (2 layers)
        base = 3 + l * _VEC_PER_LAYER
        if l == 0:
            # Input projection + layer-0 attention + residual, all pre-fused:
            #   z = x @ (W_in @ (I + Wv Wo)) + fused bias   (pre-norm1 value)
            z = jnp.dot(x_ref[...], w_in_ref[...],
                        preferred_element_type=jnp.float32)
            z = z + vec_ref[0:1, :D_MODEL]
        else:
            # seq_len == 1 attention + residual: z = h @ (I + Wv Wo) + b_fused
            z = jnp.dot(h.astype(jnp.bfloat16), w_attn_ref[l - 1],
                        preferred_element_type=jnp.float32)
            z = z + vec_ref[base + 0:base + 1, :D_MODEL]

        h = _layernorm(z,
                       vec_ref[base + 1:base + 2, :D_MODEL],    # g1
                       vec_ref[base + 2:base + 3, :D_MODEL])    # be1

        # feed-forward: linear2(relu(linear1(h))) ; residual kept explicit
        ff = jnp.dot(h.astype(jnp.bfloat16), w_f1_ref[l],
                     preferred_element_type=jnp.float32)
        ff = jnp.maximum(ff + vec_ref[base + 3:base + 4, :], 0.0)  # b_f1, ReLU
        ff = jnp.dot(ff.astype(jnp.bfloat16), w_f2_ref[l],
                     preferred_element_type=jnp.float32)
        ff = ff + vec_ref[base + 4:base + 5, :D_MODEL]             # b_f2

        if l == NUM_LAYERS - 1:
            # last layer: LN2 affine folded into w_out / b_out -> normalize only
            h = _layernorm(h + ff)
        else:
            h = _layernorm(h + ff,
                           vec_ref[base + 5:base + 6, :D_MODEL],   # g2
                           vec_ref[base + 6:base + 7, :D_MODEL])   # be2

    # mean over the length-1 seq dim == identity.  Final Linear(64 -> 1) as a
    # lane-dense (1, TB) row via a bf16 transposed-RHS contraction (no f32
    # transpose, no f32 MXU op):  out[0, b] = sum_j w_out[j] * h[b, j] + b_out.
    w_out = vec_ref[1:2, :D_MODEL].astype(jnp.bfloat16)            # (1, 64)
    b_out = vec_ref[2:3, :D_MODEL][:, 0:1]                         # (1, 1) f32
    out_ref[...] = lax.dot_general(
        w_out, h.astype(jnp.bfloat16),
        dimension_numbers=(((1,), (1,)), ((), ())),
        preferred_element_type=jnp.float32) + b_out


def prepare_kernel_params(p):
    """One-time conversion of PyTorch-structured params into kernel params:
      * fuse (I + W_v @ W_o) (+ bias) so the attention residual is in the weight,
      * fold layer-0 attention into the input projection,
      * fold the last layer's LN affine into the output head,
      * pack tiny vectors into one (17, 256) f32 slab, cast matmul weights bf16.
    """
    f32 = jnp.float32
    eye = jnp.eye(D_MODEL, dtype=f32)
    w_v = p["w_qkv"][:, :, 2 * D_MODEL:]                  # (L, d, d)
    b_v = p["b_qkv"][:, :, 2 * D_MODEL:]                  # (L, 1, d)
    # seq_len == 1:  h + attn(h) == h @ (I + Wv Wo) + (bv Wo + bo)
    w_attn = jnp.einsum("lij,ljk->lik", w_v, p["w_o"]) + eye[None]      # (L,d,d)
    b_attn = jnp.einsum("lij,ljk->lik", b_v, p["w_o"]) + p["b_o"]       # (L,1,d)

    # fold layer-0 attention into the input projection
    w_in_f = p["w_in"] @ w_attn[0]                        # (input_dim, d)
    b_in_f = p["b_in"] @ w_attn[0] + b_attn[0]            # (1, d)

    # fold last layer's LN2 affine into the output head
    g2L, be2L = p["g2"][NUM_LAYERS - 1], p["be2"][NUM_LAYERS - 1]
    w_out_row = p["w_out"].T * g2L                        # (1, d)
    b_out_f = p["b_out"] + be2L @ p["w_out"]              # (1, 1)

    def row64(v):                                         # (1,64) -> (1,256)
        return jnp.pad(v, ((0, 0), (0, DIM_FF - D_MODEL)))

    zero_row = jnp.zeros((1, D_MODEL), f32)
    rows = [row64(b_in_f),
            row64(w_out_row),
            jnp.pad(b_out_f, ((0, 0), (0, DIM_FF - 1)))]
    for l in range(NUM_LAYERS):
        rows += [row64(b_attn[l] if l > 0 else zero_row),   # layer-0 slot unused
                 row64(p["g1"][l]), row64(p["be1"][l]),
                 p["b_f1"][l],
                 row64(p["b_f2"][l]),
                 row64(p["g2"][l]), row64(p["be2"][l])]      # last-layer slots unused
    vec = jnp.concatenate(rows, axis=0).astype(f32)          # (17, 256)

    bf16 = jnp.bfloat16
    return {
        "w_in": w_in_f.astype(bf16),                      # (input_dim, 64)
        "w_attn": w_attn[1:].astype(bf16),                # (L-1, 64, 64)
        "w_f1": p["w_f1"].astype(bf16),                   # (L, 64, 256)
        "w_f2": p["w_f2"].astype(bf16),                   # (L, 256, 64)
        "vec": vec,
    }


def transformer_forward(x, kparams, block_rows=2048):
    """Pallas forward pass.  block_rows: batch tile (multiple of 128).  The
    per-row working set is ~2.5 KB, so 2048 rows (~10 MiB live) fits easily on
    v5e/v6e/v7x; VMEM is not the constraint here.  TB is clamped so the grid
    has >= 2 steps whenever B allows, letting v7x split across both TCs."""
    B, input_dim = x.shape
    B_pad128 = _round_up(B, 128)
    if B_pad128 >= 256:
        TB = min(block_rows, _round_up(B_pad128, 256) // 2)   # >= 2 grid steps
    else:
        TB = 128
    B_pad = _round_up(B_pad128, TB)

    xb = x.astype(jnp.bfloat16)
    if B_pad != B:
        xb = jnp.pad(xb, ((0, B_pad - B), (0, 0)))

    n_vec = kparams["vec"].shape[0]
    n_attn = kparams["w_attn"].shape[0]                   # NUM_LAYERS - 1
    grid = (B_pad // TB,)

    flops = 2 * B_pad * (input_dim * D_MODEL
                         + n_attn * D_MODEL * D_MODEL
                         + NUM_LAYERS * 2 * D_MODEL * DIM_FF
                         + D_MODEL)
    weight_bytes = sum(int(kparams[k].size) * kparams[k].dtype.itemsize
                       for k in ("w_in", "w_attn", "w_f1", "w_f2", "vec"))
    bytes_accessed = int(xb.size) * 2 + B_pad * 4 + weight_bytes

    out = pl.pallas_call(
        transformer_kernel,
        out_shape=jax.ShapeDtypeStruct((1, B_pad), jnp.float32),
        grid_spec=pltpu.PrefetchScalarGridSpec(
            num_scalar_prefetch=0,
            grid=grid,
            in_specs=[
                # activations: tiled over batch rows (auto double-buffered)
                pl.BlockSpec((TB, input_dim), lambda i: (i, 0)),
                # weights: full arrays, constant index_map => VMEM-resident
                pl.BlockSpec((input_dim, D_MODEL), lambda i: (0, 0)),
                pl.BlockSpec((n_attn, D_MODEL, D_MODEL), lambda i: (0, 0, 0)),
                pl.BlockSpec((NUM_LAYERS, D_MODEL, DIM_FF), lambda i: (0, 0, 0)),
                pl.BlockSpec((NUM_LAYERS, DIM_FF, D_MODEL), lambda i: (0, 0, 0)),
                pl.BlockSpec((n_vec, DIM_FF), lambda i: (0, 0)),
            ],
            out_specs=pl.BlockSpec((1, TB), lambda i: (0, i)),
        ),
        compiler_params=pltpu.CompilerParams(
            # "parallel" lets the batch grid split across v7x's two TCs.
            dimension_semantics=("parallel",),
            vmem_limit_bytes=32 * 1024 * 1024,
        ),
        cost_estimate=pl.CostEstimate(
            flops=flops,
            transcendentals=2 * NUM_LAYERS * B_pad,
            bytes_accessed=bytes_accessed),
    )(xb, kparams["w_in"], kparams["w_attn"], kparams["w_f1"],
      kparams["w_f2"], kparams["vec"])

    return out[0, :B].reshape(B, 1)


def init_params(key, input_dim):
    ks = jax.random.split(key, 12)
    scale = 0.05

    def rnd(k, shape):
        return (scale * jax.random.normal(k, shape)).astype(jnp.float32)

    # Weights stored as (in_features, out_features) — already transposed
    # relative to torch's nn.Linear, so forward is plain x @ W.
    return {
        "w_in":  rnd(ks[0], (input_dim, D_MODEL)),
        "b_in":  rnd(ks[1], (1, D_MODEL)),
        "w_qkv": rnd(ks[2], (NUM_LAYERS, D_MODEL, 3 * D_MODEL)),
        "b_qkv": rnd(ks[3], (NUM_LAYERS, 1, 3 * D_MODEL)),
        "w_o":   rnd(ks[4], (NUM_LAYERS, D_MODEL, D_MODEL)),
        "b_o":   rnd(ks[5], (NUM_LAYERS, 1, D_MODEL)),
        "g1":    jnp.ones((NUM_LAYERS, 1, D_MODEL), jnp.float32),
        "be1":   jnp.zeros((NUM_LAYERS, 1, D_MODEL), jnp.float32),
        "w_f1":  rnd(ks[6], (NUM_LAYERS, D_MODEL, DIM_FF)),
        "b_f1":  rnd(ks[7], (NUM_LAYERS, 1, DIM_FF)),
        "w_f2":  rnd(ks[8], (NUM_LAYERS, DIM_FF, D_MODEL)),
        "b_f2":  rnd(ks[9], (NUM_LAYERS, 1, D_MODEL)),
        "g2":    jnp.ones((NUM_LAYERS, 1, D_MODEL), jnp.float32),
        "be2":   jnp.zeros((NUM_LAYERS, 1, D_MODEL), jnp.float32),
        "w_out": rnd(ks[10], (D_MODEL, 1)),
        "b_out": rnd(ks[11], (1, 1)),
    }


def reference_forward(x, p):
    """Pure-JAX f32 reference with the attention softmax computed explicitly
    (no fusion), matching the PyTorch module in eval mode."""
    dh = D_MODEL // NHEAD
    h = x @ p["w_in"] + p["b_in"]
    for l in range(NUM_LAYERS):
        qkv = h @ p["w_qkv"][l] + p["b_qkv"][l]
        q, k, v = jnp.split(qkv, 3, axis=-1)
        qh = q.reshape(-1, NHEAD, dh)
        kh = k.reshape(-1, NHEAD, dh)
        vh = v.reshape(-1, NHEAD, dh)
        logits = jnp.sum(qh * kh, axis=-1, keepdims=True) / jnp.sqrt(float(dh))
        w = jax.nn.softmax(logits, axis=-1)          # key axis length 1 -> ones
        attn = (w * vh).reshape(-1, D_MODEL)
        attn = attn @ p["w_o"][l] + p["b_o"][l]
        h = _layernorm(h + attn, p["g1"][l], p["be1"][l])
        ff = jnp.maximum(h @ p["w_f1"][l] + p["b_f1"][l], 0.0)
        ff = ff @ p["w_f2"][l] + p["b_f2"][l]
        h = _layernorm(h + ff, p["g2"][l], p["be2"][l])
    return h @ p["w_out"] + p["b_out"]


if __name__ == "__main__":
    key = jax.random.PRNGKey(0)
    k_x, k_p = jax.random.split(key)

    B, input_dim = 8, 16
    x = jax.random.normal(k_x, (B, input_dim), dtype=jnp.float32)
    params = init_params(k_p, input_dim)
    kernel_params = prepare_kernel_params(params)

    out = transformer_forward(x, kernel_params)
    out = jax.block_until_ready(out)

    ref = reference_forward(x, params)
    assert out.shape == (B, 1), out.shape
    # kernel uses bf16 matmul operands (f32 accumulation / LayerNorm), so
    # compare against the f32 reference with a bf16-appropriate tolerance.
    assert jnp.allclose(out, ref, atol=3e-2, rtol=3e-2), (out, ref)

    print("KERNEL_OK")
</pallas_src>

<mosaic_0001>
module attributes {stable_mosaic.version = 11 : i64} {
  func.func @transformer_kernel(%arg0: i32, %arg1: memref<128x16xbf16, #tpu.memory_space<vmem>>, %arg2: memref<16x64xbf16, #tpu.memory_space<vmem>>, %arg3: memref<1x64x64xbf16, #tpu.memory_space<vmem>>, %arg4: memref<2x64x256xbf16, #tpu.memory_space<vmem>>, %arg5: memref<2x256x64xbf16, #tpu.memory_space<vmem>>, %arg6: memref<17x256xf32, #tpu.memory_space<vmem>>, %arg7: memref<1x128xf32, #tpu.memory_space<vmem>>) attributes {dimension_semantics = [#tpu.dimension_semantics<parallel>], iteration_bounds = array<i64: 1>, scalar_prefetch = 0 : i64, scratch_operands = 0 : i64, tpu.core_type = #tpu.core_type<tc>, window_params = [{transform_indices = @transform_0, window_bounds = array<i64: 128, 16>}, {pipeline_mode = #tpu.pipeline_mode<synchronous>, transform_indices = @transform_1, window_bounds = array<i64: 16, 64>}, {pipeline_mode = #tpu.pipeline_mode<synchronous>, transform_indices = @transform_2, window_bounds = array<i64: 1, 64, 64>}, {pipeline_mode = #tpu.pipeline_mode<synchronous>, transform_indices = @transform_3, window_bounds = array<i64: 2, 64, 256>}, {pipeline_mode = #tpu.pipeline_mode<synchronous>, transform_indices = @transform_4, window_bounds = array<i64: 2, 256, 64>}, {pipeline_mode = #tpu.pipeline_mode<synchronous>, transform_indices = @transform_5, window_bounds = array<i64: 17, 256>}, {transform_indices = @transform_6, window_bounds = array<i64: 1, 128>}]} {
    %c0 = arith.constant 0 : index
    %c0_0 = arith.constant 0 : index
    %0 = vector.load %arg1[%c0, %c0_0] : memref<128x16xbf16, #tpu.memory_space<vmem>>, vector<128x16xbf16>
    %c0_1 = arith.constant 0 : index
    %c0_2 = arith.constant 0 : index
    %1 = vector.load %arg2[%c0_1, %c0_2] : memref<16x64xbf16, #tpu.memory_space<vmem>>, vector<16x64xbf16>
    %cst = arith.constant dense<0.000000e+00> : vector<128x64xf32>
    %2 = tpu.matmul %0, %1, %cst {dimension_numbers = #tpu.dot_dimension_numbers<[1], [0], [0], [1], [0, 0, 1, 1], [], []>} : vector<128x16xbf16>, vector<16x64xbf16>, vector<128x64xf32> -> vector<128x64xf32>
    %c0_3 = arith.constant 0 : index
    %c0_4 = arith.constant 0 : index
    %3 = vector.load %arg6[%c0_3, %c0_4] : memref<17x256xf32, #tpu.memory_space<vmem>>, vector<1x64xf32>
    %4 = vector.broadcast %3 : vector<1x64xf32> to vector<128x64xf32>
    %5 = arith.addf %2, %4 : vector<128x64xf32>
    %c4 = arith.constant 4 : index
    %c0_5 = arith.constant 0 : index
    %6 = vector.load %arg6[%c4, %c0_5] : memref<17x256xf32, #tpu.memory_space<vmem>>, vector<1x64xf32>
    %c5 = arith.constant 5 : index
    %c0_6 = arith.constant 0 : index
    %7 = vector.load %arg6[%c5, %c0_6] : memref<17x256xf32, #tpu.memory_space<vmem>>, vector<1x64xf32>
    %cst_7 = arith.constant dense<0.000000e+00> : vector<128xf32>
    %8 = vector.multi_reduction <add>, %5, %cst_7 [1] : vector<128x64xf32> to vector<128xf32>
    %9 = vector.shape_cast %8 : vector<128xf32> to vector<128x1xf32>
    %cst_8 = arith.constant 6.400000e+01 : f32
    %10 = vector.broadcast %cst_8 : f32 to vector<128x1xf32>
    %11 = arith.divf %9, %10 : vector<128x1xf32>
    %12 = arith.mulf %5, %5 : vector<128x64xf32>
    %cst_9 = arith.constant dense<0.000000e+00> : vector<128xf32>
    %13 = vector.multi_reduction <add>, %12, %cst_9 [1] : vector<128x64xf32> to vector<128xf32>
    %14 = vector.shape_cast %13 : vector<128xf32> to vector<128x1xf32>
    %cst_10 = arith.constant 6.400000e+01 : f32
    %15 = vector.broadcast %cst_10 : f32 to vector<128x1xf32>
    %16 = arith.divf %14, %15 : vector<128x1xf32>
    %17 = arith.mulf %11, %11 : vector<128x1xf32>
    %18 = arith.subf %16, %17 : vector<128x1xf32>
    %cst_11 = arith.constant 0.000000e+00 : f32
    %19 = vector.broadcast %cst_11 : f32 to vector<128x1xf32>
    %20 = arith.maximumf %18, %19 : vector<128x1xf32>
    %21 = vector.broadcast %11 : vector<128x1xf32> to vector<128x64xf32>
    %22 = arith.subf %5, %21 : vector<128x64xf32>
    %cst_12 = arith.constant 9.99999974E-6 : f32
    %23 = vector.broadcast %cst_12 : f32 to vector<128x1xf32>
    %24 = arith.addf %20, %23 : vector<128x1xf32>
    %25 = math.rsqrt %24 : vector<128x1xf32>
    %26 = vector.broadcast %25 : vector<128x1xf32> to vector<128x64xf32>
    %27 = arith.mulf %22, %26 : vector<128x64xf32>
    %28 = vector.broadcast %6 : vector<1x64xf32> to vector<128x64xf32>
    %29 = arith.mulf %27, %28 : vector<128x64xf32>
    %30 = vector.broadcast %7 : vector<1x64xf32> to vector<128x64xf32>
    %31 = arith.addf %29, %30 : vector<128x64xf32>
    %32 = arith.truncf %31 : vector<128x64xf32> to vector<128x64xbf16>
    %c0_13 = arith.constant 0 : index
    %c0_14 = arith.constant 0 : index
    %c0_15 = arith.constant 0 : index
    %33 = vector.load %arg4[%c0_13, %c0_14, %c0_15] : memref<2x64x256xbf16, #tpu.memory_space<vmem>>, vector<1x64x256xbf16>
    %34 = vector.shape_cast %33 : vector<1x64x256xbf16> to vector<64x256xbf16>
    %cst_16 = arith.constant dense<0.000000e+00> : vector<128x256xf32>
    %35 = tpu.matmul %32, %34, %cst_16 {dimension_numbers = #tpu.dot_dimension_numbers<[1], [0], [0], [1], [0, 0, 1, 1], [], []>} : vector<128x64xbf16>, vector<64x256xbf16>, vector<128x256xf32> -> vector<128x256xf32>
    %c6 = arith.constant 6 : index
    %c0_17 = arith.constant 0 : index
    %36 = vector.load %arg6[%c6, %c0_17] : memref<17x256xf32, #tpu.memory_space<vmem>>, vector<1x256xf32>
    %37 = vector.broadcast %36 : vector<1x256xf32> to vector<128x256xf32>
    %38 = arith.addf %35, %37 : vector<128x256xf32>
    %cst_18 = arith.constant 0.000000e+00 : f32
    %39 = vector.broadcast %cst_18 : f32 to vector<128x256xf32>
    %40 = arith.maximumf %38, %39 : vector<128x256xf32>
    %41 = arith.truncf %40 : vector<128x256xf32> to vector<128x256xbf16>
    %c0_19 = arith.constant 0 : index
    %c0_20 = arith.constant 0 : index
    %c0_21 = arith.constant 0 : index
    %42 = vector.load %arg5[%c0_19, %c0_20, %c0_21] : memref<2x256x64xbf16, #tpu.memory_space<vmem>>, vector<1x256x64xbf16>
    %43 = vector.shape_cast %42 : vector<1x256x64xbf16> to vector<256x64xbf16>
    %cst_22 = arith.constant dense<0.000000e+00> : vector<128x64xf32>
    %44 = tpu.matmul %41, %43, %cst_22 {dimension_numbers = #tpu.dot_dimension_numbers<[1], [0], [0], [1], [0, 0, 1, 1], [], []>} : vector<128x256xbf16>, vector<256x64xbf16>, vector<128x64xf32> -> vector<128x64xf32>
    %c7 = arith.constant 7 : index
    %c0_23 = arith.constant 0 : index
    %45 = vector.load %arg6[%c7, %c0_23] : memref<17x256xf32, #tpu.memory_space<vmem>>, vector<1x64xf32>
    %46 = vector.broadcast %45 : vector<1x64xf32> to vector<128x64xf32>
    %47 = arith.addf %44, %46 : vector<128x64xf32>
    %48 = arith.addf %31, %47 : vector<128x64xf32>
    %c8 = arith.constant 8 : index
    %c0_24 = arith.constant 0 : index
    %49 = vector.load %arg6[%c8, %c0_24] : memref<17x256xf32, #tpu.memory_space<vmem>>, vector<1x64xf32>
    %c9 = arith.constant 9 : index
    %c0_25 = arith.constant 0 : index
    %50 = vector.load %arg6[%c9, %c0_25] : memref<17x256xf32, #tpu.memory_space<vmem>>, vector<1x64xf32>
    %cst_26 = arith.constant dense<0.000000e+00> : vector<128xf32>
    %51 = vector.multi_reduction <add>, %48, %cst_26 [1] : vector<128x64xf32> to vector<128xf32>
    %52 = vector.shape_cast %51 : vector<128xf32> to vector<128x1xf32>
    %cst_27 = arith.constant 6.400000e+01 : f32
    %53 = vector.broadcast %cst_27 : f32 to vector<128x1xf32>
    %54 = arith.divf %52, %53 : vector<128x1xf32>
    %55 = arith.mulf %48, %48 : vector<128x64xf32>
    %cst_28 = arith.constant dense<0.000000e+00> : vector<128xf32>
    %56 = vector.multi_reduction <add>, %55, %cst_28 [1] : vector<128x64xf32> to vector<128xf32>
    %57 = vector.shape_cast %56 : vector<128xf32> to vector<128x1xf32>
    %cst_29 = arith.constant 6.400000e+01 : f32
    %58 = vector.broadcast %cst_29 : f32 to vector<128x1xf32>
    %59 = arith.divf %57, %58 : vector<128x1xf32>
    %60 = arith.mulf %54, %54 : vector<128x1xf32>
    %61 = arith.subf %59, %60 : vector<128x1xf32>
    %cst_30 = arith.constant 0.000000e+00 : f32
    %62 = vector.broadcast %cst_30 : f32 to vector<128x1xf32>
    %63 = arith.maximumf %61, %62 : vector<128x1xf32>
    %64 = vector.broadcast %54 : vector<128x1xf32> to vector<128x64xf32>
    %65 = arith.subf %48, %64 : vector<128x64xf32>
    %cst_31 = arith.constant 9.99999974E-6 : f32
    %66 = vector.broadcast %cst_31 : f32 to vector<128x1xf32>
    %67 = arith.addf %63, %66 : vector<128x1xf32>
    %68 = math.rsqrt %67 : vector<128x1xf32>
    %69 = vector.broadcast %68 : vector<128x1xf32> to vector<128x64xf32>
    %70 = arith.mulf %65, %69 : vector<128x64xf32>
    %71 = vector.broadcast %49 : vector<1x64xf32> to vector<128x64xf32>
    %72 = arith.mulf %70, %71 : vector<128x64xf32>
    %73 = vector.broadcast %50 : vector<1x64xf32> to vector<128x64xf32>
    %74 = arith.addf %72, %73 : vector<128x64xf32>
    %75 = arith.truncf %74 : vector<128x64xf32> to vector<128x64xbf16>
    %c0_32 = arith.constant 0 : index
    %c0_33 = arith.constant 0 : index
    %c0_34 = arith.constant 0 : index
    %76 = vector.load %arg3[%c0_32, %c0_33, %c0_34] : memref<1x64x64xbf16, #tpu.memory_space<vmem>>, vector<1x64x64xbf16>
    %77 = vector.shape_cast %76 : vector<1x64x64xbf16> to vector<64x64xbf16>
    %cst_35 = arith.constant dense<0.000000e+00> : vector<128x64xf32>
    %78 = tpu.matmul %75, %77, %cst_35 {dimension_numbers = #tpu.dot_dimension_numbers<[1], [0], [0], [1], [0, 0, 1, 1], [], []>} : vector<128x64xbf16>, vector<64x64xbf16>, vector<128x64xf32> -> vector<128x64xf32>
    %c10 = arith.constant 10 : index
    %c0_36 = arith.constant 0 : index
    %79 = vector.load %arg6[%c10, %c0_36] : memref<17x256xf32, #tpu.memory_space<vmem>>, vector<1x64xf32>
    %80 = vector.broadcast %79 : vector<1x64xf32> to vector<128x64xf32>
    %81 = arith.addf %78, %80 : vector<128x64xf32>
    %c11 = arith.constant 11 : index
    %c0_37 = arith.constant 0 : index
    %82 = vector.load %arg6[%c11, %c0_37] : memref<17x256xf32, #tpu.memory_space<vmem>>, vector<1x64xf32>
    %c12 = arith.constant 12 : index
    %c0_38 = arith.constant 0 : index
    %83 = vector.load %arg6[%c12, %c0_38] : memref<17x256xf32, #tpu.memory_space<vmem>>, vector<1x64xf32>
    %cst_39 = arith.constant dense<0.000000e+00> : vector<128xf32>
    %84 = vector.multi_reduction <add>, %81, %cst_39 [1] : vector<128x64xf32> to vector<128xf32>
    %85 = vector.shape_cast %84 : vector<128xf32> to vector<128x1xf32>
    %cst_40 = arith.constant 6.400000e+01 : f32
    %86 = vector.broadcast %cst_40 : f32 to vector<128x1xf32>
    %87 = arith.divf %85, %86 : vector<128x1xf32>
    %88 = arith.mulf %81, %81 : vector<128x64xf32>
    %cst_41 = arith.constant dense<0.000000e+00> : vector<128xf32>
    %89 = vector.multi_reduction <add>, %88, %cst_41 [1] : vector<128x64xf32> to vector<128xf32>
    %90 = vector.shape_cast %89 : vector<128xf32> to vector<128x1xf32>
    %cst_42 = arith.constant 6.400000e+01 : f32
    %91 = vector.broadcast %cst_42 : f32 to vector<128x1xf32>
    %92 = arith.divf %90, %91 : vector<128x1xf32>
    %93 = arith.mulf %87, %87 : vector<128x1xf32>
    %94 = arith.subf %92, %93 : vector<128x1xf32>
    %cst_43 = arith.constant 0.000000e+00 : f32
    %95 = vector.broadcast %cst_43 : f32 to vector<128x1xf32>
    %96 = arith.maximumf %94, %95 : vector<128x1xf32>
    %97 = vector.broadcast %87 : vector<128x1xf32> to vector<128x64xf32>
    %98 = arith.subf %81, %97 : vector<128x64xf32>
    %cst_44 = arith.constant 9.99999974E-6 : f32
    %99 = vector.broadcast %cst_44 : f32 to vector<128x1xf32>
    %100 = arith.addf %96, %99 : vector<128x1xf32>
    %101 = math.rsqrt %100 : vector<128x1xf32>
    %102 = vector.broadcast %101 : vector<128x1xf32> to vector<128x64xf32>
    %103 = arith.mulf %98, %102 : vector<128x64xf32>
    %104 = vector.broadcast %82 : vector<1x64xf32> to vector<128x64xf32>
    %105 = arith.mulf %103, %104 : vector<128x64xf32>
    %106 = vector.broadcast %83 : vector<1x64xf32> to vector<128x64xf32>
    %107 = arith.addf %105, %106 : vector<128x64xf32>
    %108 = arith.truncf %107 : vector<128x64xf32> to vector<128x64xbf16>
    %c1 = arith.constant 1 : index
    %c0_45 = arith.constant 0 : index
    %c0_46 = arith.constant 0 : index
    %109 = vector.load %arg4[%c1, %c0_45, %c0_46] : memref<2x64x256xbf16, #tpu.memory_space<vmem>>, vector<1x64x256xbf16>
    %110 = vector.shape_cast %109 : vector<1x64x256xbf16> to vector<64x256xbf16>
    %cst_47 = arith.constant dense<0.000000e+00> : vector<128x256xf32>
    %111 = tpu.matmul %108, %110, %cst_47 {dimension_numbers = #tpu.dot_dimension_numbers<[1], [0], [0], [1], [0, 0, 1, 1], [], []>} : vector<128x64xbf16>, vector<64x256xbf16>, vector<128x256xf32> -> vector<128x256xf32>
    %c13 = arith.constant 13 : index
    %c0_48 = arith.constant 0 : index
    %112 = vector.load %arg6[%c13, %c0_48] : memref<17x256xf32, #tpu.memory_space<vmem>>, vector<1x256xf32>
    %113 = vector.broadcast %112 : vector<1x256xf32> to vector<128x256xf32>
    %114 = arith.addf %111, %113 : vector<128x256xf32>
    %cst_49 = arith.constant 0.000000e+00 : f32
    %115 = vector.broadcast %cst_49 : f32 to vector<128x256xf32>
    %116 = arith.maximumf %114, %115 : vector<128x256xf32>
    %117 = arith.truncf %116 : vector<128x256xf32> to vector<128x256xbf16>
    %c1_50 = arith.constant 1 : index
    %c0_51 = arith.constant 0 : index
    %c0_52 = arith.constant 0 : index
    %118 = vector.load %arg5[%c1_50, %c0_51, %c0_52] : memref<2x256x64xbf16, #tpu.memory_space<vmem>>, vector<1x256x64xbf16>
    %119 = vector.shape_cast %118 : vector<1x256x64xbf16> to vector<256x64xbf16>
    %cst_53 = arith.constant dense<0.000000e+00> : vector<128x64xf32>
    %120 = tpu.matmul %117, %119, %cst_53 {dimension_numbers = #tpu.dot_dimension_numbers<[1], [0], [0], [1], [0, 0, 1, 1], [], []>} : vector<128x256xbf16>, vector<256x64xbf16>, vector<128x64xf32> -> vector<128x64xf32>
    %c14 = arith.constant 14 : index
    %c0_54 = arith.constant 0 : index
    %121 = vector.load %arg6[%c14, %c0_54] : memref<17x256xf32, #tpu.memory_space<vmem>>, vector<1x64xf32>
    %122 = vector.broadcast %121 : vector<1x64xf32> to vector<128x64xf32>
    %123 = arith.addf %120, %122 : vector<128x64xf32>
    %124 = arith.addf %107, %123 : vector<128x64xf32>
    %cst_55 = arith.constant dense<0.000000e+00> : vector<128xf32>
    %125 = vector.multi_reduction <add>, %124, %cst_55 [1] : vector<128x64xf32> to vector<128xf32>
    %126 = vector.shape_cast %125 : vector<128xf32> to vector<128x1xf32>
    %cst_56 = arith.constant 6.400000e+01 : f32
    %127 = vector.broadcast %cst_56 : f32 to vector<128x1xf32>
    %128 = arith.divf %126, %127 : vector<128x1xf32>
    %129 = arith.mulf %124, %124 : vector<128x64xf32>
    %cst_57 = arith.constant dense<0.000000e+00> : vector<128xf32>
    %130 = vector.multi_reduction <add>, %129, %cst_57 [1] : vector<128x64xf32> to vector<128xf32>
    %131 = vector.shape_cast %130 : vector<128xf32> to vector<128x1xf32>
    %cst_58 = arith.constant 6.400000e+01 : f32
    %132 = vector.broadcast %cst_58 : f32 to vector<128x1xf32>
    %133 = arith.divf %131, %132 : vector<128x1xf32>
    %134 = arith.mulf %128, %128 : vector<128x1xf32>
    %135 = arith.subf %133, %134 : vector<128x1xf32>
    %cst_59 = arith.constant 0.000000e+00 : f32
    %136 = vector.broadcast %cst_59 : f32 to vector<128x1xf32>
    %137 = arith.maximumf %135, %136 : vector<128x1xf32>
    %138 = vector.broadcast %128 : vector<128x1xf32> to vector<128x64xf32>
    %139 = arith.subf %124, %138 : vector<128x64xf32>
    %cst_60 = arith.constant 9.99999974E-6 : f32
    %140 = vector.broadcast %cst_60 : f32 to vector<128x1xf32>
    %141 = arith.addf %137, %140 : vector<128x1xf32>
    %142 = math.rsqrt %141 : vector<128x1xf32>
    %143 = vector.broadcast %142 : vector<128x1xf32> to vector<128x64xf32>
    %144 = arith.mulf %139, %143 : vector<128x64xf32>
    %c1_61 = arith.constant 1 : index
    %c0_62 = arith.constant 0 : index
    %145 = vector.load %arg6[%c1_61, %c0_62] : memref<17x256xf32, #tpu.memory_space<vmem>>, vector<1x64xf32>
    %146 = arith.truncf %145 : vector<1x64xf32> to vector<1x64xbf16>
    %c2 = arith.constant 2 : index
    %c0_63 = arith.constant 0 : index
    %147 = vector.load %arg6[%c2, %c0_63] : memref<17x256xf32, #tpu.memory_space<vmem>>, vector<1x64xf32>
    %148 = vector.extract_strided_slice %147 {offsets = [0, 0], sizes = [1, 1], strides = [1, 1]} : vector<1x64xf32> to vector<1x1xf32>
    %149 = arith.truncf %144 : vector<128x64xf32> to vector<128x64xbf16>
    %cst_64 = arith.constant dense<0.000000e+00> : vector<1x128xf32>
    %150 = tpu.matmul %146, %149, %cst_64 {dimension_numbers = #tpu.dot_dimension_numbers<[1], [1], [0], [0], [0, 0, 1, 0], [], []>} : vector<1x64xbf16>, vector<128x64xbf16>, vector<1x128xf32> -> vector<1x128xf32>
    %151 = vector.broadcast %148 : vector<1x1xf32> to vector<1x128xf32>
    %152 = arith.addf %150, %151 : vector<1x128xf32>
    %c0_65 = arith.constant 0 : index
    %c0_66 = arith.constant 0 : index
    %153 = vector.load %arg7[%c0_65, %c0_66] : memref<1x128xf32, #tpu.memory_space<vmem>>, vector<1x128xf32>
    tpu.vector_store %arg7[%c0_65, %c0_66], %152 {strides = array<i32>} : memref<1x128xf32, #tpu.memory_space<vmem>>, vector<1x128xf32>,
    return
  }
  func.func @transform_0(%arg0: i32) -> (i32, i32) {
    %c0_i32 = arith.constant 0 : i32
    %c0_i32_0 = arith.constant 0 : i32
    return %arg0, %c0_i32 : i32, i32
  }
  func.func @transform_1(%arg0: i32) -> (i32, i32) {
    %c0_i32 = arith.constant 0 : i32
    %c0_i32_0 = arith.constant 0 : i32
    %c0_i32_1 = arith.constant 0 : i32
    return %c0_i32, %c0_i32_0 : i32, i32
  }
  func.func @transform_2(%arg0: i32) -> (i32, i32, i32) {
    %c0_i32 = arith.constant 0 : i32
    %c0_i32_0 = arith.constant 0 : i32
    %c0_i32_1 = arith.constant 0 : i32
    %c0_i32_2 = arith.constant 0 : i32
    return %c0_i32, %c0_i32_0, %c0_i32_1 : i32, i32, i32
  }
  func.func @transform_3(%arg0: i32) -> (i32, i32, i32) {
    %c0_i32 = arith.constant 0 : i32
    %c0_i32_0 = arith.constant 0 : i32
    %c0_i32_1 = arith.constant 0 : i32
    %c0_i32_2 = arith.constant 0 : i32
    return %c0_i32, %c0_i32_0, %c0_i32_1 : i32, i32, i32
  }
  func.func @transform_4(%arg0: i32) -> (i32, i32, i32) {
    %c0_i32 = arith.constant 0 : i32
    %c0_i32_0 = arith.constant 0 : i32
    %c0_i32_1 = arith.constant 0 : i32
    %c0_i32_2 = arith.constant 0 : i32
    return %c0_i32, %c0_i32_0, %c0_i32_1 : i32, i32, i32
  }
  func.func @transform_5(%arg0: i32) -> (i32, i32) {
    %c0_i32 = arith.constant 0 : i32
    %c0_i32_0 = arith.constant 0 : i32
    %c0_i32_1 = arith.constant 0 : i32
    return %c0_i32, %c0_i32_0 : i32, i32
  }
  func.func @transform_6(%arg0: i32) -> (i32, i32) {
    %c0_i32 = arith.constant 0 : i32
    %c0_i32_0 = arith.constant 0 : i32
    return %c0_i32, %arg0 : i32, i32
  }
}

</mosaic_0001>

<bundles_post_ra>
// kernel: tpu_custom_call.1
= control target key start
LH: loop header
LB: loop body
LE: loop exit
PB: predicated region body
PF: predicated region fallthrough
CT: control target
= control target key end

     0   :  { %vm90_vm0 = vcmask 130048   ;;  %s4669_s0 = inlined_call_operand.vmem [shape: bf16[128,16], index: 0, kind: input, shape index: {}]   ;;  %s4670_s1 = inlined_call_operand.vmem [shape: bf16[16,64], index: 1, kind: input, shape index: {}]   ;;  %s4671_s2 = inlined_call_operand.vmem [shape: bf16[1,64,64], index: 2, kind: input, shape index: {}]   ;;  %s4672_s3 = inlined_call_operand.vmem [shape: bf16[2,64,256], index: 3, kind: input, shape index: {}]   ;;  %s4673_s4 = inlined_call_operand.vmem [shape: bf16[2,256,64], index: 4, kind: input, shape index: {}]   ;;  %s4674_s5 = inlined_call_operand.vmem [shape: f32[17,256], index: 5, kind: input, shape index: {}]   ;;  %s4675_s6 = inlined_call_operand.hbm [shape: f32[1,128], index: 6, kind: output, shape index: {}]  }
   0x1   :  { %v2955_v0 = vld [vmem:[%s4670_s1] sm:$0xff]   ;;  %v2957_v2 = vld [vmem:[%s4669_s0 + $0x8] sm:$0xff]   ;;  %v2958_v3 = vld [vmem:[%s4669_s0 + $0x10] sm:$0xff]  }
   0x2   :  { %v2956_v1 = vld [vmem:[%s4669_s0] sm:$0xff]   ;;  %2888 = vmatprep.subr.bf16.mxu0 %v2955_v0  ;;  %v2959_v4 = vld [vmem:[%s4669_s0 + $0x18] sm:$0xff]   ;;  %v2961_v6 = vld [vmem:[%s4669_s0 + $0x28] sm:$0xff]  }
   0x3   :  { %2889 = vmatpush3.bf16.msra.mxu0 %v2955_v0  ;;  %2890 = vmatprep.mubr.msk.bf16.mxu0 %vm90_vm0, %v2956_v1  ;;  %v2960_v5 = vld [vmem:[%s4669_s0 + $0x20] sm:$0xff]   ;;  %v2962_v7 = vld [vmem:[%s4669_s0 + $0x30] sm:$0xff]   ;;  %v2963_v8 = vld [vmem:[%s4669_s0 + $0x38] sm:$0xff]  }
   0x6   :  { %2891 = vmatmul.mubr.msk.bf16.vlgmr.msra.gmra.mrb[0].mxu0 %vm90_vm0, %v2957_v2 }
   0x7   :  { %2894 = vmatprep.mubr.msk.bf16.mxu0 %vm90_vm0, %v2958_v3 }
   0xe   :  { %2895 = vmatmul.mubr.msk.bf16.gmra.mrb[4].mxu0 %vm90_vm0, %v2959_v4 }
   0xf   :  { %2898 = vmatprep.mubr.msk.bf16.mxu0 %vm90_vm0, %v2960_v5 }
  0x16   :  { %2899 = vmatmul.mubr.msk.bf16.gmra.mrb[8].mxu0 %vm90_vm0, %v2961_v6 }
  0x17   :  { %2902 = vmatprep.mubr.msk.bf16.mxu0 %vm90_vm0, %v2962_v7 }
  0x1e   :  { %2903 = vmatmul.mubr.msk.bf16.gmra.mrb[12].mxu0 %vm90_vm0, %v2963_v8 }
  0x1f   :  { %11 = vsyncpa [#allocation3], 0  ;;  %v3253_v9 = vld [vmem:[%s4674_s5] ss:$0 sm:$0xff]  ;;  %vm214_vm1 = vcmask 523264   ;;  %vm3178_vm2 = vmmov 0  }
  0x20   :  { %v2964_v61 = vld [vmem:[%s4672_s3 + $0x4] ss:$8 sps:$4 sm:$0xff]   ;;  %v2966_v63 = vld [vmem:[%s4672_s3] ss:$8 sps:$4 sm:$0xff]   ;;  %v2967_v2 = vld [vmem:[%s4672_s3 + $0x14] ss:$8 sps:$4 sm:$0xff]  }
  0x21   :  { %597 = vmatprep.subr.bf16.mxu1 %v2964_v61  ;;  %v2969_v5 = vld [vmem:[%s4672_s3 + $0x10] ss:$8 sps:$4 sm:$0xff]   ;;  %v2970_v8 = vld [vmem:[%s4672_s3 + $0x24] ss:$8 sps:$4 sm:$0xff]   ;;  %s3179_s10 = smov [#allocation2]  }
  0x22   :  { %598 = vmatpush1.bf16.msra.mxu1 %v2966_v63  ;;  %s2586_s11 = sshll.u32 %s3179_s10, 4  ;;  %s2587_s11 = int_to_ptr.vmem [resolvable:$true] %s2586_s11 }
  0x23   :  { %599 = vmatprep.subr.bf16.mxu1 %v2967_v2  ;;  %s3152_s12 = scalar_lea.vmem %s2587_s11, 16  ;;  %s3156_s13 = scalar_lea.vmem %s2587_s11, 32 }
  0x24   :  { %p3153_p0 = scmp.ne.s32.totalorder %s2587_s11, %s3152_s12  ;;  %p3157_p1 = scmp.lt.s32.totalorder %s2587_s11, %s2587_s11 }
  0x25   :  { %p3158_p2 = scmp.lt.s32.totalorder %s3156_s13, %s3152_s12 }
  0x26   :  { %600 = vmatpush1.bf16.msra.mxu1 %v2969_v5 }
  0x27   :  { %601 = vmatprep.subr.bf16.mxu1 %v2970_v8  ;;  %p3159_p3 = por %p3158_p2, %p3157_p1 }
  0x29   :  { %p3160_p4 = pnand %p3159_p3, %p3153_p0 }
  0xd9   :  { %v2892_v10 = vpop.f32.mrb[0].mxu0 }
  0xda   :  { %v149_v11 = vpop.f32.mrb[1].mxu0  ;;  %v3269_v20 = vadd.f32 %v2892_v10, %v3253_v9 }
  0xdb   :  { %v3256_v12 = vadd.f32 %v149_v11, %v3253_v9  ;;  %v2893_v13 = vpop.f32.mrb[2].mxu0 }
  0xdc   :  { %v152_v14 = vpop.f32.mrb[3].mxu0  ;;  %v3274_v24 = vadd.f32 %v2893_v13, %v3253_v9  ;;  %v221_v28 = vsel %vm214_vm1, %v3269_v20, 0.0  ;;  %v282_v29 = vmul.f32 %v3269_v20, %v3269_v20  ;;  %v2972_v13 = vld [vmem:[%s4672_s3 + $0x20] ss:$8 sps:$4 sm:$0xff]  }
  0xdd   :  { %v3259_v15 = vadd.f32 %v152_v14, %v3253_v9  ;;  %v215_v16 = vsel %vm214_vm1, %v3256_v12, 0.0  ;;  %v280_v17 = vmul.f32 %v3256_v12, %v3256_v12  ;;  %602 = vmatpush1.bf16.msra.mxu1 %v2972_v13 }
  0xde   :  { %216 = vadd.xlane.f32.xlu0 %v215_v16  ;;  %v224_v31 = vsel %vm214_vm1, %v3274_v24, 0.0  ;;  %v283_v32 = vmul.f32 %v3274_v24, %v3274_v24  ;;  %v302_v33 = vsel %vm214_vm1, %v282_v29, 0.0 }
  0xdf   :  { %v296_v18 = vsel %vm214_vm1, %v280_v17, 0.0  ;;  %v281_v19 = vmul.f32 %v3259_v15, %v3259_v15  ;;  %v218_v21 = vsel %vm214_vm1, %v3259_v15, 0.0 }
  0xe0   :  { %297 = vadd.xlane.f32.xlu1 %v296_v18  ;;  %v305_v37 = vsel %vm214_vm1, %v283_v32, 0.0  ;;  %v2973_v18 = vld [vmem:[%s4672_s3 + $0x34] ss:$8 sps:$4 sm:$0xff]  }
  0xe1   :  { %v2896_v22 = vpop.f32.mrb[4].mxu0  ;;  %v299_v25 = vsel %vm214_vm1, %v281_v19, 0.0  ;;  %603 = vmatprep.subr.bf16.mxu1 %v2973_v18 }
  0xe2   :  { %219 = vadd.xlane.f32.xlu0 %v218_v21  ;;  %v165_v23 = vpop.f32.mrb[5].mxu0  ;;  %v3302_v44 = vadd.f32 %v2896_v22, %v3253_v9  ;;  %v2975_v21 = vld [vmem:[%s4672_s3 + $0x30] ss:$8 sps:$4 sm:$0xff]  }
  0xe3   :  { %v2897_v26 = vpop.f32.mrb[6].mxu0  ;;  %v3282_v30 = vadd.f32 %v165_v23, %v3253_v9  ;;  %604 = vmatpush1.bf16.msra.mxu1 %v2975_v21 }
  0xe4   :  { %300 = vadd.xlane.f32.xlu1 %v299_v25  ;;  %v168_v27 = vpop.f32.mrb[7].mxu0  ;;  %v3308_v48 = vadd.f32 %v2897_v26, %v3253_v9  ;;  %v233_v52 = vsel %vm214_vm1, %v3302_v44, 0.0  ;;  %v286_v53 = vmul.f32 %v3302_v44, %v3302_v44 }
  0xe5   :  { %v3290_v36 = vadd.f32 %v168_v27, %v3253_v9  ;;  %v227_v38 = vsel %vm214_vm1, %v3282_v30, 0.0  ;;  %v284_v41 = vmul.f32 %v3282_v30, %v3282_v30  ;;  %v3176_v27 = vmov 0  }
  0xe6   :  { %222 = vadd.xlane.f32.xlu0 %v221_v28  ;;  %v236_v55 = vsel %vm214_vm1, %v3308_v48, 0.0  ;;  %v287_v56 = vmul.f32 %v3308_v48, %v3308_v48  ;;  %v314_v57 = vsel %vm214_vm1, %v286_v53, 0.0  ;;  %629 = vmatprep.mubr.bf16.mxu1 %v3176_v27  ;;  %v2986_v53 = vld [vmem:[%s4673_s4 + $0x68] sm:$0xff]  }
  0xe7   :  { %v230_v42 = vsel %vm214_vm1, %v3290_v36, 0.0  ;;  %v285_v43 = vmul.f32 %v3290_v36, %v3290_v36  ;;  %v308_v45 = vsel %vm214_vm1, %v284_v41, 0.0  ;;  %2954 = vset.pattern.permute.xlu0 %v3176_v27  ;;  %v2976_v41 = vld [vmem:[%s4673_s4 + $0x40] sm:$0xff]  }
  0xe8   :  { %225 = vadd.xlane.f32.xlu1 %v224_v31  ;;  %v317_v59 = vsel %vm214_vm1, %v287_v56, 0.0  ;;  %2739 = vmatprep.subr.bf16.mxu0 %v2976_v41 }
  0xe9   :  { %v2900_v34 = vpop.f32.mrb[8].mxu0  ;;  %v311_v49 = vsel %vm214_vm1, %v285_v43, 0.0  ;;  %v2978_v43 = vld [vmem:[%s4673_s4 + $0x48] sm:$0xff]  }
  0xea   :  { %303 = vadd.xlane.f32.xlu0 %v302_v33  ;;  %v181_v35 = vpop.f32.mrb[9].mxu0  ;;  %v3347_v3 = vadd.f32 %v2900_v34, %v3253_v9 }
  0xeb   :  { %v2901_v39 = vpop.f32.mrb[10].mxu0  ;;  %v3318_v54 = vadd.f32 %v181_v35, %v3253_v9 }
  0xec   :  { %306 = vadd.xlane.f32.xlu1 %v305_v37  ;;  %v184_v40 = vpop.f32.mrb[11].mxu0  ;;  %v3354_v6 = vadd.f32 %v2901_v39, %v3253_v9  ;;  %v245_v10 = vsel %vm214_vm1, %v3347_v3, 0.0  ;;  %v290_v11 = vmul.f32 %v3347_v3, %v3347_v3 }
  0xed   :  { %v3326_v58 = vadd.f32 %v184_v40, %v3253_v9  ;;  %v239_v60 = vsel %vm214_vm1, %v3318_v54, 0.0  ;;  %v288_v62 = vmul.f32 %v3318_v54, %v3318_v54 }
  0xee   :  { %228 = vadd.xlane.f32.xlu0 %v227_v38  ;;  %v248_v16 = vsel %vm214_vm1, %v3354_v6, 0.0  ;;  %v291_v17 = vmul.f32 %v3354_v6, %v3354_v6  ;;  %v326_v19 = vsel %vm214_vm1, %v290_v11, 0.0 }
  0xef   :  { %v242_v0 = vsel %vm214_vm1, %v3326_v58, 0.0  ;;  %v289_v1 = vmul.f32 %v3326_v58, %v3326_v58  ;;  %v320_v4 = vsel %vm214_vm1, %v288_v62, 0.0 }
  0xf0   :  { %231 = vadd.xlane.f32.xlu1 %v230_v42  ;;  %v329_v23 = vsel %vm214_vm1, %v291_v17, 0.0  ;;  %v2977_v42 = vld [vmem:[%s4673_s4] sm:$0xff]  }
  0xf1   :  { %v3305_v46 = vpop.f32.mrb[12].mxu0  ;;  %v323_v7 = vsel %vm214_vm1, %v289_v1, 0.0  ;;  %2740 = vmatpush3.bf16.msra.mxu0 %v2977_v42 }
  0xf2   :  { %309 = vadd.xlane.f32.xlu0 %v308_v45  ;;  %v197_v47 = vpop.f32.mrb[13].mxu0  ;;  %v3397_v31 = vadd.f32 %v3305_v46, %v3253_v9  ;;  %v2979_v45 = vld [vmem:[%s4673_s4 + $0x8] sm:$0xff]   ;;  %2741 = vmatprep.subr.bf16.mxu0 %v2978_v43  ;;  %v2980_v46 = vld [vmem:[%s4673_s4 + $0x50] sm:$0xff]  }
  0xf3   :  { %v3311_v50 = vpop.f32.mrb[14].mxu0  ;;  %v3368_v14 = vadd.f32 %v197_v47, %v3253_v9  ;;  %v2981_v47 = vld [vmem:[%s4673_s4 + $0x10] sm:$0xff]  }
  0xf4   :  { %312 = vadd.xlane.f32.xlu1 %v311_v49  ;;  %v200_v51 = vpop.f32.mrb[15].mxu0  ;;  %v3402_v33 = vadd.f32 %v3311_v50, %v3253_v9  ;;  %v257_v35 = vsel %vm214_vm1, %v3397_v31, 0.0  ;;  %v294_v37 = vmul.f32 %v3397_v31, %v3397_v31  ;;  %v2982_v49 = vld [vmem:[%s4673_s4 + $0x58] sm:$0xff]  }
  0xf5   :  { %v3382_v22 = vadd.f32 %v200_v51, %v3253_v9  ;;  %v251_v25 = vsel %vm214_vm1, %v3368_v14, 0.0  ;;  %v292_v26 = vmul.f32 %v3368_v14, %v3368_v14  ;;  %2742 = vmatpush3.bf16.msra.mxu0 %v2979_v45  ;;  %v2983_v50 = vld [vmem:[%s4673_s4 + $0x18] sm:$0xff]   ;;  %v2984_v51 = vld [vmem:[%s4673_s4 + $0x60] sm:$0xff]  }
  0xf6   :  { %234 = vadd.xlane.f32.xlu0 %v233_v52  ;;  %v260_v38 = vsel %vm214_vm1, %v3402_v33, 0.0  ;;  %v295_v39 = vmul.f32 %v3402_v33, %v3402_v33  ;;  %v338_v9 = vsel %vm214_vm1, %v294_v37, 0.0  ;;  %2743 = vmatprep.subr.bf16.mxu0 %v2980_v46  ;;  %v2985_v52 = vld [vmem:[%s4673_s4 + $0x20] sm:$0xff]  }
  0xf7   :  { %v254_v28 = vsel %vm214_vm1, %v3382_v22, 0.0  ;;  %v293_v29 = vmul.f32 %v3382_v22, %v3382_v22  ;;  %v332_v32 = vsel %vm214_vm1, %v292_v26, 0.0 }
  0xf8   :  { %237 = vadd.xlane.f32.xlu1 %v236_v55  ;;  %v341_v40 = vsel %vm214_vm1, %v295_v39, 0.0 }
  0xf9   :  { %v335_v34 = vsel %vm214_vm1, %v293_v29, 0.0  ;;  %2744 = vmatpush3.bf16.msra.mxu0 %v2981_v47 }
  0xfa   :  { %315 = vadd.xlane.f32.xlu0 %v314_v57  ;;  %2745 = vmatprep.subr.bf16.mxu0 %v2982_v49 }
  0xfc   :  { %318 = vadd.xlane.f32.xlu1 %v317_v59 }
  0xfd   :  { %2746 = vmatpush3.bf16.msra.mxu0 %v2983_v50 }
  0xfe   :  { %240 = vadd.xlane.f32.xlu0 %v239_v60  ;;  %2747 = vmatprep.subr.bf16.mxu0 %v2984_v51 }
 0x100   :  { %243 = vadd.xlane.f32.xlu1 %v242_v0 }
 0x101   :  { %2748 = vmatpush3.bf16.msra.mxu0 %v2985_v52 }
 0x102   :  { %321 = vadd.xlane.f32.xlu0 %v320_v4  ;;  %2749 = vmatprep.subr.bf16.mxu0 %v2986_v53 }
 0x104   :  { %324 = vadd.xlane.f32.xlu1 %v323_v7 }
 0x106   :  { %246 = vadd.xlane.f32.xlu0 %v245_v10 }
 0x108   :  { %249 = vadd.xlane.f32.xlu1 %v248_v16 }
 0x10a   :  { %327 = vadd.xlane.f32.xlu0 %v326_v19 }
 0x10c   :  { %330 = vadd.xlane.f32.xlu1 %v329_v23 }
 0x10e   :  { %252 = vadd.xlane.f32.xlu0 %v251_v25 }
 0x110   :  { %255 = vadd.xlane.f32.xlu1 %v254_v28 }
 0x112   :  { %333 = vadd.xlane.f32.xlu0 %v332_v32 }
 0x114   :  { %336 = vadd.xlane.f32.xlu1 %v335_v34 }
 0x116   :  { %258 = vadd.xlane.f32.xlu0 %v257_v35 }
 0x118   :  { %261 = vadd.xlane.f32.xlu1 %v260_v38 }
 0x11a   :  { %339 = vadd.xlane.f32.xlu0 %v338_v9 }
 0x11c   :  { %342 = vadd.xlane.f32.xlu1 %v341_v40 }
 0x16b   :  { %v217_v55 = vpop.xlane.xlu0 %216 }
 0x16c   :  { %v264_v56 = vmul.f32 0.015625, %v217_v55 }
 0x16d   :  { %v298_v57 = vpop.xlane.xlu1 %297 }
 0x16e   :  { %v360_v59 = vmul.f32 %v264_v56, %v264_v56  ;;  %v344_v60 = vmul.f32 0.015625, %v298_v57  ;;  %v408_v9 = vsub.f32 %v3256_v12, %v264_v56  ;;  %v3468_v12 = vld [vmem:[%s4674_s5 + $0x4] ss:$0 sm:$0xff] }
 0x16f   :  { %v220_v61 = vpop.xlane.xlu0 %219 }
 0x170   :  { %v376_v62 = vsub.f32 %v344_v60, %v360_v59  ;;  %v265_v63 = vmul.f32 0.015625, %v220_v61 }
 0x171   :  { %v301_v0 = vpop.xlane.xlu1 %300 }
 0x172   :  { %v392_v1 = vmax.f32 %v376_v62, 0.0  ;;  %v361_v2 = vmul.f32 %v265_v63, %v265_v63  ;;  %v345_v4 = vmul.f32 0.015625, %v301_v0  ;;  %v409_v53 = vsub.f32 %v3259_v15, %v265_v63 }
 0x173   :  { %v223_v5 = vpop.xlane.xlu0 %222 }
 0x174   :  { %v424_v7 = vadd.f32 1e-05, %v392_v1  ;;  %v377_v8 = vsub.f32 %v345_v4, %v361_v2  ;;  %v3448_v10 = vmul.f32 0.015625, %v223_v5  ;;  %v3477_v4 = vld [vmem:[%s4674_s5 + $0x5] ss:$0 sm:$0xff] }
 0x175   :  { %v226_v11 = vpop.xlane.xlu1 %225 }
 0x176   :  { %3024 = vrsqrt.f32 %v424_v7  ;;  %v393_v13 = vmax.f32 %v377_v8, 0.0  ;;  %v3450_v16 = vmul.f32 0.015625, %v226_v11  ;;  %v362_v19 = vmul.f32 %v3448_v10, %v3448_v10 }
 0x177   :  { %v304_v17 = vpop.xlane.xlu0 %303 }
 0x178   :  { %v425_v18 = vadd.f32 1e-05, %v393_v13  ;;  %v346_v21 = vmul.f32 0.015625, %v304_v17  ;;  %v363_v25 = vmul.f32 %v3450_v16, %v3450_v16  ;;  %v410_v13 = vsub.f32 %v3269_v20, %v3448_v10 }
 0x179   :  { %v307_v23 = vpop.xlane.xlu1 %306 }
 0x17a   :  { %3026 = vrsqrt.f32 %v425_v18  ;;  %v378_v26 = vsub.f32 %v346_v21, %v362_v19  ;;  %v347_v28 = vmul.f32 0.015625, %v307_v23 }
 0x17b   :  { %v229_v29 = vpop.xlane.xlu0 %228 }
 0x17c   :  { %v394_v32 = vmax.f32 %v378_v26, 0.0  ;;  %v379_v34 = vsub.f32 %v347_v28, %v363_v25  ;;  %v3456_v35 = vmul.f32 0.015625, %v229_v29  ;;  %v411_v28 = vsub.f32 %v3274_v24, %v3450_v16 }
 0x17d   :  { %v232_v37 = vpop.xlane.xlu1 %231 }
 0x17e   :  { %v426_v38 = vadd.f32 1e-05, %v394_v32  ;;  %v395_v39 = vmax.f32 %v379_v34, 0.0  ;;  %v3459_v40 = vmul.f32 0.015625, %v232_v37  ;;  %v364_v45 = vmul.f32 %v3456_v35, %v3456_v35 }
 0x17f   :  { %v310_v41 = vpop.xlane.xlu0 %309 }
 0x180   :  { %v3025_v42 = vpop.eup %3024  ;;  %3028 = vrsqrt.f32 %v426_v38  ;;  %v427_v43 = vadd.f32 1e-05, %v395_v39  ;;  %v348_v46 = vmul.f32 0.015625, %v310_v41  ;;  %v365_v50 = vmul.f32 %v3459_v40, %v3459_v40 }
 0x181   :  { %v313_v47 = vpop.xlane.xlu1 %312  ;;  %v456_v49 = vmul.f32 %v3025_v42, %v408_v9 }
 0x182   :  { %3030 = vrsqrt.f32 %v427_v43  ;;  %v380_v51 = vsub.f32 %v348_v46, %v364_v45  ;;  %v349_v52 = vmul.f32 0.015625, %v313_v47 }
 0x183   :  { %v235_v55 = vpop.xlane.xlu0 %234  ;;  %v472_v0 = vmul.f32 %v456_v49, %v3468_v12 }
 0x184   :  { %v3027_v56 = vpop.eup %3026  ;;  %v396_v57 = vmax.f32 %v380_v51, 0.0  ;;  %v381_v59 = vsub.f32 %v349_v52, %v365_v50  ;;  %v3471_v60 = vmul.f32 0.015625, %v235_v55  ;;  %v412_v50 = vsub.f32 %v3282_v30, %v3456_v35 }
 0x185   :  { %v238_v61 = vpop.xlane.xlu1 %237  ;;  %v457_v62 = vmul.f32 %v3027_v56, %v409_v53  ;;  %v3487_v18 = vadd.f32 %v472_v0, %v3477_v4 }
 0x186   :  { %v428_v1 = vadd.f32 1e-05, %v396_v57  ;;  %v397_v2 = vmax.f32 %v381_v59, 0.0  ;;  %v3479_v5 = vmul.f32 0.015625, %v238_v61  ;;  %v366_v8 = vmul.f32 %v3471_v60, %v3471_v60 }
 0x187   :  { %v316_v15 = vpop.xlane.xlu0 %315  ;;  %v473_v63 = vmul.f32 %v457_v62, %v3468_v12  ;;  %v413_v61 = vsub.f32 %v3290_v36, %v3459_v40 }
 0x188   :  { %3032 = vrsqrt.f32 %v428_v1  ;;  %v429_v7 = vadd.f32 1e-05, %v397_v2  ;;  %v350_v11 = vmul.f32 0.015625, %v316_v15  ;;  %v367_v23 = vmul.f32 %v3479_v5, %v3479_v5 }
 0x189   :  { %v319_v17 = vpop.xlane.xlu1 %318  ;;  %v3490_v19 = vadd.f32 %v473_v63, %v3477_v4 }
 0x18a   :  { %v3029_v21 = vpop.eup %3028  ;;  %3034 = vrsqrt.f32 %v429_v7  ;;  %v382_v25 = vsub.f32 %v350_v11, %v366_v8  ;;  %v351_v26 = vmul.f32 0.015625, %v319_v17 }
 0x18b   :  { %v241_v29 = vpop.xlane.xlu0 %240  ;;  %v504_v20 = vpack.c.bf16 %v3490_v19, %v3487_v18  ;;  %v458_v10 = vmul.f32 %v3029_v21, %v410_v13 }
 0x18c   :  { %v3031_v32 = vpop.eup %3030  ;;  %v398_v34 = vmax.f32 %v382_v25, 0.0  ;;  %v383_v37 = vsub.f32 %v351_v26, %v367_v23  ;;  %v3498_v38 = vmul.f32 0.015625, %v241_v29  ;;  %v414_v26 = vsub.f32 %v3302_v44, %v3471_v60 }
 0x18d   :  { %v244_v39 = vpop.xlane.xlu1 %243  ;;  %2620 = vmatmul.mubr.msk.bf16.vlgmr.msra.gmra.mrb[0].mxu1 %vm214_vm1, %v504_v20  ;;  %v459_v9 = vmul.f32 %v3031_v32, %v411_v28  ;;  %v474_v41 = vmul.f32 %v458_v10, %v3468_v12 }
 0x18e   :  { %v430_v42 = vadd.f32 1e-05, %v398_v34  ;;  %v399_v43 = vmax.f32 %v383_v37, 0.0  ;;  %639 = vmatprep.mubr.bf16.mxu1 %v3176_v27  ;;  %v3503_v24 = vmul.f32 0.015625, %v244_v39  ;;  %v368_v47 = vmul.f32 %v3498_v38, %v3498_v38 }
 0x18f   :  { %v322_v16 = vpop.xlane.xlu0 %321  ;;  %v475_v45 = vmul.f32 %v459_v9, %v3468_v12  ;;  %v3511_v52 = vadd.f32 %v474_v41, %v3477_v4  ;;  %v415_v39 = vsub.f32 %v3308_v48, %v3479_v5 }
 0x190   :  { %3036 = vrsqrt.f32 %v430_v42  ;;  %v431_v46 = vadd.f32 1e-05, %v399_v43  ;;  %v352_v49 = vmul.f32 0.015625, %v322_v16  ;;  %v369_v56 = vmul.f32 %v3503_v24, %v3503_v24 }
 0x191   :  { %v325_v51 = vpop.xlane.xlu1 %324  ;;  %v3514_v53 = vadd.f32 %v475_v45, %v3477_v4 }
 0x192   :  { %v3033_v55 = vpop.eup %3032  ;;  %3038 = vrsqrt.f32 %v431_v46  ;;  %v384_v57 = vsub.f32 %v352_v49, %v368_v47  ;;  %v353_v59 = vmul.f32 0.015625, %v325_v51 }
 0x193   :  { %v247_v62 = vpop.xlane.xlu0 %246  ;;  %v505_v30 = vpack.c.bf16 %v3514_v53, %v3511_v52  ;;  %v460_v35 = vmul.f32 %v3033_v55, %v412_v50 }
 0x194   :  { %v3035_v0 = vpop.eup %3034  ;;  %v400_v1 = vmax.f32 %v384_v57, 0.0  ;;  %v385_v2 = vsub.f32 %v353_v59, %v369_v56  ;;  %v3522_v15 = vmul.f32 0.015625, %v247_v62  ;;  %v416_v59 = vsub.f32 %v3318_v54, %v3498_v38 }
 0x195   :  { %v250_v63 = vpop.xlane.xlu1 %249  ;;  %2621 = vmatmul.mubr.msk.bf16.gmra.mrb[4].mxu1 %vm214_vm1, %v505_v30  ;;  %v461_v7 = vmul.f32 %v3035_v0, %v413_v61  ;;  %v476_v8 = vmul.f32 %v460_v35, %v3468_v12 }
 0x196   :  { %v432_v11 = vadd.f32 1e-05, %v400_v1  ;;  %v401_v13 = vmax.f32 %v385_v2, 0.0  ;;  %649 = vmatprep.mubr.bf16.mxu1 %v3176_v27  ;;  %v3527_v36 = vmul.f32 0.015625, %v250_v63  ;;  %v370_v23 = vmul.f32 %v3522_v15, %v3522_v15 }
 0x197   :  { %v328_v40 = vpop.xlane.xlu0 %327  ;;  %v477_v17 = vmul.f32 %v461_v7, %v3468_v12  ;;  %v3535_v29 = vadd.f32 %v476_v8, %v3477_v4  ;;  %v417_v63 = vsub.f32 %v3326_v58, %v3503_v24 }
 0x198   :  { %3040 = vrsqrt.f32 %v432_v11  ;;  %v433_v21 = vadd.f32 1e-05, %v401_v13  ;;  %v354_v25 = vmul.f32 0.015625, %v328_v40  ;;  %v371_v32 = vmul.f32 %v3527_v36, %v3527_v36 }
 0x199   :  { %v331_v28 = vpop.xlane.xlu1 %330  ;;  %v3538_v20 = vadd.f32 %v477_v17, %v3477_v4 }
 0x19a   :  { %v3037_v10 = vpop.eup %3036  ;;  %3042 = vrsqrt.f32 %v433_v21  ;;  %v386_v34 = vsub.f32 %v354_v25, %v370_v23  ;;  %v355_v37 = vmul.f32 0.015625, %v331_v28 }
 0x19b   :  { %v253_v9 = vpop.xlane.xlu0 %252  ;;  %v506_v44 = vpack.c.bf16 %v3538_v20, %v3535_v29  ;;  %v462_v60 = vmul.f32 %v3037_v10, %v414_v26 }
 0x19c   :  { %v3039_v41 = vpop.eup %3038  ;;  %v402_v42 = vmax.f32 %v386_v34, 0.0  ;;  %v387_v43 = vsub.f32 %v355_v37, %v371_v32  ;;  %v3546_v16 = vmul.f32 0.015625, %v253_v9  ;;  %v418_v37 = vsub.f32 %v3347_v3, %v3522_v15 }
 0x19d   :  { %v256_v45 = vpop.xlane.xlu1 %255  ;;  %2622 = vmatmul.mubr.msk.bf16.gmra.mrb[8].mxu1 %vm214_vm1, %v506_v44  ;;  %v463_v46 = vmul.f32 %v3039_v41, %v415_v39  ;;  %v478_v47 = vmul.f32 %v462_v60, %v3468_v12 }
 0x19e   :  { %v434_v49 = vadd.f32 1e-05, %v402_v42  ;;  %v403_v50 = vmax.f32 %v387_v43, 0.0  ;;  %659 = vmatprep.mubr.bf16.mxu1 %v3176_v27  ;;  %v3551_v48 = vmul.f32 0.015625, %v256_v45  ;;  %v372_v56 = vmul.f32 %v3546_v16, %v3546_v16 }
 0x19f   :  { %v334_v5 = vpop.xlane.xlu0 %333  ;;  %v479_v51 = vmul.f32 %v463_v46, %v3468_v12  ;;  %v3559_v62 = vadd.f32 %v478_v47, %v3477_v4  ;;  %v419_v45 = vsub.f32 %v3354_v6, %v3527_v36  ;;  %v420_v36 = vsub.f32 %v3368_v14, %v3546_v16 }
 0x1a0   :  { %3044 = vrsqrt.f32 %v434_v49  ;;  %v435_v55 = vadd.f32 1e-05, %v403_v50  ;;  %v356_v57 = vmul.f32 0.015625, %v334_v5  ;;  %v373_v0 = vmul.f32 %v3551_v48, %v3551_v48 }
 0x1a1   :  { %v337_v61 = vpop.xlane.xlu1 %336  ;;  %v3562_v30 = vadd.f32 %v479_v51, %v3477_v4 }
 0x1a2   :  { %v3041_v35 = vpop.eup %3040  ;;  %3046 = vrsqrt.f32 %v435_v55  ;;  %v388_v1 = vsub.f32 %v356_v57, %v372_v56  ;;  %v357_v2 = vmul.f32 0.015625, %v337_v61 }
 0x1a3   :  { %v259_v7 = vpop.xlane.xlu0 %258  ;;  %v507_v54 = vpack.c.bf16 %v3562_v30, %v3559_v62  ;;  %v464_v38 = vmul.f32 %v3041_v35, %v416_v59  ;;  %v421_v35 = vsub.f32 %v3382_v22, %v3551_v48 }
 0x1a4   :  { %v3043_v8 = vpop.eup %3042  ;;  %v404_v11 = vmax.f32 %v388_v1, 0.0  ;;  %v389_v13 = vsub.f32 %v357_v2, %v373_v0  ;;  %v278_v40 = vmul.f32 0.015625, %v259_v7 }
 0x1a5   :  { %v262_v17 = vpop.xlane.xlu1 %261  ;;  %2623 = vmatmul.mubr.msk.bf16.gmra.mrb[12].mxu1 %vm214_vm1, %v507_v54  ;;  %v465_v21 = vmul.f32 %v3043_v8, %v417_v63  ;;  %v480_v23 = vmul.f32 %v464_v38, %v3468_v12 }
 0x1a6   :  { %v436_v25 = vadd.f32 1e-05, %v404_v11  ;;  %v405_v26 = vmax.f32 %v389_v13, 0.0  ;;  %669 = vmatprep.mubr.bf16.mxu1 %v3176_v27  ;;  %v279_v58 = vmul.f32 0.015625, %v262_v17  ;;  %v374_v32 = vmul.f32 %v278_v40, %v278_v40 }
 0x1a7   :  { %v340_v24 = vpop.xlane.xlu0 %339  ;;  %v481_v28 = vmul.f32 %v465_v21, %v3468_v12  ;;  %v3577_v9 = vadd.f32 %v480_v23, %v3477_v4  ;;  %v422_v7 = vsub.f32 %v3397_v31, %v278_v40 }
 0x1a8   :  { %3048 = vrsqrt.f32 %v436_v25  ;;  %v437_v10 = vadd.f32 1e-05, %v405_v26  ;;  %v358_v34 = vmul.f32 0.015625, %v340_v24  ;;  %v375_v41 = vmul.f32 %v279_v58, %v279_v58  ;;  %v2987_v25 = vld [vmem:[%s4673_s4 + $0x28] sm:$0xff]   ;;  %v2989_v26 = vld [vmem:[%s4673_s4 + $0x30] sm:$0xff]  }
 0x1a9   :  { %v343_v39 = vpop.xlane.xlu1 %342  ;;  %v3580_v44 = vadd.f32 %v481_v28, %v3477_v4  ;;  %v423_v38 = vsub.f32 %v3402_v33, %v279_v58  ;;  %2750 = vmatpush3.bf16.msra.mxu0 %v2987_v25  ;;  %v2991_v58 = vld [vmem:[%s4673_s4 + $0x38] sm:$0xff]   ;;  %v523_v24 = vlaneseq }
 0x1aa   :  { %v3045_v60 = vpop.eup %3044  ;;  %3050 = vrsqrt.f32 %v437_v10  ;;  %v390_v42 = vsub.f32 %v358_v34, %v374_v32  ;;  %v359_v43 = vmul.f32 0.015625, %v343_v39  ;;  %v2611_v32 = vld [vmem:[%s4674_s5 + $0x6] ss:$8 sm:$0x3] }
 0x1ab   :  { %v508_v46 = vpack.c.bf16 %v3580_v44, %v3577_v9  ;;  %v466_v47 = vmul.f32 %v3045_v60, %v418_v37  ;;  %v3644_v28 = vshrl.u32 %v523_v24, 7 }
 0x1ac   :  { %v3047_v3 = vpop.eup %3046  ;;  %v406_v15 = vmax.f32 %v390_v42, 0.0  ;;  %v391_v49 = vsub.f32 %v359_v43, %v375_v41 }
 0x1ad   :  { %2624 = vmatmul.mubr.msk.bf16.gmra.mrb[16].mxu1 %vm214_vm1, %v508_v46  ;;  %v467_v50 = vmul.f32 %v3047_v3, %v419_v45  ;;  %v482_v5 = vmul.f32 %v466_v47, %v3468_v12  ;;  %v525_v10 = vsub.s32 0, %v3644_v28  ;;  %v529_v34 = vsub.s32 1, %v3644_v28 }
 0x1ae   :  { %v438_v51 = vadd.f32 1e-05, %v406_v15  ;;  %v407_v55 = vmax.f32 %v391_v49, 0.0  ;;  %679 = vmatprep.mubr.bf16.mxu1 %v3176_v27 }
 0x1af   :  { %v483_v56 = vmul.f32 %v467_v50, %v3468_v12  ;;  %v3593_v57 = vadd.f32 %v482_v5, %v3477_v4  ;;  %v3653_v37 = vrot.slane %v2611_v32, %v525_v10  ;;  %v3657_v39 = vrot.slane %v2611_v32, %v529_v34 }
 0x1b0   :  { %3052 = vrsqrt.f32 %v438_v51  ;;  %v439_v6 = vadd.f32 1e-05, %v407_v55 }
 0x1b1   :  { %v3596_v59 = vadd.f32 %v483_v56, %v3477_v4 }
 0x1b2   :  { %v3049_v61 = vpop.eup %3048  ;;  %3054 = vrsqrt.f32 %v439_v6 }
 0x1b3   :  { %v509_v0 = vpack.c.bf16 %v3596_v59, %v3593_v57  ;;  %v468_v1 = vmul.f32 %v3049_v61, %v420_v36 }
 0x1b4   :  { %v3051_v2 = vpop.eup %3050 }
 0x1b5   :  { %2625 = vmatmul.mubr.msk.bf16.gmra.mrb[20].mxu1 %vm214_vm1, %v509_v0  ;;  %v469_v63 = vmul.f32 %v3051_v2, %v421_v35  ;;  %v484_v14 = vmul.f32 %v468_v1, %v3468_v12 }
 0x1b6   :  { %689 = vmatprep.mubr.bf16.mxu1 %v3176_v27 }
 0x1b7   :  { %v485_v16 = vmul.f32 %v469_v63, %v3468_v12  ;;  %v3608_v54 = vadd.f32 %v484_v14, %v3477_v4 }
 0x1b9   :  { %v3611_v22 = vadd.f32 %v485_v16, %v3477_v4 }
 0x1ba   :  { %v3053_v48 = vpop.eup %3052 }
 0x1bb   :  { %v510_v8 = vpack.c.bf16 %v3611_v22, %v3608_v54  ;;  %v470_v11 = vmul.f32 %v3053_v48, %v422_v7 }
 0x1bc   :  { %v3055_v13 = vpop.eup %3054 }
 0x1bd   :  { %2626 = vmatmul.mubr.msk.bf16.gmra.mrb[24].mxu1 %vm214_vm1, %v510_v8  ;;  %v471_v17 = vmul.f32 %v3055_v13, %v423_v38  ;;  %v486_v21 = vmul.f32 %v470_v11, %v3468_v12 }
 0x1be   :  { %699 = vmatprep.mubr.bf16.mxu1 %v3176_v27 }
 0x1bf   :  { %v487_v31 = vmul.f32 %v471_v17, %v3468_v12  ;;  %v3621_v40 = vadd.f32 %v486_v21, %v3477_v4  ;;  %v2988_v12 = vld [vmem:[%s4673_s4 + $0x70] sm:$0xff]  }
 0x1c0   :  { %2751 = vmatprep.subr.bf16.mxu0 %v2988_v12 }
 0x1c1   :  { %v3624_v23 = vadd.f32 %v487_v31, %v3477_v4  ;;  %2752 = vmatpush3.bf16.msra.mxu0 %v2989_v26  ;;  %v2990_v4 = vld [vmem:[%s4673_s4 + $0x78] sm:$0xff]  }
 0x1c2   :  { %2753 = vmatprep.subr.bf16.mxu0 %v2990_v4 }
 0x1c3   :  { %v511_v33 = vpack.c.bf16 %v3624_v23, %v3621_v40 }
 0x1c5   :  { %2627 = vmatmul.mubr.msk.bf16.gmra.mrb[28].mxu1 %vm214_vm1, %v511_v33  ;;  %2754 = vmatpush3.bf16.msra.mxu0 %v2991_v58 }
 0x260   :  { %v631_v60 = vpop.f32.mrb[0].mxu1 }
 0x261   :  { %v632_v41 = vadd.f32 %v631_v60, %v3653_v37  ;;  %v633_v42 = vpop.f32.mrb[1].mxu1 }
 0x262   :  { %v634_v43 = vadd.f32 %v633_v42, %v3657_v39  ;;  %v635_v45 = vpop.f32.mrb[2].mxu1 }
 0x263   :  { %v636_v46 = vadd.f32 %v635_v45, %v3653_v37  ;;  %v637_v47 = vpop.f32.mrb[3].mxu1  ;;  %v710_v15 = vmax.f32 %v632_v41, 0.0 }
 0x264   :  { %v638_v3 = vadd.f32 %v637_v47, %v3657_v39  ;;  %v711_v50 = vmax.f32 %v634_v43, 0.0 }
 0x265   :  { %v712_v49 = vmax.f32 %v636_v46, 0.0 }
 0x266   :  { %v713_v5 = vmax.f32 %v638_v3, 0.0 }
 0x267   :  { %v742_v51 = vpack.c.bf16 %v712_v49, %v710_v15 }
 0x268   :  { %v743_v55 = vpack.c.bf16 %v713_v5, %v711_v50  ;;  %v641_v56 = vpop.f32.mrb[4].mxu1 }
 0x269   :  { %v642_v6 = vadd.f32 %v641_v56, %v3653_v37  ;;  %v643_v36 = vpop.f32.mrb[5].mxu1 }
 0x26a   :  { %v644_v61 = vadd.f32 %v643_v36, %v3657_v39  ;;  %v645_v35 = vpop.f32.mrb[6].mxu1  ;;  %919 = vmatprep.mubr.bf16.mxu0 %v743_v55 }
 0x26b   :  { %v646_v0 = vadd.f32 %v645_v35, %v3653_v37  ;;  %v647_v1 = vpop.f32.mrb[7].mxu1  ;;  %920 = vmatmul.mubr.bf16.vlgmr.msra.gmra.mrb[16].mxu0 %v742_v51  ;;  %v714_v63 = vmax.f32 %v642_v6, 0.0 }
 0x26c   :  { %v648_v2 = vadd.f32 %v647_v1, %v3657_v39  ;;  %v715_v16 = vmax.f32 %v644_v61, 0.0 }
 0x26d   :  { %v716_v14 = vmax.f32 %v646_v0, 0.0 }
 0x26e   :  { %v717_v7 = vmax.f32 %v648_v2, 0.0 }
 0x26f   :  { %v744_v48 = vpack.c.bf16 %v716_v14, %v714_v63 }
 0x270   :  { %v745_v38 = vpack.c.bf16 %v717_v7, %v715_v16  ;;  %v651_v8 = vpop.f32.mrb[8].mxu1 }
 0x271   :  { %v652_v11 = vadd.f32 %v651_v8, %v3653_v37  ;;  %v653_v13 = vpop.f32.mrb[9].mxu1 }
 0x272   :  { %v654_v17 = vadd.f32 %v653_v13, %v3657_v39  ;;  %v655_v21 = vpop.f32.mrb[10].mxu1  ;;  %927 = vmatprep.mubr.bf16.mxu0 %v745_v38 }
 0x273   :  { %v656_v31 = vadd.f32 %v655_v21, %v3653_v37  ;;  %v657_v33 = vpop.f32.mrb[11].mxu1  ;;  %928 = vmatmul.mubr.bf16.gmra.mrb[20].mxu0 %v744_v48  ;;  %v718_v12 = vmax.f32 %v652_v11, 0.0 }
 0x274   :  { %v658_v25 = vadd.f32 %v657_v33, %v3657_v39  ;;  %v719_v4 = vmax.f32 %v654_v17, 0.0 }
 0x275   :  { %v720_v26 = vmax.f32 %v656_v31, 0.0 }
 0x276   :  { %v721_v58 = vmax.f32 %v658_v25, 0.0 }
 0x277   :  { %v746_v24 = vpack.c.bf16 %v720_v26, %v718_v12 }
 0x278   :  { %v747_v32 = vpack.c.bf16 %v721_v58, %v719_v4  ;;  %v661_v60 = vpop.f32.mrb[12].mxu1 }
 0x279   :  { %v662_v41 = vadd.f32 %v661_v60, %v3653_v37  ;;  %v663_v42 = vpop.f32.mrb[13].mxu1 }
 0x27a   :  { %v664_v43 = vadd.f32 %v663_v42, %v3657_v39  ;;  %v665_v45 = vpop.f32.mrb[14].mxu1  ;;  %935 = vmatprep.mubr.bf16.mxu0 %v747_v32 }
 0x27b   :  { %v666_v46 = vadd.f32 %v665_v45, %v3653_v37  ;;  %v667_v47 = vpop.f32.mrb[15].mxu1  ;;  %936 = vmatmul.mubr.bf16.gmra.mrb[24].mxu0 %v746_v24  ;;  %v722_v15 = vmax.f32 %v662_v41, 0.0 }
 0x27c   :  { %v668_v3 = vadd.f32 %v667_v47, %v3657_v39  ;;  %v723_v50 = vmax.f32 %v664_v43, 0.0 }
 0x27d   :  { %v724_v49 = vmax.f32 %v666_v46, 0.0 }
 0x27e   :  { %v725_v5 = vmax.f32 %v668_v3, 0.0 }
 0x27f   :  { %v748_v51 = vpack.c.bf16 %v724_v49, %v722_v15 }
 0x280   :  { %v749_v55 = vpack.c.bf16 %v725_v5, %v723_v50  ;;  %v671_v56 = vpop.f32.mrb[16].mxu1 }
 0x281   :  { %v672_v6 = vadd.f32 %v671_v56, %v3653_v37  ;;  %v673_v36 = vpop.f32.mrb[17].mxu1 }
 0x282   :  { %v674_v61 = vadd.f32 %v673_v36, %v3657_v39  ;;  %v675_v35 = vpop.f32.mrb[18].mxu1  ;;  %943 = vmatprep.mubr.bf16.mxu0 %v749_v55 }
 0x283   :  { %v676_v0 = vadd.f32 %v675_v35, %v3653_v37  ;;  %v677_v1 = vpop.f32.mrb[19].mxu1  ;;  %944 = vmatmul.mubr.bf16.gmra.mrb[28].mxu0 %v748_v51  ;;  %v726_v63 = vmax.f32 %v672_v6, 0.0 }
 0x284   :  { %v678_v2 = vadd.f32 %v677_v1, %v3657_v39  ;;  %v727_v16 = vmax.f32 %v674_v61, 0.0 }
 0x285   :  { %v728_v14 = vmax.f32 %v676_v0, 0.0 }
 0x286   :  { %v729_v7 = vmax.f32 %v678_v2, 0.0 }
 0x287   :  { %v750_v48 = vpack.c.bf16 %v728_v14, %v726_v63 }
 0x288   :  { %v751_v38 = vpack.c.bf16 %v729_v7, %v727_v16  ;;  %v681_v8 = vpop.f32.mrb[20].mxu1 }
 0x289   :  { %v682_v11 = vadd.f32 %v681_v8, %v3653_v37  ;;  %v683_v13 = vpop.f32.mrb[21].mxu1  ;;  %v2992_v8 = vld [vmem:[%s4671_s2] sm:$0xff]  }
 0x28a   :  { %v684_v17 = vadd.f32 %v683_v13, %v3657_v39  ;;  %v685_v21 = vpop.f32.mrb[22].mxu1  ;;  %951 = vmatprep.mubr.bf16.mxu0 %v751_v38  ;;  %2906 = vmatprep.subr.bf16.mxu1 %v2992_v8 }
 0x28b   :  { %v686_v31 = vadd.f32 %v685_v21, %v3653_v37  ;;  %v687_v33 = vpop.f32.mrb[23].mxu1  ;;  %952 = vmatmul.mubr.bf16.gmra.mrb[32].mxu0 %v750_v48  ;;  %v730_v12 = vmax.f32 %v682_v11, 0.0  ;;  %2907 = vmatpush3.bf16.msra.mxu1 %v2992_v8  ;;  %v3701_v11 = vld [vmem:[%s4674_s5 + $0x7] ss:$0 sm:$0xff] }
 0x28c   :  { %v688_v25 = vadd.f32 %v687_v33, %v3657_v39  ;;  %v731_v4 = vmax.f32 %v684_v17, 0.0 }
 0x28d   :  { %v732_v26 = vmax.f32 %v686_v31, 0.0 }
 0x28e   :  { %v733_v58 = vmax.f32 %v688_v25, 0.0 }
 0x28f   :  { %v752_v24 = vpack.c.bf16 %v732_v26, %v730_v12 }
 0x290   :  { %v753_v32 = vpack.c.bf16 %v733_v58, %v731_v4  ;;  %v691_v60 = vpop.f32.mrb[24].mxu1 }
 0x291   :  { %v692_v41 = vadd.f32 %v691_v60, %v3653_v37  ;;  %v693_v42 = vpop.f32.mrb[25].mxu1 }
 0x292   :  { %v694_v43 = vadd.f32 %v693_v42, %v3657_v39  ;;  %v695_v45 = vpop.f32.mrb[26].mxu1  ;;  %959 = vmatprep.mubr.bf16.mxu0 %v753_v32 }
 0x293   :  { %v696_v46 = vadd.f32 %v695_v45, %v3653_v37  ;;  %v697_v47 = vpop.f32.mrb[27].mxu1  ;;  %960 = vmatmul.mubr.bf16.gmra.mrb[36].mxu0 %v752_v24  ;;  %v734_v15 = vmax.f32 %v692_v41, 0.0 }
 0x294   :  { %v698_v3 = vadd.f32 %v697_v47, %v3657_v39  ;;  %v735_v50 = vmax.f32 %v694_v43, 0.0 }
 0x295   :  { %v736_v49 = vmax.f32 %v696_v46, 0.0 }
 0x296   :  { %v737_v5 = vmax.f32 %v698_v3, 0.0 }
 0x297   :  { %v754_v51 = vpack.c.bf16 %v736_v49, %v734_v15 }
 0x298   :  { %v755_v55 = vpack.c.bf16 %v737_v5, %v735_v50  ;;  %v701_v56 = vpop.f32.mrb[28].mxu1 }
 0x299   :  { %v702_v6 = vadd.f32 %v701_v56, %v3653_v37  ;;  %v703_v36 = vpop.f32.mrb[29].mxu1 }
 0x29a   :  { %v704_v61 = vadd.f32 %v703_v36, %v3657_v39  ;;  %v705_v35 = vpop.f32.mrb[30].mxu1  ;;  %967 = vmatprep.mubr.bf16.mxu0 %v755_v55 }
 0x29b   :  { %v706_v0 = vadd.f32 %v705_v35, %v3653_v37  ;;  %v707_v1 = vpop.f32.mrb[31].mxu1  ;;  %968 = vmatmul.mubr.bf16.gmra.mrb[40].mxu0 %v754_v51  ;;  %v738_v63 = vmax.f32 %v702_v6, 0.0  ;;  %v2993_v37 = vld [vmem:[%s4671_s2 + $0x8] sm:$0xff]  }
 0x29c   :  { %v708_v2 = vadd.f32 %v707_v1, %v3657_v39  ;;  %v739_v16 = vmax.f32 %v704_v61, 0.0  ;;  %2908 = vmatprep.subr.bf16.mxu1 %v2993_v37 }
 0x29d   :  { %v740_v14 = vmax.f32 %v706_v0, 0.0  ;;  %2909 = vmatpush3.bf16.msra.mxu1 %v2993_v37 }
 0x29e   :  { %v741_v7 = vmax.f32 %v708_v2, 0.0 }
 0x29f   :  { %v756_v48 = vpack.c.bf16 %v740_v14, %v738_v63 }
 0x2a0   :  { %v757_v38 = vpack.c.bf16 %v741_v7, %v739_v16 }
 0x2a2   :  { %975 = vmatprep.mubr.bf16.mxu0 %v757_v38 }
 0x2a3   :  { %976 = vmatmul.mubr.bf16.gmra.mrb[44].mxu0 %v756_v48 }
 0x2a4   :  { %1868 = vmatprep.mubr.bf16.mxu0 %v3176_v27 }
 0x33e   :  { %v2755_v39 = vpop.f32.mrb[16].mxu0 }
 0x33f   :  { %v2756_v13 = vpop.f32.mrb[17].mxu0 }
 0x340   :  { %v2757_v17 = vadd.f32 %v2756_v13, %v2755_v39  ;;  %v2758_v21 = vpop.f32.mrb[18].mxu0 }
 0x341   :  { %v2759_v31 = vpop.f32.mrb[19].mxu0 }
 0x342   :  { %v922_v33 = vadd.f32 %v2757_v17, %v3701_v11  ;;  %v2760_v25 = vadd.f32 %v2759_v31, %v2758_v21 }
 0x344   :  { %v3705_v12 = vadd.f32 %v922_v33, %v3487_v18  ;;  %v925_v26 = vadd.f32 %v2760_v25, %v3701_v11 }
 0x346   :  { %v3709_v4 = vadd.f32 %v925_v26, %v3490_v19  ;;  %v2761_v58 = vpop.f32.mrb[20].mxu0  ;;  %v1002_v24 = vsel %vm214_vm1, %v3705_v12, 0.0  ;;  %v1066_v32 = vmul.f32 %v3705_v12, %v3705_v12 }
 0x347   :  { %1003 = vadd.xlane.f32.xlu0 %v1002_v24  ;;  %v2762_v60 = vpop.f32.mrb[21].mxu0 }
 0x348   :  { %v2763_v41 = vadd.f32 %v2762_v60, %v2761_v58  ;;  %v2764_v42 = vpop.f32.mrb[22].mxu0  ;;  %v1005_v18 = vsel %vm214_vm1, %v3709_v4, 0.0  ;;  %v1067_v43 = vmul.f32 %v3709_v4, %v3709_v4  ;;  %v1082_v47 = vsel %vm214_vm1, %v1066_v32, 0.0 }
 0x349   :  { %1006 = vadd.xlane.f32.xlu1 %v1005_v18  ;;  %v2765_v19 = vpop.f32.mrb[23].mxu0 }
 0x34a   :  { %v930_v45 = vadd.f32 %v2763_v41, %v3701_v11  ;;  %v2766_v46 = vadd.f32 %v2765_v19, %v2764_v42  ;;  %v1085_v49 = vsel %vm214_vm1, %v1067_v43, 0.0 }
 0x34b   :  { %1083 = vadd.xlane.f32.xlu0 %v1082_v47  ;;  %v2994_v47 = vld [vmem:[%s4671_s2 + $0x10] sm:$0xff]  }
 0x34c   :  { %v3722_v3 = vadd.f32 %v930_v45, %v3511_v52  ;;  %v933_v15 = vadd.f32 %v2766_v46, %v3701_v11  ;;  %2910 = vmatprep.subr.bf16.mxu1 %v2994_v47 }
 0x34d   :  { %1086 = vadd.xlane.f32.xlu1 %v1085_v49  ;;  %2911 = vmatpush3.bf16.msra.mxu1 %v2994_v47 }
 0x34e   :  { %v3727_v50 = vadd.f32 %v933_v15, %v3514_v53  ;;  %v2767_v5 = vpop.f32.mrb[24].mxu0  ;;  %v1008_v51 = vsel %vm214_vm1, %v3722_v3, 0.0  ;;  %v1068_v55 = vmul.f32 %v3722_v3, %v3722_v3 }
 0x34f   :  { %1009 = vadd.xlane.f32.xlu0 %v1008_v51  ;;  %v2768_v56 = vpop.f32.mrb[25].mxu0 }
 0x350   :  { %v2769_v6 = vadd.f32 %v2768_v56, %v2767_v5  ;;  %v2770_v52 = vpop.f32.mrb[26].mxu0  ;;  %v1011_v36 = vsel %vm214_vm1, %v3727_v50, 0.0  ;;  %v1069_v61 = vmul.f32 %v3727_v50, %v3727_v50  ;;  %v1088_v1 = vsel %vm214_vm1, %v1068_v55, 0.0 }
 0x351   :  { %1012 = vadd.xlane.f32.xlu1 %v1011_v36  ;;  %v2771_v53 = vpop.f32.mrb[27].mxu0 }
 0x352   :  { %v938_v35 = vadd.f32 %v2769_v6, %v3701_v11  ;;  %v2772_v0 = vadd.f32 %v2771_v53, %v2770_v52  ;;  %v1091_v14 = vsel %vm214_vm1, %v1069_v61, 0.0 }
 0x353   :  { %1089 = vadd.xlane.f32.xlu0 %v1088_v1 }
 0x354   :  { %v3740_v2 = vadd.f32 %v938_v35, %v3535_v29  ;;  %v941_v63 = vadd.f32 %v2772_v0, %v3701_v11 }
 0x355   :  { %1092 = vadd.xlane.f32.xlu1 %v1091_v14 }
 0x356   :  { %v3745_v16 = vadd.f32 %v941_v63, %v3538_v20  ;;  %v2773_v7 = vpop.f32.mrb[28].mxu0  ;;  %v1014_v48 = vsel %vm214_vm1, %v3740_v2, 0.0  ;;  %v1070_v38 = vmul.f32 %v3740_v2, %v3740_v2 }
 0x357   :  { %1015 = vadd.xlane.f32.xlu0 %v1014_v48  ;;  %v2774_v8 = vpop.f32.mrb[29].mxu0 }
 0x358   :  { %v2775_v37 = vadd.f32 %v2774_v8, %v2773_v7  ;;  %v2776_v29 = vpop.f32.mrb[30].mxu0  ;;  %v1017_v39 = vsel %vm214_vm1, %v3745_v16, 0.0  ;;  %v1071_v13 = vmul.f32 %v3745_v16, %v3745_v16  ;;  %v1094_v31 = vsel %vm214_vm1, %v1070_v38, 0.0 }
 0x359   :  { %1018 = vadd.xlane.f32.xlu1 %v1017_v39  ;;  %v2777_v20 = vpop.f32.mrb[31].mxu0 }
 0x35a   :  { %v946_v17 = vadd.f32 %v2775_v37, %v3701_v11  ;;  %v2778_v21 = vadd.f32 %v2777_v20, %v2776_v29  ;;  %v1097_v26 = vsel %vm214_vm1, %v1071_v13, 0.0 }
 0x35b   :  { %1095 = vadd.xlane.f32.xlu0 %v1094_v31 }
 0x35c   :  { %v3758_v33 = vadd.f32 %v946_v17, %v3559_v62  ;;  %v949_v25 = vadd.f32 %v2778_v21, %v3701_v11 }
 0x35d   :  { %1098 = vadd.xlane.f32.xlu1 %v1097_v26 }
 0x35e   :  { %v3763_v58 = vadd.f32 %v949_v25, %v3562_v30  ;;  %v2779_v24 = vpop.f32.mrb[32].mxu0  ;;  %v1020_v32 = vsel %vm214_vm1, %v3758_v33, 0.0  ;;  %v1072_v60 = vmul.f32 %v3758_v33, %v3758_v33 }
 0x35f   :  { %1021 = vadd.xlane.f32.xlu0 %v1020_v32  ;;  %v2780_v41 = vpop.f32.mrb[33].mxu0 }
 0x360   :  { %v2781_v42 = vadd.f32 %v2780_v41, %v2779_v24  ;;  %v2782_v62 = vpop.f32.mrb[34].mxu0  ;;  %v1023_v18 = vsel %vm214_vm1, %v3763_v58, 0.0  ;;  %v1073_v43 = vmul.f32 %v3763_v58, %v3763_v58  ;;  %v1100_v46 = vsel %vm214_vm1, %v1072_v60, 0.0 }
 0x361   :  { %1024 = vadd.xlane.f32.xlu1 %v1023_v18  ;;  %v2783_v30 = vpop.f32.mrb[35].mxu0 }
 0x362   :  { %v954_v19 = vadd.f32 %v2781_v42, %v3701_v11  ;;  %v2784_v45 = vadd.f32 %v2783_v30, %v2782_v62  ;;  %v1103_v5 = vsel %vm214_vm1, %v1073_v43, 0.0 }
 0x363   :  { %1101 = vadd.xlane.f32.xlu0 %v1100_v46 }
 0x364   :  { %v3779_v15 = vadd.f32 %v954_v19, %v3577_v9  ;;  %v957_v49 = vadd.f32 %v2784_v45, %v3701_v11  ;;  %v2995_v19 = vld [vmem:[%s4671_s2 + $0x18] sm:$0xff]  }
 0x365   :  { %1104 = vadd.xlane.f32.xlu1 %v1103_v5  ;;  %2912 = vmatprep.subr.bf16.mxu1 %v2995_v19 }
 0x366   :  { %v3784_v51 = vadd.f32 %v957_v49, %v3580_v44  ;;  %v2785_v55 = vpop.f32.mrb[36].mxu0  ;;  %v1026_v56 = vsel %vm214_vm1, %v3779_v15, 0.0  ;;  %v1074_v6 = vmul.f32 %v3779_v15, %v3779_v15  ;;  %2913 = vmatpush3.bf16.msra.mxu1 %v2995_v19 }
 0x367   :  { %1027 = vadd.xlane.f32.xlu0 %v1026_v56  ;;  %v2786_v9 = vpop.f32.mrb[37].mxu0 }
 0x368   :  { %v2787_v52 = vadd.f32 %v2786_v9, %v2785_v55  ;;  %v2788_v36 = vpop.f32.mrb[38].mxu0  ;;  %v1029_v61 = vsel %vm214_vm1, %v3784_v51, 0.0  ;;  %v1075_v53 = vmul.f32 %v3784_v51, %v3784_v51  ;;  %v1106_v1 = vsel %vm214_vm1, %v1074_v6, 0.0 }
 0x369   :  { %1030 = vadd.xlane.f32.xlu1 %v1029_v61  ;;  %v2789_v44 = vpop.f32.mrb[39].mxu0 }
 0x36a   :  { %v962_v35 = vadd.f32 %v2787_v52, %v3701_v11  ;;  %v2790_v0 = vadd.f32 %v2789_v44, %v2788_v36  ;;  %v1109_v7 = vsel %vm214_vm1, %v1075_v53, 0.0 }
 0x36b   :  { %1107 = vadd.xlane.f32.xlu0 %v1106_v1 }
 0x36c   :  { %v3797_v63 = vadd.f32 %v962_v35, %v3593_v57  ;;  %v965_v14 = vadd.f32 %v2790_v0, %v3701_v11 }
 0x36d   :  { %1110 = vadd.xlane.f32.xlu1 %v1109_v7 }
 0x36e   :  { %v3802_v48 = vadd.f32 %v965_v14, %v3596_v59  ;;  %v2791_v38 = vpop.f32.mrb[40].mxu0  ;;  %v1032_v8 = vsel %vm214_vm1, %v3797_v63, 0.0  ;;  %v1076_v37 = vmul.f32 %v3797_v63, %v3797_v63 }
 0x36f   :  { %1033 = vadd.xlane.f32.xlu0 %v1032_v8  ;;  %v2792_v29 = vpop.f32.mrb[41].mxu0 }
 0x370   :  { %v2793_v39 = vadd.f32 %v2792_v29, %v2791_v38  ;;  %v2794_v57 = vpop.f32.mrb[42].mxu0  ;;  %v1035_v13 = vsel %vm214_vm1, %v3802_v48, 0.0  ;;  %v1077_v20 = vmul.f32 %v3802_v48, %v3802_v48  ;;  %v1112_v31 = vsel %vm214_vm1, %v1076_v37, 0.0 }
 0x371   :  { %1036 = vadd.xlane.f32.xlu1 %v1035_v13  ;;  %v2795_v59 = vpop.f32.mrb[43].mxu0 }
 0x372   :  { %v970_v17 = vadd.f32 %v2793_v39, %v3701_v11  ;;  %v2796_v21 = vadd.f32 %v2795_v59, %v2794_v57  ;;  %v1115_v24 = vsel %vm214_vm1, %v1077_v20, 0.0 }
 0x373   :  { %1113 = vadd.xlane.f32.xlu0 %v1112_v31 }
 0x374   :  { %v3815_v25 = vadd.f32 %v970_v17, %v3608_v54  ;;  %v973_v26 = vadd.f32 %v2796_v21, %v3701_v11 }
 0x375   :  { %1116 = vadd.xlane.f32.xlu1 %v1115_v24 }
 0x376   :  { %v3820_v32 = vadd.f32 %v973_v26, %v3611_v22  ;;  %v2797_v60 = vpop.f32.mrb[44].mxu0  ;;  %v1038_v41 = vsel %vm214_vm1, %v3815_v25, 0.0  ;;  %v1078_v42 = vmul.f32 %v3815_v25, %v3815_v25 }
 0x377   :  { %1039 = vadd.xlane.f32.xlu0 %v1038_v41  ;;  %v2798_v62 = vpop.f32.mrb[45].mxu0 }
 0x378   :  { %v2799_v18 = vadd.f32 %v2798_v62, %v2797_v60  ;;  %v2800_v54 = vpop.f32.mrb[46].mxu0  ;;  %v1041_v43 = vsel %vm214_vm1, %v3820_v32, 0.0  ;;  %v1079_v30 = vmul.f32 %v3820_v32, %v3820_v32  ;;  %v1118_v47 = vsel %vm214_vm1, %v1078_v42, 0.0 }
 0x379   :  { %1042 = vadd.xlane.f32.xlu1 %v1041_v43  ;;  %v2801_v22 = vpop.f32.mrb[47].mxu0 }
 0x37a   :  { %v978_v45 = vadd.f32 %v2799_v18, %v3701_v11  ;;  %v2802_v46 = vadd.f32 %v2801_v22, %v2800_v54  ;;  %v1121_v55 = vsel %vm214_vm1, %v1079_v30, 0.0 }
 0x37b   :  { %1119 = vadd.xlane.f32.xlu0 %v1118_v47 }
 0x37c   :  { %v3836_v49 = vadd.f32 %v978_v45, %v3621_v40  ;;  %v981_v5 = vadd.f32 %v2802_v46, %v3701_v11 }
 0x37d   :  { %1122 = vadd.xlane.f32.xlu1 %v1121_v55 }
 0x37e   :  { %v3841_v56 = vadd.f32 %v981_v5, %v3624_v23  ;;  %v1044_v6 = vsel %vm214_vm1, %v3836_v49, 0.0  ;;  %v1080_v9 = vmul.f32 %v3836_v49, %v3836_v49 }
 0x37f   :  { %1045 = vadd.xlane.f32.xlu0 %v1044_v6 }
 0x380   :  { %v1047_v40 = vsel %vm214_vm1, %v3841_v56, 0.0  ;;  %v1081_v11 = vmul.f32 %v3841_v56, %v3841_v56  ;;  %v1124_v52 = vsel %vm214_vm1, %v1080_v9, 0.0 }
 0x381   :  { %1048 = vadd.xlane.f32.xlu1 %v1047_v40 }
 0x382   :  { %v1127_v23 = vsel %vm214_vm1, %v1081_v11, 0.0 }
 0x383   :  { %1125 = vadd.xlane.f32.xlu0 %v1124_v52  ;;  %v3871_v52 = vld [vmem:[%s4674_s5 + $0x10] ss:$0 sm:$0xff] }
 0x385   :  { %1128 = vadd.xlane.f32.xlu1 %v1127_v23 }
 0x3d4   :  { %v1004_v36 = vpop.xlane.xlu0 %1003 }
 0x3d5   :  { %v1050_v61 = vmul.f32 0.015625, %v1004_v36 }
 0x3d6   :  { %v1007_v53 = vpop.xlane.xlu1 %1006 }
 0x3d7   :  { %v1051_v44 = vmul.f32 0.015625, %v1007_v53  ;;  %v1146_v0 = vmul.f32 %v1050_v61, %v1050_v61  ;;  %v1194_v9 = vsub.f32 %v3705_v12, %v1050_v61 }
 0x3d8   :  { %v1084_v35 = vpop.xlane.xlu0 %1083 }
 0x3d9   :  { %v1130_v1 = vmul.f32 0.015625, %v1084_v35  ;;  %v1147_v7 = vmul.f32 %v1051_v44, %v1051_v44  ;;  %v1195_v35 = vsub.f32 %v3709_v4, %v1051_v44 }
 0x3da   :  { %v1087_v14 = vpop.xlane.xlu1 %1086 }
 0x3db   :  { %v1162_v38 = vsub.f32 %v1130_v1, %v1146_v0  ;;  %v1131_v8 = vmul.f32 0.015625, %v1087_v14 }
 0x3dc   :  { %v1010_v37 = vpop.xlane.xlu0 %1009 }
 0x3dd   :  { %v1178_v29 = vmax.f32 %v1162_v38, 0.0  ;;  %v1163_v39 = vsub.f32 %v1131_v8, %v1147_v7  ;;  %v3853_v57 = vmul.f32 0.015625, %v1010_v37 }
 0x3de   :  { %v1013_v13 = vpop.xlane.xlu1 %1012 }
 0x3df   :  { %v1210_v20 = vadd.f32 1e-05, %v1178_v29  ;;  %v1179_v59 = vmax.f32 %v1163_v39, 0.0  ;;  %v3855_v17 = vmul.f32 0.015625, %v1013_v13  ;;  %v1148_v26 = vmul.f32 %v3853_v57, %v3853_v57  ;;  %v3882_v29 = vld [vmem:[%s4674_s5 + $0x11] ss:$0 sm:$0xff] }
 0x3e0   :  { %v1090_v21 = vpop.xlane.xlu0 %1089 }
 0x3e1   :  { %3056 = vrsqrt.f32 %v1210_v20  ;;  %v1211_v31 = vadd.f32 1e-05, %v1179_v59  ;;  %v1132_v24 = vmul.f32 0.015625, %v1090_v21  ;;  %v1149_v41 = vmul.f32 %v3855_v17, %v3855_v17 }
 0x3e2   :  { %v1093_v60 = vpop.xlane.xlu1 %1092 }
 0x3e3   :  { %3058 = vrsqrt.f32 %v1211_v31  ;;  %v1164_v42 = vsub.f32 %v1132_v24, %v1148_v26  ;;  %v1133_v62 = vmul.f32 0.015625, %v1093_v60  ;;  %v1196_v26 = vsub.f32 %v3722_v3, %v3853_v57 }
 0x3e4   :  { %v1016_v18 = vpop.xlane.xlu0 %1015 }
 0x3e5   :  { %v1180_v54 = vmax.f32 %v1164_v42, 0.0  ;;  %v1165_v43 = vsub.f32 %v1133_v62, %v1149_v41  ;;  %v3861_v30 = vmul.f32 0.015625, %v1016_v18 }
 0x3e6   :  { %v1019_v22 = vpop.xlane.xlu1 %1018 }
 0x3e7   :  { %v1212_v19 = vadd.f32 1e-05, %v1180_v54  ;;  %v1181_v45 = vmax.f32 %v1165_v43, 0.0  ;;  %v3863_v46 = vmul.f32 0.015625, %v1019_v22  ;;  %v1150_v55 = vmul.f32 %v3861_v30, %v3861_v30 }
 0x3e8   :  { %v1096_v47 = vpop.xlane.xlu0 %1095  ;;  %v1197_v43 = vsub.f32 %v3727_v50, %v3855_v17 }
 0x3e9   :  { %3060 = vrsqrt.f32 %v1212_v19  ;;  %v1213_v5 = vadd.f32 1e-05, %v1181_v45  ;;  %v1134_v6 = vmul.f32 0.015625, %v1096_v47  ;;  %v1151_v23 = vmul.f32 %v3863_v46, %v3863_v46 }
 0x3ea   :  { %v1099_v40 = vpop.xlane.xlu1 %1098 }
 0x3eb   :  { %v3057_v11 = vpop.eup %3056  ;;  %3062 = vrsqrt.f32 %v1213_v5  ;;  %v1166_v36 = vsub.f32 %v1134_v6, %v1150_v55  ;;  %v1135_v53 = vmul.f32 0.015625, %v1099_v40 }
 0x3ec   :  { %v1022_v0 = vpop.xlane.xlu0 %1021  ;;  %v1242_v1 = vmul.f32 %v3057_v11, %v1194_v9 }
 0x3ed   :  { %v3059_v14 = vpop.eup %3058  ;;  %v1182_v7 = vmax.f32 %v1166_v36, 0.0  ;;  %v1167_v12 = vsub.f32 %v1135_v53, %v1151_v23  ;;  %v3876_v61 = vmul.f32 0.015625, %v1022_v0 }
 0x3ee   :  { %v1025_v38 = vpop.xlane.xlu1 %1024  ;;  %v1243_v8 = vmul.f32 %v3059_v14, %v1195_v35  ;;  %v1258_v37 = vmul.f32 %v1242_v1, %v3871_v52  ;;  %v1198_v14 = vsub.f32 %v3740_v2, %v3861_v30 }
 0x3ef   :  { %v1214_v39 = vadd.f32 1e-05, %v1182_v7  ;;  %v1183_v13 = vmax.f32 %v1167_v12, 0.0  ;;  %v3884_v20 = vmul.f32 0.015625, %v1025_v38  ;;  %v1152_v21 = vmul.f32 %v3876_v61, %v3876_v61 }
 0x3f0   :  { %v1102_v4 = vpop.xlane.xlu0 %1101  ;;  %v1259_v44 = vmul.f32 %v1243_v8, %v3871_v52  ;;  %v1274_v60 = vadd.f32 %v1258_v37, %v3882_v29 }
 0x3f1   :  { %3064 = vrsqrt.f32 %v1214_v39  ;;  %v1215_v59 = vadd.f32 1e-05, %v1183_v13  ;;  %v1136_v31 = vmul.f32 0.015625, %v1102_v4  ;;  %v1153_v62 = vmul.f32 %v3884_v20, %v3884_v20 }
 0x3f2   :  { %v1105_v24 = vpop.xlane.xlu1 %1104  ;;  %v1275_v41 = vadd.f32 %v1259_v44, %v3882_v29  ;;  %v1199_v39 = vsub.f32 %v3745_v16, %v3863_v46 }
 0x3f3   :  { %v3061_v42 = vpop.eup %3060  ;;  %3066 = vrsqrt.f32 %v1215_v59  ;;  %v1168_v18 = vsub.f32 %v1136_v31, %v1152_v21  ;;  %v1137_v54 = vmul.f32 0.015625, %v1105_v24 }
 0x3f4   :  { %v1244_v22 = vmul.f32 %v3061_v42, %v1196_v26  ;;  %v1028_v19 = vpop.xlane.xlu0 %1027  ;;  %v1290_v45 = vpack.c.bf16 %v1275_v41, %v1274_v60 }
 0x3f5   :  { %v3063_v47 = vpop.eup %3062  ;;  %v1184_v3 = vmax.f32 %v1168_v18, 0.0  ;;  %v1169_v57 = vsub.f32 %v1137_v54, %v1153_v62  ;;  %v3897_v5 = vmul.f32 0.015625, %v1028_v19 }
 0x3f6   :  { %v1260_v55 = vmul.f32 %v1244_v22, %v3871_v52  ;;  %v1245_v6 = vmul.f32 %v3063_v47, %v1197_v43  ;;  %v1031_v9 = vpop.xlane.xlu1 %1030  ;;  %2914 = vmatprep.mubr.msk.bf16.mxu1 %vm214_vm1, %v1290_v45  ;;  %v1200_v43 = vsub.f32 %v3758_v33, %v3876_v61 }
 0x3f7   :  { %v1216_v40 = vadd.f32 1e-05, %v1184_v3  ;;  %v1185_v11 = vmax.f32 %v1169_v57, 0.0  ;;  %v3902_v36 = vmul.f32 0.015625, %v1031_v9  ;;  %v1154_v53 = vmul.f32 %v3897_v5, %v3897_v5 }
 0x3f8   :  { %v1261_v23 = vmul.f32 %v1245_v6, %v3871_v52  ;;  %v1108_v50 = vpop.xlane.xlu0 %1107  ;;  %v1276_v0 = vadd.f32 %v1260_v55, %v3882_v29  ;;  %v1201_v6 = vsub.f32 %v3763_v58, %v3884_v20 }
 0x3f9   :  { %3068 = vrsqrt.f32 %v1216_v40  ;;  %v1217_v17 = vadd.f32 1e-05, %v1185_v11  ;;  %v1138_v35 = vmul.f32 0.015625, %v1108_v50  ;;  %v1155_v38 = vmul.f32 %v3902_v36, %v3902_v36 }
 0x3fa   :  { %v1277_v1 = vadd.f32 %v1261_v23, %v3882_v29  ;;  %v1111_v7 = vpop.xlane.xlu1 %1110 }
 0x3fb   :  { %v3065_v12 = vpop.eup %3064  ;;  %3070 = vrsqrt.f32 %v1217_v17  ;;  %v1170_v8 = vsub.f32 %v1138_v35, %v1154_v53  ;;  %v1139_v37 = vmul.f32 0.015625, %v1111_v7 }
 0x3fc   :  { %v1034_v13 = vpop.xlane.xlu0 %1033  ;;  %v1291_v4 = vpack.c.bf16 %v1277_v1, %v1276_v0  ;;  %v1246_v44 = vmul.f32 %v3065_v12, %v1198_v14 }
 0x3fd   :  { %v3067_v59 = vpop.eup %3066  ;;  %v1186_v21 = vmax.f32 %v1170_v8, 0.0  ;;  %v1171_v31 = vsub.f32 %v1139_v37, %v1155_v38  ;;  %v3914_v26 = vmul.f32 0.015625, %v1034_v13  ;;  %v1202_v8 = vsub.f32 %v3779_v15, %v3897_v5 }
 0x3fe   :  { %v1037_v2 = vpop.xlane.xlu1 %1036  ;;  %2915 = vmatmul.mubr.msk.bf16.vlgmr.msra.gmra.mrb[32].mxu1 %vm214_vm1, %v1291_v4  ;;  %v1247_v30 = vmul.f32 %v3067_v59, %v1199_v39  ;;  %v1262_v24 = vmul.f32 %v1246_v44, %v3871_v52 }
 0x3ff   :  { %v1218_v60 = vadd.f32 1e-05, %v1186_v21  ;;  %v1187_v41 = vmax.f32 %v1171_v31, 0.0  ;;  %v3918_v42 = vmul.f32 0.015625, %v1037_v2  ;;  %v1156_v18 = vmul.f32 %v3914_v26, %v3914_v26 }
 0x400   :  { %v1114_v62 = vpop.xlane.xlu0 %1113  ;;  %v1263_v16 = vmul.f32 %v1247_v30, %v3871_v52  ;;  %v1278_v19 = vadd.f32 %v1262_v24, %v3882_v29  ;;  %v1203_v31 = vsub.f32 %v3784_v51, %v3902_v36 }
 0x401   :  { %3072 = vrsqrt.f32 %v1218_v60  ;;  %v1219_v46 = vadd.f32 1e-05, %v1187_v41  ;;  %v1140_v54 = vmul.f32 0.015625, %v1114_v62  ;;  %v1157_v3 = vmul.f32 %v3918_v42, %v3918_v42 }
 0x402   :  { %v1117_v22 = vpop.xlane.xlu1 %1116  ;;  %v1279_v45 = vadd.f32 %v1263_v16, %v3882_v29 }
 0x403   :  { %v3069_v47 = vpop.eup %3068  ;;  %3074 = vrsqrt.f32 %v1219_v46  ;;  %v1172_v57 = vsub.f32 %v1140_v54, %v1156_v18  ;;  %v1141_v55 = vmul.f32 0.015625, %v1117_v22 }
 0x404   :  { %v1040_v9 = vpop.xlane.xlu0 %1039  ;;  %v1292_v40 = vpack.c.bf16 %v1279_v45, %v1278_v19  ;;  %v1248_v11 = vmul.f32 %v3069_v47, %v1200_v43  ;;  %v1204_v47 = vsub.f32 %v3797_v63, %v3914_v26 }
 0x405   :  { %v3071_v23 = vpop.eup %3070  ;;  %v1188_v33 = vmax.f32 %v1172_v57, 0.0  ;;  %v1173_v61 = vsub.f32 %v1141_v55, %v1157_v3  ;;  %v3931_v50 = vmul.f32 0.015625, %v1040_v9 }
 0x406   :  { %v1043_v17 = vpop.xlane.xlu1 %1042  ;;  %2918 = vmatprep.mubr.msk.bf16.mxu1 %vm214_vm1, %v1292_v40  ;;  %v1249_v53 = vmul.f32 %v3071_v23, %v1201_v6  ;;  %v1264_v35 = vmul.f32 %v1248_v11, %v3871_v52  ;;  %v1205_v23 = vsub.f32 %v3802_v48, %v3918_v42 }
 0x407   :  { %v1220_v0 = vadd.f32 1e-05, %v1188_v33  ;;  %v1189_v1 = vmax.f32 %v1173_v61, 0.0  ;;  %v3935_v14 = vmul.f32 0.015625, %v1043_v17  ;;  %v1158_v12 = vmul.f32 %v3931_v50, %v3931_v50 }
 0x408   :  { %v1120_v7 = vpop.xlane.xlu0 %1119  ;;  %v1265_v58 = vmul.f32 %v1249_v53, %v3871_v52  ;;  %v1280_v39 = vadd.f32 %v1264_v35, %v3882_v29 }
 0x409   :  { %3076 = vrsqrt.f32 %v1220_v0  ;;  %v1221_v20 = vadd.f32 1e-05, %v1189_v1  ;;  %v1142_v38 = vmul.f32 0.015625, %v1120_v7  ;;  %v1159_v44 = vmul.f32 %v3935_v14, %v3935_v14 }
 0x40a   :  { %v1123_v37 = vpop.xlane.xlu1 %1122  ;;  %v1281_v13 = vadd.f32 %v1265_v58, %v3882_v29 }
 0x40b   :  { %v3073_v4 = vpop.eup %3072  ;;  %3078 = vrsqrt.f32 %v1221_v20  ;;  %v1174_v59 = vsub.f32 %v1142_v38, %v1158_v12  ;;  %v1143_v21 = vmul.f32 0.015625, %v1123_v37  ;;  %v1206_v20 = vsub.f32 %v3815_v25, %v3931_v50 }
 0x40c   :  { %v1046_v2 = vpop.xlane.xlu0 %1045  ;;  %v1293_v30 = vpack.c.bf16 %v1281_v13, %v1280_v39  ;;  %v1250_v24 = vmul.f32 %v3073_v4, %v1202_v8  ;;  %v1207_v38 = vsub.f32 %v3820_v32, %v3935_v14 }
 0x40d   :  { %v3075_v60 = vpop.eup %3074  ;;  %v1190_v15 = vmax.f32 %v1174_v59, 0.0  ;;  %v1175_v5 = vsub.f32 %v1143_v21, %v1159_v44  ;;  %v1064_v41 = vmul.f32 0.015625, %v1046_v2 }
 0x40e   :  { %v1049_v62 = vpop.xlane.xlu1 %1048  ;;  %2919 = vmatmul.mubr.msk.bf16.gmra.mrb[36].mxu1 %vm214_vm1, %v1293_v30  ;;  %v1251_v16 = vmul.f32 %v3075_v60, %v1203_v31  ;;  %v1266_v46 = vmul.f32 %v1250_v24, %v3871_v52 }
 0x40f   :  { %v1222_v18 = vadd.f32 1e-05, %v1190_v15  ;;  %v1191_v54 = vmax.f32 %v1175_v5, 0.0  ;;  %v1065_v43 = vmul.f32 0.015625, %v1049_v62  ;;  %v1160_v36 = vmul.f32 %v1064_v41, %v1064_v41  ;;  %v3001_v62 = vld [vmem:[%s4672_s3 + $0x54] ss:$8 sps:$4 sm:$0xff]  }
 0x410   :  { %v1126_v22 = vpop.xlane.xlu0 %1125  ;;  %v1267_v19 = vmul.f32 %v1251_v16, %v3871_v52  ;;  %v1282_v57 = vadd.f32 %v1266_v46, %v3882_v29  ;;  %v1208_v25 = vsub.f32 %v3836_v49, %v1064_v41  ;;  %v2998_v41 = vld [vmem:[%s4672_s3 + $0x44] ss:$8 sps:$4 sm:$0xff]  }
 0x411   :  { %3080 = vrsqrt.f32 %v1222_v18  ;;  %v1223_v51 = vadd.f32 1e-05, %v1191_v54  ;;  %v1144_v45 = vmul.f32 0.015625, %v1126_v22  ;;  %v1161_v9 = vmul.f32 %v1065_v43, %v1065_v43  ;;  %1836 = vmatprep.subr.bf16.mxu0 %v2998_v41 }
 0x412   :  { %v1129_v3 = vpop.xlane.xlu1 %1128  ;;  %v1283_v55 = vadd.f32 %v1267_v19, %v3882_v29  ;;  %v1209_v31 = vsub.f32 %v3841_v56, %v1065_v43  ;;  %v2996_v56 = vld [vmem:[%s4672_s3 + $0x40] ss:$8 sps:$4 sm:$0xff]  }
 0x413   :  { %v3077_v6 = vpop.eup %3076  ;;  %3082 = vrsqrt.f32 %v1223_v51  ;;  %v1176_v40 = vsub.f32 %v1144_v45, %v1160_v36  ;;  %v1145_v11 = vmul.f32 0.015625, %v1129_v3  ;;  %1837 = vmatpush1.bf16.msra.mxu0 %v2996_v56 }
 0x414   :  { %v1294_v33 = vpack.c.bf16 %v1283_v55, %v1282_v57  ;;  %v1252_v61 = vmul.f32 %v3077_v6, %v1204_v47  ;;  %1838 = vmatprep.subr.bf16.mxu0 %v3001_v62 }
 0x415   :  { %v3079_v17 = vpop.eup %3078  ;;  %v1192_v53 = vmax.f32 %v1176_v40, 0.0  ;;  %v1177_v35 = vsub.f32 %v1145_v11, %v1161_v9 }
 0x416   :  { %2922 = vmatprep.mubr.msk.bf16.mxu1 %vm214_vm1, %v1294_v33  ;;  %v1253_v63 = vmul.f32 %v3079_v17, %v1205_v23  ;;  %v1268_v26 = vmul.f32 %v1252_v61, %v3871_v52 }
 0x417   :  { %v1224_v0 = vadd.f32 1e-05, %v1192_v53  ;;  %v1193_v1 = vmax.f32 %v1177_v35, 0.0 }
 0x418   :  { %v1269_v7 = vmul.f32 %v1253_v63, %v3871_v52  ;;  %v1284_v48 = vadd.f32 %v1268_v26, %v3882_v29 }
 0x419   :  { %3084 = vrsqrt.f32 %v1224_v0  ;;  %v1225_v58 = vadd.f32 1e-05, %v1193_v1 }
 0x41a   :  { %v1285_v42 = vadd.f32 %v1269_v7, %v3882_v29  ;;  %v3002_v7 = vld [vmem:[%s4672_s3 + $0x60] ss:$8 sps:$4 sm:$0xff]  }
 0x41b   :  { %v3081_v12 = vpop.eup %3080  ;;  %3086 = vrsqrt.f32 %v1225_v58  ;;  %v3004_v58 = vld [vmem:[%s4672_s3 + $0x64] ss:$8 sps:$4 sm:$0xff]  }
 0x41c   :  { %v1295_v8 = vpack.c.bf16 %v1285_v42, %v1284_v48  ;;  %v1254_v37 = vmul.f32 %v3081_v12, %v1206_v20 }
 0x41d   :  { %v3083_v39 = vpop.eup %3082 }
 0x41e   :  { %2923 = vmatmul.mubr.msk.bf16.gmra.mrb[40].mxu1 %vm214_vm1, %v1295_v8  ;;  %v1255_v13 = vmul.f32 %v3083_v39, %v1207_v38  ;;  %v1270_v4 = vmul.f32 %v1254_v37, %v3871_v52 }
 0x420   :  { %v1271_v44 = vmul.f32 %v1255_v13, %v3871_v52  ;;  %v1286_v50 = vadd.f32 %v1270_v4, %v3882_v29 }
 0x422   :  { %v1287_v59 = vadd.f32 %v1271_v44, %v3882_v29 }
 0x423   :  { %v3085_v21 = vpop.eup %3084 }
 0x424   :  { %v1296_v32 = vpack.c.bf16 %v1287_v59, %v1286_v50  ;;  %v1256_v14 = vmul.f32 %v3085_v21, %v1208_v25 }
 0x425   :  { %v3087_v2 = vpop.eup %3086 }
 0x426   :  { %2926 = vmatprep.mubr.msk.bf16.mxu1 %vm214_vm1, %v1296_v32  ;;  %v1257_v30 = vmul.f32 %v3087_v2, %v1209_v31  ;;  %v1272_v24 = vmul.f32 %v1256_v14, %v3871_v52 }
 0x428   :  { %v1273_v60 = vmul.f32 %v1257_v30, %v3871_v52  ;;  %v1288_v15 = vadd.f32 %v1272_v24, %v3882_v29  ;;  %v2999_v52 = vld [vmem:[%s4672_s3 + $0x50] ss:$8 sps:$4 sm:$0xff]  }
 0x429   :  { %1839 = vmatpush1.bf16.msra.mxu0 %v2999_v52 }
 0x42a   :  { %v1289_v49 = vadd.f32 %v1273_v60, %v3882_v29  ;;  %v3994_v29 = vld [vmem:[%s4674_s5 + $0x12] ss:$0 sm:$0xff]  ;;  %1840 = vmatprep.subr.bf16.mxu0 %v3004_v58 }
 0x42c   :  { %v1297_v5 = vpack.c.bf16 %v1289_v49, %v1288_v15 }
 0x42d   :  { %1841 = vmatpush1.bf16.msra.mxu0 %v3002_v7 }
 0x42e   :  { %2927 = vmatmul.mubr.msk.bf16.gmra.mrb[44].mxu1 %vm214_vm1, %v1297_v5 }
 0x4d1   :  { %v2916_v16 = vpop.f32.mrb[32].mxu1 }
 0x4d2   :  { %v1389_v46 = vpop.f32.mrb[33].mxu1  ;;  %v4011_v47 = vadd.f32 %v2916_v16, %v3994_v29 }
 0x4d3   :  { %v3997_v18 = vadd.f32 %v1389_v46, %v3994_v29  ;;  %v2917_v54 = vpop.f32.mrb[34].mxu1  ;;  %v3007_v46 = vld [vmem:[%s4672_s3 + $0x74] ss:$8 sps:$4 sm:$0xff]  }
 0x4d4   :  { %v1392_v43 = vpop.f32.mrb[35].mxu1  ;;  %v4015_v57 = vadd.f32 %v2917_v54, %v3994_v29  ;;  %v1460_v6 = vsel %vm214_vm1, %v4011_v47, 0.0  ;;  %v1520_v9 = vmul.f32 %v4011_v47, %v4011_v47  ;;  %1842 = vmatprep.subr.bf16.mxu0 %v3007_v46 }
 0x4d5   :  { %v4000_v22 = vadd.f32 %v1392_v43, %v3994_v29  ;;  %v1454_v19 = vsel %vm214_vm1, %v3997_v18, 0.0  ;;  %v1518_v51 = vmul.f32 %v3997_v18, %v3997_v18 }
 0x4d6   :  { %1455 = vadd.xlane.f32.xlu0 %v1454_v19  ;;  %v1463_v40 = vsel %vm214_vm1, %v4015_v57, 0.0  ;;  %v1521_v11 = vmul.f32 %v4015_v57, %v4015_v57  ;;  %v1540_v33 = vsel %vm214_vm1, %v1520_v9, 0.0  ;;  %v3005_v19 = vld [vmem:[%s4672_s3 + $0x70] ss:$8 sps:$4 sm:$0xff]  }
 0x4d7   :  { %v1457_v36 = vsel %vm214_vm1, %v4000_v22, 0.0  ;;  %v1519_v45 = vmul.f32 %v4000_v22, %v4000_v22  ;;  %v1534_v3 = vsel %vm214_vm1, %v1518_v51, 0.0  ;;  %1843 = vmatpush1.bf16.msra.mxu0 %v3005_v19 }
 0x4d8   :  { %1458 = vadd.xlane.f32.xlu1 %v1457_v36  ;;  %v1543_v35 = vsel %vm214_vm1, %v1521_v11, 0.0 }
 0x4d9   :  { %v1537_v55 = vsel %vm214_vm1, %v1519_v45, 0.0 }
 0x4da   :  { %1535 = vadd.xlane.f32.xlu0 %v1534_v3 }
 0x4dc   :  { %1538 = vadd.xlane.f32.xlu1 %v1537_v55 }
 0x4de   :  { %1461 = vadd.xlane.f32.xlu0 %v1460_v6 }
 0x4e0   :  { %1464 = vadd.xlane.f32.xlu1 %v1463_v40 }
 0x4e1   :  { %v2920_v23 = vpop.f32.mrb[36].mxu1 }
 0x4e2   :  { %1541 = vadd.xlane.f32.xlu0 %v1540_v33  ;;  %v1405_v61 = vpop.f32.mrb[37].mxu1  ;;  %v4049_v42 = vadd.f32 %v2920_v23, %v3994_v29 }
 0x4e3   :  { %v4028_v17 = vadd.f32 %v1405_v61, %v3994_v29  ;;  %v2921_v53 = vpop.f32.mrb[38].mxu1 }
 0x4e4   :  { %1544 = vadd.xlane.f32.xlu1 %v1543_v35  ;;  %v1408_v63 = vpop.f32.mrb[39].mxu1  ;;  %v4053_v38 = vadd.f32 %v2921_v53, %v3994_v29  ;;  %v1472_v37 = vsel %vm214_vm1, %v4049_v42, 0.0  ;;  %v1524_v39 = vmul.f32 %v4049_v42, %v4049_v42 }
 0x4e5   :  { %v4032_v26 = vadd.f32 %v1408_v63, %v3994_v29  ;;  %v1466_v0 = vsel %vm214_vm1, %v4028_v17, 0.0  ;;  %v1522_v1 = vmul.f32 %v4028_v17, %v4028_v17 }
 0x4e6   :  { %1467 = vadd.xlane.f32.xlu0 %v1466_v0  ;;  %v1475_v13 = vsel %vm214_vm1, %v4053_v38, 0.0  ;;  %v1525_v4 = vmul.f32 %v4053_v38, %v4053_v38  ;;  %v1552_v25 = vsel %vm214_vm1, %v1524_v39, 0.0  ;;  %v3013_v39 = vld [vmem:[%s4673_s4 + $0x90] sm:$0xff]  }
 0x4e7   :  { %v1469_v20 = vsel %vm214_vm1, %v4032_v26, 0.0  ;;  %v1523_v48 = vmul.f32 %v4032_v26, %v4032_v26  ;;  %v1546_v12 = vsel %vm214_vm1, %v1522_v1, 0.0 }
 0x4e8   :  { %1470 = vadd.xlane.f32.xlu1 %v1469_v20  ;;  %v1555_v31 = vsel %vm214_vm1, %v1525_v4, 0.0  ;;  %v3008_v20 = vld [vmem:[%s4673_s4 + $0xc0] sm:$0xff]   ;;  %v3015_v4 = vld [vmem:[%s4673_s4 + $0x98] sm:$0xff]  }
 0x4e9   :  { %v1549_v8 = vsel %vm214_vm1, %v1523_v48, 0.0  ;;  %v3009_v48 = vld [vmem:[%s4673_s4 + $0x80] sm:$0xff]   ;;  %2815 = vmatprep.subr.bf16.mxu1 %v3008_v20 }
 0x4ea   :  { %1547 = vadd.xlane.f32.xlu0 %v1546_v12  ;;  %v3010_v12 = vld [vmem:[%s4673_s4 + $0xc8] sm:$0xff]   ;;  %2816 = vmatpush3.bf16.msra.mxu1 %v3009_v48 }
 0x4eb   :  { %2817 = vmatprep.subr.bf16.mxu1 %v3010_v12 }
 0x4ec   :  { %1550 = vadd.xlane.f32.xlu1 %v1549_v8  ;;  %v3011_v8 = vld [vmem:[%s4673_s4 + $0x88] sm:$0xff]  }
 0x4ee   :  { %1473 = vadd.xlane.f32.xlu0 %v1472_v37  ;;  %v3012_v37 = vld [vmem:[%s4673_s4 + $0xd0] sm:$0xff]   ;;  %2818 = vmatpush3.bf16.msra.mxu1 %v3011_v8 }
 0x4ef   :  { %2819 = vmatprep.subr.bf16.mxu1 %v3012_v37 }
 0x4f0   :  { %1476 = vadd.xlane.f32.xlu1 %v1475_v13  ;;  %v3014_v13 = vld [vmem:[%s4673_s4 + $0xd8] sm:$0xff]  }
 0x4f1   :  { %v2924_v44 = vpop.f32.mrb[40].mxu1 }
 0x4f2   :  { %1553 = vadd.xlane.f32.xlu0 %v1552_v25  ;;  %v1421_v50 = vpop.f32.mrb[41].mxu1  ;;  %v4081_v15 = vadd.f32 %v2924_v44, %v3994_v29  ;;  %2820 = vmatpush3.bf16.msra.mxu1 %v3013_v39  ;;  %v3016_v44 = vld [vmem:[%s4673_s4 + $0xe0] sm:$0xff]  }
 0x4f3   :  { %v4066_v59 = vadd.f32 %v1421_v50, %v3994_v29  ;;  %v2925_v21 = vpop.f32.mrb[42].mxu1  ;;  %2821 = vmatprep.subr.bf16.mxu1 %v3014_v13  ;;  %v3017_v25 = vld [vmem:[%s4673_s4 + $0xa0] sm:$0xff]   ;;  %v3018_v50 = vld [vmem:[%s4673_s4 + $0xe8] sm:$0xff]  }
 0x4f4   :  { %1556 = vadd.xlane.f32.xlu1 %v1555_v31  ;;  %v1424_v32 = vpop.f32.mrb[43].mxu1  ;;  %v4085_v5 = vadd.f32 %v2925_v21, %v3994_v29  ;;  %v1484_v41 = vsel %vm214_vm1, %v4081_v15, 0.0  ;;  %v1528_v62 = vmul.f32 %v4081_v15, %v4081_v15 }
 0x4f5   :  { %v4070_v14 = vadd.f32 %v1424_v32, %v3994_v29  ;;  %v1478_v2 = vsel %vm214_vm1, %v4066_v59, 0.0  ;;  %v1526_v30 = vmul.f32 %v4066_v59, %v4066_v59 }
 0x4f6   :  { %1479 = vadd.xlane.f32.xlu0 %v1478_v2  ;;  %v1487_v52 = vsel %vm214_vm1, %v4085_v5, 0.0  ;;  %v1529_v16 = vmul.f32 %v4085_v5, %v4085_v5  ;;  %v1564_v43 = vsel %vm214_vm1, %v1528_v62, 0.0  ;;  %2822 = vmatpush3.bf16.msra.mxu1 %v3015_v4 }
 0x4f7   :  { %v1481_v24 = vsel %vm214_vm1, %v4070_v14, 0.0  ;;  %v1527_v60 = vmul.f32 %v4070_v14, %v4070_v14  ;;  %v1558_v49 = vsel %vm214_vm1, %v1526_v30, 0.0  ;;  %2823 = vmatprep.subr.bf16.mxu1 %v3016_v44 }
 0x4f8   :  { %1482 = vadd.xlane.f32.xlu1 %v1481_v24  ;;  %v1567_v3 = vsel %vm214_vm1, %v1529_v16, 0.0 }
 0x4f9   :  { %v1561_v56 = vsel %vm214_vm1, %v1527_v60, 0.0 }
 0x4fa   :  { %1559 = vadd.xlane.f32.xlu0 %v1558_v49  ;;  %2824 = vmatpush3.bf16.msra.mxu1 %v3017_v25  ;;  %v4187_v25 = vld [vmem:[%s4674_s5 + $0x13] ss:$0 sm:$0xff] }
 0x4fb   :  { %2825 = vmatprep.subr.bf16.mxu1 %v3018_v50 }
 0x4fc   :  { %1562 = vadd.xlane.f32.xlu1 %v1561_v56 }
 0x4fe   :  { %1485 = vadd.xlane.f32.xlu0 %v1484_v41 }
 0x500   :  { %1488 = vadd.xlane.f32.xlu1 %v1487_v52 }
 0x501   :  { %v2928_v54 = vpop.f32.mrb[44].mxu1 }
 0x502   :  { %1565 = vadd.xlane.f32.xlu0 %v1564_v43  ;;  %v1437_v51 = vpop.f32.mrb[45].mxu1  ;;  %v4119_v33 = vadd.f32 %v2928_v54, %v3994_v29 }
 0x503   :  { %v4104_v36 = vadd.f32 %v1437_v51, %v3994_v29  ;;  %v2929_v45 = vpop.f32.mrb[46].mxu1 }
 0x504   :  { %1568 = vadd.xlane.f32.xlu1 %v1567_v3  ;;  %v1440_v55 = vpop.f32.mrb[47].mxu1  ;;  %v4123_v53 = vadd.f32 %v2929_v45, %v3994_v29  ;;  %v1496_v63 = vsel %vm214_vm1, %v4119_v33, 0.0  ;;  %v1532_v0 = vmul.f32 %v4119_v33, %v4119_v33 }
 0x505   :  { %v4108_v6 = vadd.f32 %v1440_v55, %v3994_v29  ;;  %v1490_v9 = vsel %vm214_vm1, %v4104_v36, 0.0  ;;  %v1530_v40 = vmul.f32 %v4104_v36, %v4104_v36 }
 0x506   :  { %1491 = vadd.xlane.f32.xlu0 %v1490_v9  ;;  %v1499_v1 = vsel %vm214_vm1, %v4123_v53, 0.0  ;;  %v1533_v7 = vmul.f32 %v4123_v53, %v4123_v53  ;;  %v1576_v29 = vsel %vm214_vm1, %v1532_v0, 0.0 }
 0x507   :  { %v1493_v11 = vsel %vm214_vm1, %v4108_v6, 0.0  ;;  %v1531_v23 = vmul.f32 %v4108_v6, %v4108_v6  ;;  %v1570_v61 = vsel %vm214_vm1, %v1530_v40, 0.0 }
 0x508   :  { %1494 = vadd.xlane.f32.xlu1 %v1493_v11  ;;  %v1579_v58 = vsel %vm214_vm1, %v1533_v7, 0.0 }
 0x509   :  { %v1573_v35 = vsel %vm214_vm1, %v1531_v23, 0.0 }
 0x50a   :  { %1571 = vadd.xlane.f32.xlu0 %v1570_v61 }
 0x50c   :  { %1574 = vadd.xlane.f32.xlu1 %v1573_v35 }
 0x50e   :  { %1497 = vadd.xlane.f32.xlu0 %v1496_v63 }
 0x510   :  { %1500 = vadd.xlane.f32.xlu1 %v1499_v1 }
 0x512   :  { %1577 = vadd.xlane.f32.xlu0 %v1576_v29 }
 0x514   :  { %1580 = vadd.xlane.f32.xlu1 %v1579_v58 }
 0x563   :  { %v1456_v21 = vpop.xlane.xlu0 %1455 }
 0x564   :  { %v1502_v31 = vmul.f32 0.015625, %v1456_v21 }
 0x565   :  { %v1459_v32 = vpop.xlane.xlu1 %1458 }
 0x566   :  { %v1503_v2 = vmul.f32 0.015625, %v1459_v32  ;;  %v1598_v24 = vmul.f32 %v1502_v31, %v1502_v31  ;;  %v1646_v13 = vsub.f32 %v3997_v18, %v1502_v31 }
 0x567   :  { %v1536_v30 = vpop.xlane.xlu0 %1535 }
 0x568   :  { %v1582_v60 = vmul.f32 0.015625, %v1536_v30  ;;  %v1599_v56 = vmul.f32 %v1503_v2, %v1503_v2  ;;  %v1647_v30 = vsub.f32 %v4000_v22, %v1503_v2 }
 0x569   :  { %v1539_v49 = vpop.xlane.xlu1 %1538 }
 0x56a   :  { %v1614_v41 = vsub.f32 %v1582_v60, %v1598_v24  ;;  %v1583_v62 = vmul.f32 0.015625, %v1539_v49 }
 0x56b   :  { %v1462_v52 = vpop.xlane.xlu0 %1461 }
 0x56c   :  { %v1630_v16 = vmax.f32 %v1614_v41, 0.0  ;;  %v1615_v46 = vsub.f32 %v1583_v62, %v1599_v56  ;;  %v4169_v54 = vmul.f32 0.015625, %v1462_v52 }
 0x56d   :  { %v1465_v43 = vpop.xlane.xlu1 %1464 }
 0x56e   :  { %v1662_v19 = vadd.f32 1e-05, %v1630_v16  ;;  %v1631_v51 = vmax.f32 %v1615_v46, 0.0  ;;  %v4171_v45 = vmul.f32 0.015625, %v1465_v43  ;;  %v1600_v9 = vmul.f32 %v4169_v54, %v4169_v54  ;;  %v4198_v16 = vld [vmem:[%s4674_s5 + $0x14] ss:$0 sm:$0xff] }
 0x56f   :  { %v1542_v3 = vpop.xlane.xlu0 %1541 }
 0x570   :  { %3088 = vrsqrt.f32 %v1662_v19  ;;  %v1663_v55 = vadd.f32 1e-05, %v1631_v51  ;;  %v1584_v40 = vmul.f32 0.015625, %v1542_v3  ;;  %v1601_v23 = vmul.f32 %v4171_v45, %v4171_v45 }
 0x571   :  { %v1545_v11 = vpop.xlane.xlu1 %1544 }
 0x572   :  { %3090 = vrsqrt.f32 %v1663_v55  ;;  %v1616_v61 = vsub.f32 %v1584_v40, %v1600_v9  ;;  %v1585_v35 = vmul.f32 0.015625, %v1545_v11  ;;  %v1648_v11 = vsub.f32 %v4011_v47, %v4169_v54 }
 0x573   :  { %v1468_v63 = vpop.xlane.xlu0 %1467 }
 0x574   :  { %v1632_v0 = vmax.f32 %v1616_v61, 0.0  ;;  %v1617_v1 = vsub.f32 %v1585_v35, %v1601_v23  ;;  %v4177_v7 = vmul.f32 0.015625, %v1468_v63 }
 0x575   :  { %v1471_v29 = vpop.xlane.xlu1 %1470 }
 0x576   :  { %v1664_v58 = vadd.f32 1e-05, %v1632_v0  ;;  %v1633_v20 = vmax.f32 %v1617_v1, 0.0  ;;  %v4179_v48 = vmul.f32 0.015625, %v1471_v29  ;;  %v1602_v37 = vmul.f32 %v4177_v7, %v4177_v7 }
 0x577   :  { %v1548_v12 = vpop.xlane.xlu0 %1547  ;;  %v1649_v1 = vsub.f32 %v4015_v57, %v4171_v45 }
 0x578   :  { %3092 = vrsqrt.f32 %v1664_v58  ;;  %v1665_v8 = vadd.f32 1e-05, %v1633_v20  ;;  %v1586_v39 = vmul.f32 0.015625, %v1548_v12  ;;  %v1603_v50 = vmul.f32 %v4179_v48, %v4179_v48 }
 0x579   :  { %v1551_v4 = vpop.xlane.xlu1 %1550 }
 0x57a   :  { %v3089_v44 = vpop.eup %3088  ;;  %3094 = vrsqrt.f32 %v1665_v8  ;;  %v1618_v21 = vsub.f32 %v1586_v39, %v1602_v37  ;;  %v1587_v32 = vmul.f32 0.015625, %v1551_v4 }
 0x57b   :  { %v1694_v24 = vmul.f32 %v3089_v44, %v1646_v13  ;;  %v1474_v60 = vpop.xlane.xlu0 %1473 }
 0x57c   :  { %v3091_v49 = vpop.eup %3090  ;;  %v1634_v56 = vmax.f32 %v1618_v21, 0.0  ;;  %v1619_v18 = vsub.f32 %v1587_v32, %v1603_v50  ;;  %v4192_v31 = vmul.f32 0.015625, %v1474_v60 }
 0x57d   :  { %v1710_v41 = vmul.f32 %v1694_v24, %v4187_v25  ;;  %v1695_v62 = vmul.f32 %v3091_v49, %v1647_v30  ;;  %v1477_v52 = vpop.xlane.xlu1 %1476  ;;  %v1650_v24 = vsub.f32 %v4028_v17, %v4177_v7 }
 0x57e   :  { %v1666_v46 = vadd.f32 1e-05, %v1634_v56  ;;  %v1635_v43 = vmax.f32 %v1619_v18, 0.0  ;;  %v4201_v2 = vmul.f32 0.015625, %v1477_v52  ;;  %v1604_v3 = vmul.f32 %v4192_v31, %v4192_v31 }
 0x57f   :  { %v1711_v22 = vmul.f32 %v1695_v62, %v4187_v25  ;;  %v1554_v19 = vpop.xlane.xlu0 %1553  ;;  %v4206_v9 = vadd.f32 %v1710_v41, %v4198_v16 }
 0x580   :  { %3096 = vrsqrt.f32 %v1666_v46  ;;  %v1667_v51 = vadd.f32 1e-05, %v1635_v43  ;;  %v1588_v55 = vmul.f32 0.015625, %v1554_v19  ;;  %v1605_v35 = vmul.f32 %v4201_v2, %v4201_v2 }
 0x581   :  { %v4209_v40 = vadd.f32 %v1711_v22, %v4198_v16  ;;  %v1557_v23 = vpop.xlane.xlu1 %1556  ;;  %v1651_v46 = vsub.f32 %v4032_v26, %v4179_v48 }
 0x582   :  { %v3093_v61 = vpop.eup %3092  ;;  %3098 = vrsqrt.f32 %v1667_v51  ;;  %v1620_v63 = vsub.f32 %v1588_v55, %v1604_v3  ;;  %v1589_v0 = vmul.f32 0.015625, %v1557_v23 }
 0x583   :  { %v1480_v29 = vpop.xlane.xlu0 %1479  ;;  %v1742_v58 = vpack.c.bf16 %v4209_v40, %v4206_v9  ;;  %v1696_v20 = vmul.f32 %v3093_v61, %v1648_v11 }
 0x584   :  { %v3095_v12 = vpop.eup %3094  ;;  %v1636_v8 = vmax.f32 %v1620_v63, 0.0  ;;  %v1621_v37 = vsub.f32 %v1589_v0, %v1605_v35  ;;  %v4219_v47 = vmul.f32 0.015625, %v1480_v29 }
 0x585   :  { %v1483_v54 = vpop.xlane.xlu1 %1482  ;;  %2673 = vmatmul.mubr.msk.bf16.vlgmr.msra.gmra.mrb[48].mxu0 %vm214_vm1, %v1742_v58  ;;  %v1697_v39 = vmul.f32 %v3095_v12, %v1649_v1  ;;  %v1712_v13 = vmul.f32 %v1696_v20, %v4187_v25  ;;  %v1652_v58 = vsub.f32 %v4049_v42, %v4192_v31 }
 0x586   :  { %v1668_v4 = vadd.f32 1e-05, %v1636_v8  ;;  %v1637_v44 = vmax.f32 %v1621_v37, 0.0  ;;  %1878 = vmatprep.mubr.bf16.mxu0 %v3176_v27  ;;  %v4224_v57 = vmul.f32 0.015625, %v1483_v54  ;;  %v1606_v32 = vmul.f32 %v4219_v47, %v4219_v47 }
 0x587   :  { %v1560_v45 = vpop.xlane.xlu0 %1559  ;;  %v1713_v50 = vmul.f32 %v1697_v39, %v4187_v25  ;;  %v4232_v49 = vadd.f32 %v1712_v13, %v4198_v16 }
 0x588   :  { %3100 = vrsqrt.f32 %v1668_v4  ;;  %v1669_v21 = vadd.f32 1e-05, %v1637_v44  ;;  %v1590_v30 = vmul.f32 0.015625, %v1560_v45  ;;  %v1607_v41 = vmul.f32 %v4224_v57, %v4224_v57 }
 0x589   :  { %v1563_v60 = vpop.xlane.xlu1 %1562  ;;  %v4235_v56 = vadd.f32 %v1713_v50, %v4198_v16  ;;  %v1653_v4 = vsub.f32 %v4053_v38, %v4201_v2 }
 0x58a   :  { %v3097_v18 = vpop.eup %3096  ;;  %3102 = vrsqrt.f32 %v1669_v21  ;;  %v1622_v62 = vsub.f32 %v1590_v30, %v1606_v32  ;;  %v1591_v52 = vmul.f32 0.015625, %v1563_v60 }
 0x58b   :  { %v1486_v43 = vpop.xlane.xlu0 %1485  ;;  %v1743_v17 = vpack.c.bf16 %v4235_v56, %v4232_v49  ;;  %v1698_v7 = vmul.f32 %v3097_v18, %v1650_v24 }
 0x58c   :  { %v3099_v22 = vpop.eup %3098  ;;  %v1638_v19 = vmax.f32 %v1622_v62, 0.0  ;;  %v1623_v51 = vsub.f32 %v1591_v52, %v1607_v41  ;;  %v4243_v3 = vmul.f32 0.015625, %v1486_v43 }
 0x58d   :  { %v1489_v55 = vpop.xlane.xlu1 %1488  ;;  %2674 = vmatmul.mubr.msk.bf16.gmra.mrb[52].mxu0 %vm214_vm1, %v1743_v17  ;;  %v1699_v11 = vmul.f32 %v3099_v22, %v1651_v46  ;;  %v1714_v23 = vmul.f32 %v1698_v7, %v4187_v25  ;;  %v1654_v17 = vsub.f32 %v4066_v59, %v4219_v47 }
 0x58e   :  { %v1670_v61 = vadd.f32 1e-05, %v1638_v19  ;;  %v1639_v35 = vmax.f32 %v1623_v51, 0.0  ;;  %1888 = vmatprep.mubr.bf16.mxu0 %v3176_v27  ;;  %v4248_v26 = vmul.f32 0.015625, %v1489_v55  ;;  %v1608_v1 = vmul.f32 %v4243_v3, %v4243_v3 }
 0x58f   :  { %v1566_v48 = vpop.xlane.xlu0 %1565  ;;  %v1715_v63 = vmul.f32 %v1699_v11, %v4187_v25  ;;  %v4256_v12 = vadd.f32 %v1714_v23, %v4198_v16 }
 0x590   :  { %3104 = vrsqrt.f32 %v1670_v61  ;;  %v1671_v0 = vadd.f32 1e-05, %v1639_v35  ;;  %v1592_v29 = vmul.f32 0.015625, %v1566_v48  ;;  %v1609_v54 = vmul.f32 %v4248_v26, %v4248_v26 }
 0x591   :  { %v1569_v20 = vpop.xlane.xlu1 %1568  ;;  %v4259_v8 = vadd.f32 %v1715_v63, %v4198_v16  ;;  %v1655_v61 = vsub.f32 %v4070_v14, %v4224_v57 }
 0x592   :  { %v3101_v37 = vpop.eup %3100  ;;  %3106 = vrsqrt.f32 %v1671_v0  ;;  %v1624_v39 = vsub.f32 %v1592_v29, %v1608_v1  ;;  %v1593_v13 = vmul.f32 0.015625, %v1569_v20 }
 0x593   :  { %v1492_v44 = vpop.xlane.xlu0 %1491  ;;  %v1744_v42 = vpack.c.bf16 %v4259_v8, %v4256_v12  ;;  %v1700_v31 = vmul.f32 %v3101_v37, %v1652_v58 }
 0x594   :  { %v3103_v45 = vpop.eup %3102  ;;  %v1640_v50 = vmax.f32 %v1624_v39, 0.0  ;;  %v1625_v21 = vsub.f32 %v1593_v13, %v1609_v54  ;;  %v4267_v32 = vmul.f32 0.015625, %v1492_v44 }
 0x595   :  { %v1495_v30 = vpop.xlane.xlu1 %1494  ;;  %2675 = vmatmul.mubr.msk.bf16.gmra.mrb[56].mxu0 %vm214_vm1, %v1744_v42  ;;  %v1701_v24 = vmul.f32 %v3103_v45, %v1653_v4  ;;  %v1716_v60 = vmul.f32 %v1700_v31, %v4187_v25  ;;  %v1656_v42 = vsub.f32 %v4081_v15, %v4243_v3 }
 0x596   :  { %v1672_v18 = vadd.f32 1e-05, %v1640_v50  ;;  %v1641_v41 = vmax.f32 %v1625_v21, 0.0  ;;  %1898 = vmatprep.mubr.bf16.mxu0 %v3176_v27  ;;  %v4272_v38 = vmul.f32 0.015625, %v1495_v30  ;;  %v1610_v46 = vmul.f32 %v4267_v32, %v4267_v32 }
 0x597   :  { %v1572_v2 = vpop.xlane.xlu0 %1571  ;;  %v1717_v62 = vmul.f32 %v1701_v24, %v4187_v25  ;;  %v4280_v22 = vadd.f32 %v1716_v60, %v4198_v16 }
 0x598   :  { %3108 = vrsqrt.f32 %v1672_v18  ;;  %v1673_v52 = vadd.f32 1e-05, %v1641_v41  ;;  %v1594_v43 = vmul.f32 0.015625, %v1572_v2  ;;  %v1611_v55 = vmul.f32 %v4272_v38, %v4272_v38 }
 0x599   :  { %v1575_v7 = vpop.xlane.xlu1 %1574  ;;  %v4283_v19 = vadd.f32 %v1717_v62, %v4198_v16  ;;  %v1657_v18 = vsub.f32 %v4085_v5, %v4248_v26  ;;  %v1658_v26 = vsub.f32 %v4104_v36, %v4267_v32 }
 0x59a   :  { %v3105_v51 = vpop.eup %3104  ;;  %3110 = vrsqrt.f32 %v1673_v52  ;;  %v1626_v11 = vsub.f32 %v1594_v43, %v1610_v46  ;;  %v1595_v23 = vmul.f32 0.015625, %v1575_v7 }
 0x59b   :  { %v1498_v35 = vpop.xlane.xlu0 %1497  ;;  %v1745_v59 = vpack.c.bf16 %v4283_v19, %v4280_v22  ;;  %v1702_v47 = vmul.f32 %v3105_v51, %v1654_v17 }
 0x59c   :  { %v3107_v48 = vpop.eup %3106  ;;  %v1642_v63 = vmax.f32 %v1626_v11, 0.0  ;;  %v1627_v0 = vsub.f32 %v1595_v23, %v1611_v55  ;;  %v1516_v1 = vmul.f32 0.015625, %v1498_v35  ;;  %v1659_v23 = vsub.f32 %v4108_v6, %v4272_v38 }
 0x59d   :  { %v1501_v29 = vpop.xlane.xlu1 %1500  ;;  %2676 = vmatmul.mubr.msk.bf16.gmra.mrb[60].mxu0 %vm214_vm1, %v1745_v59  ;;  %v1703_v58 = vmul.f32 %v3107_v48, %v1655_v61  ;;  %v1718_v20 = vmul.f32 %v1702_v47, %v4187_v25 }
 0x59e   :  { %v1674_v37 = vadd.f32 1e-05, %v1642_v63  ;;  %v1643_v54 = vmax.f32 %v1627_v0, 0.0  ;;  %1908 = vmatprep.mubr.bf16.mxu0 %v3176_v27  ;;  %v1517_v14 = vmul.f32 0.015625, %v1501_v29  ;;  %v1612_v4 = vmul.f32 %v1516_v1, %v1516_v1 }
 0x59f   :  { %v1578_v57 = vpop.xlane.xlu0 %1577  ;;  %v1719_v39 = vmul.f32 %v1703_v58, %v4187_v25  ;;  %v4298_v45 = vadd.f32 %v1718_v20, %v4198_v16  ;;  %v1660_v48 = vsub.f32 %v4119_v33, %v1516_v1 }
 0x5a0   :  { %3112 = vrsqrt.f32 %v1674_v37  ;;  %v1675_v13 = vadd.f32 1e-05, %v1643_v54  ;;  %v1596_v44 = vmul.f32 0.015625, %v1578_v57  ;;  %v1613_v30 = vmul.f32 %v1517_v14, %v1517_v14 }
 0x5a1   :  { %v1581_v31 = vpop.xlane.xlu1 %1580  ;;  %v4301_v50 = vadd.f32 %v1719_v39, %v4198_v16  ;;  %v1661_v0 = vsub.f32 %v4123_v53, %v1517_v14  ;;  %v3019_v14 = vld [vmem:[%s4673_s4 + $0xa8] sm:$0xff]   ;;  %v3023_v39 = vld [vmem:[%s4673_s4 + $0xb8] sm:$0xff]  }
 0x5a2   :  { %v3109_v21 = vpop.eup %3108  ;;  %3114 = vrsqrt.f32 %v1675_v13  ;;  %v1628_v24 = vsub.f32 %v1596_v44, %v1612_v4  ;;  %v1597_v60 = vmul.f32 0.015625, %v1581_v31  ;;  %2826 = vmatpush3.bf16.msra.mxu1 %v3019_v14  ;;  %v2664_v13 = vld [vmem:[%s4674_s5 + $0x15] ss:$8 sm:$0x3] }
 0x5a3   :  { %v1746_v41 = vpack.c.bf16 %v4301_v50, %v4298_v45  ;;  %v1704_v2 = vmul.f32 %v3109_v21, %v1656_v42  ;;  %v4370_v4 = vrot.slane %v2664_v13, %v525_v10  ;;  %v4374_v44 = vrot.slane %v2664_v13, %v529_v34 }
 0x5a4   :  { %v3111_v15 = vpop.eup %3110  ;;  %v1644_v3 = vmax.f32 %v1628_v24, 0.0  ;;  %v1629_v62 = vsub.f32 %v1597_v60, %v1613_v30 }
 0x5a5   :  { %2677 = vmatmul.mubr.msk.bf16.gmra.mrb[64].mxu0 %vm214_vm1, %v1746_v41  ;;  %v1705_v52 = vmul.f32 %v3111_v15, %v1657_v18  ;;  %v1720_v46 = vmul.f32 %v1704_v2, %v4187_v25 }
 0x5a6   :  { %v1676_v43 = vadd.f32 1e-05, %v1644_v3  ;;  %v1645_v17 = vmax.f32 %v1629_v62, 0.0  ;;  %1918 = vmatprep.mubr.bf16.mxu0 %v3176_v27 }
 0x5a7   :  { %v1721_v7 = vmul.f32 %v1705_v52, %v4187_v25  ;;  %v4314_v51 = vadd.f32 %v1720_v46, %v4198_v16 }
 0x5a8   :  { %3116 = vrsqrt.f32 %v1676_v43  ;;  %v1677_v5 = vadd.f32 1e-05, %v1645_v17 }
 0x5a9   :  { %v4317_v55 = vadd.f32 %v1721_v7, %v4198_v16 }
 0x5aa   :  { %v3113_v11 = vpop.eup %3112  ;;  %3118 = vrsqrt.f32 %v1677_v5 }
 0x5ab   :  { %v1747_v61 = vpack.c.bf16 %v4317_v55, %v4314_v51  ;;  %v1706_v35 = vmul.f32 %v3113_v11, %v1658_v26 }
 0x5ac   :  { %v3115_v59 = vpop.eup %3114 }
 0x5ad   :  { %2678 = vmatmul.mubr.msk.bf16.gmra.mrb[68].mxu0 %vm214_vm1, %v1747_v61  ;;  %v1707_v47 = vmul.f32 %v3115_v59, %v1659_v23  ;;  %v1722_v36 = vmul.f32 %v1706_v35, %v4187_v25 }
 0x5ae   :  { %1928 = vmatprep.mubr.bf16.mxu0 %v3176_v27 }
 0x5af   :  { %v1723_v32 = vmul.f32 %v1707_v47, %v4187_v25  ;;  %v4329_v63 = vadd.f32 %v1722_v36, %v4198_v16 }
 0x5b1   :  { %v4332_v6 = vadd.f32 %v1723_v32, %v4198_v16 }
 0x5b2   :  { %v3117_v38 = vpop.eup %3116 }
 0x5b3   :  { %v1748_v29 = vpack.c.bf16 %v4332_v6, %v4329_v63  ;;  %v1708_v58 = vmul.f32 %v3117_v38, %v1660_v48 }
 0x5b4   :  { %v3119_v20 = vpop.eup %3118 }
 0x5b5   :  { %2679 = vmatmul.mubr.msk.bf16.gmra.mrb[72].mxu0 %vm214_vm1, %v1748_v29  ;;  %v1709_v37 = vmul.f32 %v3119_v20, %v1661_v0  ;;  %v1724_v54 = vmul.f32 %v1708_v58, %v4187_v25 }
 0x5b6   :  { %1938 = vmatprep.mubr.bf16.mxu0 %v3176_v27  ;;  %v3020_v27 = vld [vmem:[%s4673_s4 + $0xf0] sm:$0xff]  }
 0x5b7   :  { %v1725_v33 = vmul.f32 %v1709_v37, %v4187_v25  ;;  %v4342_v1 = vadd.f32 %v1724_v54, %v4198_v16  ;;  %v3021_v25 = vld [vmem:[%s4673_s4 + $0xb0] sm:$0xff]   ;;  %2827 = vmatprep.subr.bf16.mxu1 %v3020_v27 }
 0x5b8   :  { %2828 = vmatpush3.bf16.msra.mxu1 %v3021_v25 }
 0x5b9   :  { %v4345_v57 = vadd.f32 %v1725_v33, %v4198_v16  ;;  %v3022_v16 = vld [vmem:[%s4673_s4 + $0xf8] sm:$0xff]  }
 0x5ba   :  { %2829 = vmatprep.subr.bf16.mxu1 %v3022_v16 }
 0x5bb   :  { %v1749_v53 = vpack.c.bf16 %v4345_v57, %v4342_v1 }
 0x5bc   :  { %2830 = vmatpush3.bf16.msra.mxu1 %v3023_v39 }
 0x5bd   :  { %2680 = vmatmul.mubr.msk.bf16.gmra.mrb[76].mxu0 %vm214_vm1, %v1749_v53 }
 0x658   :  { %v1870_v42 = vpop.f32.mrb[48].mxu0 }
 0x659   :  { %v1871_v31 = vadd.f32 %v1870_v42, %v4370_v4  ;;  %v1872_v21 = vpop.f32.mrb[49].mxu0 }
 0x65a   :  { %v1873_v30 = vadd.f32 %v1872_v21, %v4374_v44  ;;  %v1874_v24 = vpop.f32.mrb[50].mxu0 }
 0x65b   :  { %v1875_v60 = vadd.f32 %v1874_v24, %v4370_v4  ;;  %v1876_v18 = vpop.f32.mrb[51].mxu0  ;;  %v1949_v2 = vmax.f32 %v1871_v31, 0.0 }
 0x65c   :  { %v1877_v41 = vadd.f32 %v1876_v18, %v4374_v44  ;;  %v1950_v10 = vmax.f32 %v1873_v30, 0.0 }
 0x65d   :  { %v1951_v15 = vmax.f32 %v1875_v60, 0.0 }
 0x65e   :  { %v1952_v3 = vmax.f32 %v1877_v41, 0.0 }
 0x65f   :  { %v1981_v62 = vpack.c.bf16 %v1951_v15, %v1949_v2 }
 0x660   :  { %v1982_v28 = vpack.c.bf16 %v1952_v3, %v1950_v10  ;;  %v1880_v34 = vpop.f32.mrb[52].mxu0 }
 0x661   :  { %v1881_v52 = vadd.f32 %v1880_v34, %v4370_v4  ;;  %v1882_v46 = vpop.f32.mrb[53].mxu0 }
 0x662   :  { %v1883_v43 = vadd.f32 %v1882_v46, %v4374_v44  ;;  %v1884_v17 = vpop.f32.mrb[54].mxu0  ;;  %2159 = vmatprep.mubr.bf16.mxu1 %v1982_v28 }
 0x663   :  { %v1885_v7 = vadd.f32 %v1884_v17, %v4370_v4  ;;  %v1886_v5 = vpop.f32.mrb[55].mxu0  ;;  %2160 = vmatmul.mubr.bf16.vlgmr.msra.gmra.mrb[48].mxu1 %v1981_v62  ;;  %v1953_v11 = vmax.f32 %v1881_v52, 0.0 }
 0x664   :  { %v1887_v26 = vadd.f32 %v1886_v5, %v4374_v44  ;;  %v1954_v61 = vmax.f32 %v1883_v43, 0.0 }
 0x665   :  { %v1955_v23 = vmax.f32 %v1885_v7, 0.0 }
 0x666   :  { %v1956_v35 = vmax.f32 %v1887_v26, 0.0 }
 0x667   :  { %v1983_v59 = vpack.c.bf16 %v1955_v23, %v1953_v11 }
 0x668   :  { %v1984_v47 = vpack.c.bf16 %v1956_v35, %v1954_v61  ;;  %v1890_v36 = vpop.f32.mrb[56].mxu0 }
 0x669   :  { %v1891_v32 = vadd.f32 %v1890_v36, %v4370_v4  ;;  %v1892_v48 = vpop.f32.mrb[57].mxu0 }
 0x66a   :  { %v1893_v38 = vadd.f32 %v1892_v48, %v4374_v44  ;;  %v1894_v0 = vpop.f32.mrb[58].mxu0  ;;  %2167 = vmatprep.mubr.bf16.mxu1 %v1984_v47 }
 0x66b   :  { %v1895_v29 = vadd.f32 %v1894_v0, %v4370_v4  ;;  %v1896_v58 = vpop.f32.mrb[59].mxu0  ;;  %2168 = vmatmul.mubr.bf16.gmra.mrb[52].mxu1 %v1983_v59  ;;  %v1957_v37 = vmax.f32 %v1891_v32, 0.0 }
 0x66c   :  { %v1897_v20 = vadd.f32 %v1896_v58, %v4374_v44  ;;  %v1958_v33 = vmax.f32 %v1893_v38, 0.0 }
 0x66d   :  { %v1959_v54 = vmax.f32 %v1895_v29, 0.0 }
 0x66e   :  { %v1960_v53 = vmax.f32 %v1897_v20, 0.0 }
 0x66f   :  { %v1985_v14 = vpack.c.bf16 %v1959_v54, %v1957_v37 }
 0x670   :  { %v1986_v27 = vpack.c.bf16 %v1960_v53, %v1958_v33  ;;  %v1900_v25 = vpop.f32.mrb[60].mxu0 }
 0x671   :  { %v1901_v16 = vadd.f32 %v1900_v25, %v4370_v4  ;;  %v1902_v39 = vpop.f32.mrb[61].mxu0 }
 0x672   :  { %v1903_v13 = vadd.f32 %v1902_v39, %v4374_v44  ;;  %v1904_v42 = vpop.f32.mrb[62].mxu0  ;;  %2175 = vmatprep.mubr.bf16.mxu1 %v1986_v27 }
 0x673   :  { %v1905_v31 = vadd.f32 %v1904_v42, %v4370_v4  ;;  %v1906_v21 = vpop.f32.mrb[63].mxu0  ;;  %2176 = vmatmul.mubr.bf16.gmra.mrb[56].mxu1 %v1985_v14  ;;  %v1961_v24 = vmax.f32 %v1901_v16, 0.0 }
 0x674   :  { %v1907_v30 = vadd.f32 %v1906_v21, %v4374_v44  ;;  %v1962_v18 = vmax.f32 %v1903_v13, 0.0 }
 0x675   :  { %v1963_v60 = vmax.f32 %v1905_v31, 0.0 }
 0x676   :  { %v1964_v41 = vmax.f32 %v1907_v30, 0.0 }
 0x677   :  { %v1987_v2 = vpack.c.bf16 %v1963_v60, %v1961_v24 }
 0x678   :  { %v1988_v15 = vpack.c.bf16 %v1964_v41, %v1962_v18  ;;  %v1910_v10 = vpop.f32.mrb[64].mxu0 }
 0x679   :  { %v1911_v3 = vadd.f32 %v1910_v10, %v4370_v4  ;;  %v1912_v62 = vpop.f32.mrb[65].mxu0 }
 0x67a   :  { %v1913_v28 = vadd.f32 %v1912_v62, %v4374_v44  ;;  %v1914_v34 = vpop.f32.mrb[66].mxu0  ;;  %2183 = vmatprep.mubr.bf16.mxu1 %v1988_v15 }
 0x67b   :  { %v1915_v52 = vadd.f32 %v1914_v34, %v4370_v4  ;;  %v1916_v46 = vpop.f32.mrb[67].mxu0  ;;  %2184 = vmatmul.mubr.bf16.gmra.mrb[60].mxu1 %v1987_v2  ;;  %v1965_v17 = vmax.f32 %v1911_v3, 0.0 }
 0x67c   :  { %v1917_v43 = vadd.f32 %v1916_v46, %v4374_v44  ;;  %v1966_v5 = vmax.f32 %v1913_v28, 0.0 }
 0x67d   :  { %v1967_v7 = vmax.f32 %v1915_v52, 0.0 }
 0x67e   :  { %v1968_v26 = vmax.f32 %v1917_v43, 0.0 }
 0x67f   :  { %v1989_v11 = vpack.c.bf16 %v1967_v7, %v1965_v17 }
 0x680   :  { %v1990_v23 = vpack.c.bf16 %v1968_v26, %v1966_v5  ;;  %v1920_v61 = vpop.f32.mrb[68].mxu0  ;;  %v4411_v26 = vld [vmem:[%s4674_s5 + $0x16] ss:$0 sm:$0xff] }
 0x681   :  { %v1921_v35 = vadd.f32 %v1920_v61, %v4370_v4  ;;  %v1922_v59 = vpop.f32.mrb[69].mxu0 }
 0x682   :  { %v1923_v47 = vadd.f32 %v1922_v59, %v4374_v44  ;;  %v1924_v36 = vpop.f32.mrb[70].mxu0  ;;  %2191 = vmatprep.mubr.bf16.mxu1 %v1990_v23 }
 0x683   :  { %v1925_v32 = vadd.f32 %v1924_v36, %v4370_v4  ;;  %v1926_v48 = vpop.f32.mrb[71].mxu0  ;;  %2192 = vmatmul.mubr.bf16.gmra.mrb[64].mxu1 %v1989_v11  ;;  %v1969_v0 = vmax.f32 %v1921_v35, 0.0 }
 0x684   :  { %v1927_v38 = vadd.f32 %v1926_v48, %v4374_v44  ;;  %v1970_v58 = vmax.f32 %v1923_v47, 0.0 }
 0x685   :  { %v1971_v29 = vmax.f32 %v1925_v32, 0.0 }
 0x686   :  { %v1972_v20 = vmax.f32 %v1927_v38, 0.0 }
 0x687   :  { %v1991_v37 = vpack.c.bf16 %v1971_v29, %v1969_v0 }
 0x688   :  { %v1992_v54 = vpack.c.bf16 %v1972_v20, %v1970_v58  ;;  %v1930_v33 = vpop.f32.mrb[72].mxu0 }
 0x689   :  { %v1931_v53 = vadd.f32 %v1930_v33, %v4370_v4  ;;  %v1932_v14 = vpop.f32.mrb[73].mxu0 }
 0x68a   :  { %v1933_v27 = vadd.f32 %v1932_v14, %v4374_v44  ;;  %v1934_v25 = vpop.f32.mrb[74].mxu0  ;;  %2199 = vmatprep.mubr.bf16.mxu1 %v1992_v54 }
 0x68b   :  { %v1935_v16 = vadd.f32 %v1934_v25, %v4370_v4  ;;  %v1936_v39 = vpop.f32.mrb[75].mxu0  ;;  %2200 = vmatmul.mubr.bf16.gmra.mrb[68].mxu1 %v1991_v37  ;;  %v1973_v42 = vmax.f32 %v1931_v53, 0.0 }
 0x68c   :  { %v1937_v13 = vadd.f32 %v1936_v39, %v4374_v44  ;;  %v1974_v21 = vmax.f32 %v1933_v27, 0.0 }
 0x68d   :  { %v1975_v31 = vmax.f32 %v1935_v16, 0.0 }
 0x68e   :  { %v1976_v30 = vmax.f32 %v1937_v13, 0.0 }
 0x68f   :  { %v1993_v24 = vpack.c.bf16 %v1975_v31, %v1973_v42 }
 0x690   :  { %v1994_v60 = vpack.c.bf16 %v1976_v30, %v1974_v21  ;;  %v1940_v18 = vpop.f32.mrb[76].mxu0 }
 0x691   :  { %v1941_v41 = vadd.f32 %v1940_v18, %v4370_v4  ;;  %v1942_v2 = vpop.f32.mrb[77].mxu0 }
 0x692   :  { %v1943_v15 = vadd.f32 %v1942_v2, %v4374_v44  ;;  %v1944_v10 = vpop.f32.mrb[78].mxu0  ;;  %2207 = vmatprep.mubr.bf16.mxu1 %v1994_v60 }
 0x693   :  { %v1945_v3 = vadd.f32 %v1944_v10, %v4370_v4  ;;  %v1946_v62 = vpop.f32.mrb[79].mxu0  ;;  %2208 = vmatmul.mubr.bf16.gmra.mrb[72].mxu1 %v1993_v24  ;;  %v1977_v34 = vmax.f32 %v1941_v41, 0.0 }
 0x694   :  { %v1947_v28 = vadd.f32 %v1946_v62, %v4374_v44  ;;  %v1978_v46 = vmax.f32 %v1943_v15, 0.0 }
 0x695   :  { %v1979_v52 = vmax.f32 %v1945_v3, 0.0 }
 0x696   :  { %v1980_v43 = vmax.f32 %v1947_v28, 0.0 }
 0x697   :  { %v1995_v17 = vpack.c.bf16 %v1979_v52, %v1977_v34 }
 0x698   :  { %v1996_v7 = vpack.c.bf16 %v1980_v43, %v1978_v46 }
 0x69a   :  { %2215 = vmatprep.mubr.bf16.mxu1 %v1996_v7 }
 0x69b   :  { %2216 = vmatmul.mubr.bf16.gmra.mrb[76].mxu1 %v1995_v17 }
 0x736   :  { %v2831_v5 = vpop.f32.mrb[48].mxu1 }
 0x737   :  { %v2832_v11 = vpop.f32.mrb[49].mxu1 }
 0x738   :  { %v2833_v4 = vadd.f32 %v2832_v11, %v2831_v5  ;;  %v2834_v23 = vpop.f32.mrb[50].mxu1 }
 0x739   :  { %v2835_v61 = vpop.f32.mrb[51].mxu1 }
 0x73a   :  { %v2162_v44 = vadd.f32 %v2833_v4, %v4411_v26  ;;  %v2836_v35 = vadd.f32 %v2835_v61, %v2834_v23 }
 0x73c   :  { %v4415_v59 = vadd.f32 %v2162_v44, %v4206_v9  ;;  %v2165_v47 = vadd.f32 %v2836_v35, %v4411_v26 }
 0x73e   :  { %v4419_v36 = vadd.f32 %v2165_v47, %v4209_v40  ;;  %v2837_v32 = vpop.f32.mrb[52].mxu1  ;;  %v2240_v48 = vsel %vm214_vm1, %v4415_v59, 0.0  ;;  %v2304_v38 = vmul.f32 %v4415_v59, %v4415_v59 }
 0x73f   :  { %2241 = vadd.xlane.f32.xlu0 %v2240_v48  ;;  %v2838_v0 = vpop.f32.mrb[53].mxu1 }
 0x740   :  { %v2839_v29 = vadd.f32 %v2838_v0, %v2837_v32  ;;  %v2840_v58 = vpop.f32.mrb[54].mxu1  ;;  %v2243_v9 = vsel %vm214_vm1, %v4419_v36, 0.0  ;;  %v2305_v20 = vmul.f32 %v4419_v36, %v4419_v36  ;;  %v2320_v33 = vsel %vm214_vm1, %v2304_v38, 0.0 }
 0x741   :  { %2244 = vadd.xlane.f32.xlu1 %v2243_v9  ;;  %v2841_v40 = vpop.f32.mrb[55].mxu1 }
 0x742   :  { %v2170_v37 = vadd.f32 %v2839_v29, %v4411_v26  ;;  %v2842_v54 = vadd.f32 %v2841_v40, %v2840_v58  ;;  %v2323_v27 = vsel %vm214_vm1, %v2305_v20, 0.0 }
 0x743   :  { %2321 = vadd.xlane.f32.xlu0 %v2320_v33 }
 0x744   :  { %v4432_v53 = vadd.f32 %v2170_v37, %v4232_v49  ;;  %v2173_v14 = vadd.f32 %v2842_v54, %v4411_v26 }
 0x745   :  { %2324 = vadd.xlane.f32.xlu1 %v2323_v27 }
 0x746   :  { %v4437_v25 = vadd.f32 %v2173_v14, %v4235_v56  ;;  %v2843_v16 = vpop.f32.mrb[56].mxu1  ;;  %v2246_v39 = vsel %vm214_vm1, %v4432_v53, 0.0  ;;  %v2306_v13 = vmul.f32 %v4432_v53, %v4432_v53 }
 0x747   :  { %2247 = vadd.xlane.f32.xlu0 %v2246_v39  ;;  %v2844_v42 = vpop.f32.mrb[57].mxu1 }
 0x748   :  { %v2845_v31 = vadd.f32 %v2844_v42, %v2843_v16  ;;  %v2846_v49 = vpop.f32.mrb[58].mxu1  ;;  %v2249_v21 = vsel %vm214_vm1, %v4437_v25, 0.0  ;;  %v2307_v30 = vmul.f32 %v4437_v25, %v4437_v25  ;;  %v2326_v18 = vsel %vm214_vm1, %v2306_v13, 0.0 }
 0x749   :  { %2250 = vadd.xlane.f32.xlu1 %v2249_v21  ;;  %v2847_v56 = vpop.f32.mrb[59].mxu1 }
 0x74a   :  { %v2178_v24 = vadd.f32 %v2845_v31, %v4411_v26  ;;  %v2848_v60 = vadd.f32 %v2847_v56, %v2846_v49  ;;  %v2329_v15 = vsel %vm214_vm1, %v2307_v30, 0.0 }
 0x74b   :  { %2327 = vadd.xlane.f32.xlu0 %v2326_v18 }
 0x74c   :  { %v4450_v41 = vadd.f32 %v2178_v24, %v4256_v12  ;;  %v2181_v2 = vadd.f32 %v2848_v60, %v4411_v26 }
 0x74d   :  { %2330 = vadd.xlane.f32.xlu1 %v2329_v15 }
 0x74e   :  { %v4455_v10 = vadd.f32 %v2181_v2, %v4259_v8  ;;  %v2849_v3 = vpop.f32.mrb[60].mxu1  ;;  %v2252_v62 = vsel %vm214_vm1, %v4450_v41, 0.0  ;;  %v2308_v28 = vmul.f32 %v4450_v41, %v4450_v41 }
 0x74f   :  { %2253 = vadd.xlane.f32.xlu0 %v2252_v62  ;;  %v2850_v34 = vpop.f32.mrb[61].mxu1 }
 0x750   :  { %v2851_v52 = vadd.f32 %v2850_v34, %v2849_v3  ;;  %v2852_v12 = vpop.f32.mrb[62].mxu1  ;;  %v2255_v46 = vsel %vm214_vm1, %v4455_v10, 0.0  ;;  %v2309_v43 = vmul.f32 %v4455_v10, %v4455_v10  ;;  %v2332_v5 = vsel %vm214_vm1, %v2308_v28, 0.0 }
 0x751   :  { %2256 = vadd.xlane.f32.xlu1 %v2255_v46  ;;  %v2853_v8 = vpop.f32.mrb[63].mxu1 }
 0x752   :  { %v2186_v17 = vadd.f32 %v2851_v52, %v4411_v26  ;;  %v2854_v7 = vadd.f32 %v2853_v8, %v2852_v12  ;;  %v2335_v23 = vsel %vm214_vm1, %v2309_v43, 0.0  ;;  %v3177_v43 = vmov 0.0  }
 0x753   :  { %2333 = vadd.xlane.f32.xlu0 %v2332_v5  ;;  %2930 = vmatprep.subr.bf16.mxu0 %v3177_v43 }
 0x754   :  { %v4468_v11 = vadd.f32 %v2186_v17, %v4280_v22  ;;  %v2189_v4 = vadd.f32 %v2854_v7, %v4411_v26  ;;  %2946 = vmatprep.mubr.msk.bf16.mxu0 %vm3178_vm2, %v3177_v43 }
 0x755   :  { %2336 = vadd.xlane.f32.xlu1 %v2335_v23 }
 0x756   :  { %v4473_v61 = vadd.f32 %v2189_v4, %v4283_v19  ;;  %v2855_v44 = vpop.f32.mrb[64].mxu1  ;;  %v2258_v35 = vsel %vm214_vm1, %v4468_v11, 0.0  ;;  %v2310_v47 = vmul.f32 %v4468_v11, %v4468_v11 }
 0x757   :  { %2259 = vadd.xlane.f32.xlu0 %v2258_v35  ;;  %v2856_v32 = vpop.f32.mrb[65].mxu1 }
 0x758   :  { %v2857_v48 = vadd.f32 %v2856_v32, %v2855_v44  ;;  %v2858_v22 = vpop.f32.mrb[66].mxu1  ;;  %v2261_v38 = vsel %vm214_vm1, %v4473_v61, 0.0  ;;  %v2311_v0 = vmul.f32 %v4473_v61, %v4473_v61  ;;  %v2338_v9 = vsel %vm214_vm1, %v2310_v47, 0.0 }
 0x759   :  { %2262 = vadd.xlane.f32.xlu1 %v2261_v38  ;;  %v2859_v19 = vpop.f32.mrb[67].mxu1 }
 0x75a   :  { %v2194_v29 = vadd.f32 %v2857_v48, %v4411_v26  ;;  %v2860_v58 = vadd.f32 %v2859_v19, %v2858_v22  ;;  %v2341_v37 = vsel %vm214_vm1, %v2311_v0, 0.0 }
 0x75b   :  { %2339 = vadd.xlane.f32.xlu0 %v2338_v9 }
 0x75c   :  { %v4486_v20 = vadd.f32 %v2194_v29, %v4298_v45  ;;  %v2197_v40 = vadd.f32 %v2860_v58, %v4411_v26 }
 0x75d   :  { %2342 = vadd.xlane.f32.xlu1 %v2341_v37 }
 0x75e   :  { %v4491_v54 = vadd.f32 %v2197_v40, %v4301_v50  ;;  %v2861_v33 = vpop.f32.mrb[68].mxu1  ;;  %v2264_v14 = vsel %vm214_vm1, %v4486_v20, 0.0  ;;  %v2312_v27 = vmul.f32 %v4486_v20, %v4486_v20 }
 0x75f   :  { %2265 = vadd.xlane.f32.xlu0 %v2264_v14  ;;  %v2862_v16 = vpop.f32.mrb[69].mxu1  ;;  %v2498_v14 = vld [vmem:[%s4674_s5 + $0x2] ss:$0 sm:$0xff] }
 0x760   :  { %v2863_v39 = vadd.f32 %v2862_v16, %v2861_v33  ;;  %v2864_v45 = vpop.f32.mrb[70].mxu1  ;;  %v2267_v13 = vsel %vm214_vm1, %v4491_v54, 0.0  ;;  %v2313_v42 = vmul.f32 %v4491_v54, %v4491_v54  ;;  %v2344_v21 = vsel %vm214_vm1, %v2312_v27, 0.0 }
 0x761   :  { %2268 = vadd.xlane.f32.xlu1 %v2267_v13  ;;  %v2865_v50 = vpop.f32.mrb[71].mxu1 }
 0x762   :  { %v2202_v31 = vadd.f32 %v2863_v39, %v4411_v26  ;;  %v2866_v49 = vadd.f32 %v2865_v50, %v2864_v45  ;;  %v2347_v24 = vsel %vm214_vm1, %v2313_v42, 0.0 }
 0x763   :  { %2345 = vadd.xlane.f32.xlu0 %v2344_v21 }
 0x764   :  { %v4504_v30 = vadd.f32 %v2202_v31, %v4314_v51  ;;  %v2205_v56 = vadd.f32 %v2866_v49, %v4411_v26 }
 0x765   :  { %2348 = vadd.xlane.f32.xlu1 %v2347_v24 }
 0x766   :  { %v4509_v60 = vadd.f32 %v2205_v56, %v4317_v55  ;;  %v2867_v18 = vpop.f32.mrb[72].mxu1  ;;  %v2270_v2 = vsel %vm214_vm1, %v4504_v30, 0.0  ;;  %v2314_v15 = vmul.f32 %v4504_v30, %v4504_v30 }
 0x767   :  { %2271 = vadd.xlane.f32.xlu0 %v2270_v2  ;;  %v2868_v3 = vpop.f32.mrb[73].mxu1 }
 0x768   :  { %v2869_v62 = vadd.f32 %v2868_v3, %v2867_v18  ;;  %v2870_v51 = vpop.f32.mrb[74].mxu1  ;;  %v2273_v28 = vsel %vm214_vm1, %v4509_v60, 0.0  ;;  %v2315_v34 = vmul.f32 %v4509_v60, %v4509_v60  ;;  %v2350_v46 = vsel %vm214_vm1, %v2314_v15, 0.0 }
 0x769   :  { %2274 = vadd.xlane.f32.xlu1 %v2273_v28  ;;  %v2871_v55 = vpop.f32.mrb[75].mxu1 }
 0x76a   :  { %v2210_v52 = vadd.f32 %v2869_v62, %v4411_v26  ;;  %v2872_v12 = vadd.f32 %v2871_v55, %v2870_v51  ;;  %v2353_v7 = vsel %vm214_vm1, %v2315_v34, 0.0 }
 0x76b   :  { %2351 = vadd.xlane.f32.xlu0 %v2350_v46 }
 0x76c   :  { %v4523_v8 = vadd.f32 %v2210_v52, %v4329_v63  ;;  %v2213_v17 = vadd.f32 %v2872_v12, %v4411_v26 }
 0x76d   :  { %2354 = vadd.xlane.f32.xlu1 %v2353_v7 }
 0x76e   :  { %v4528_v5 = vadd.f32 %v2213_v17, %v4332_v6  ;;  %v2873_v4 = vpop.f32.mrb[76].mxu1  ;;  %v2276_v23 = vsel %vm214_vm1, %v4523_v8, 0.0  ;;  %v2316_v44 = vmul.f32 %v4523_v8, %v4523_v8 }
 0x76f   :  { %2277 = vadd.xlane.f32.xlu0 %v2276_v23  ;;  %v2874_v35 = vpop.f32.mrb[77].mxu1 }
 0x770   :  { %v2875_v47 = vadd.f32 %v2874_v35, %v2873_v4  ;;  %v2876_v63 = vpop.f32.mrb[78].mxu1  ;;  %v2279_v32 = vsel %vm214_vm1, %v4528_v5, 0.0  ;;  %v2317_v48 = vmul.f32 %v4528_v5, %v4528_v5  ;;  %v2356_v0 = vsel %vm214_vm1, %v2316_v44, 0.0 }
 0x771   :  { %2280 = vadd.xlane.f32.xlu1 %v2279_v32  ;;  %v2877_v6 = vpop.f32.mrb[79].mxu1 }
 0x772   :  { %v2218_v22 = vadd.f32 %v2875_v47, %v4411_v26  ;;  %v2878_v38 = vadd.f32 %v2877_v6, %v2876_v63  ;;  %v2359_v58 = vsel %vm214_vm1, %v2317_v48, 0.0 }
 0x773   :  { %2357 = vadd.xlane.f32.xlu0 %v2356_v0 }
 0x774   :  { %v4541_v19 = vadd.f32 %v2218_v22, %v4342_v1  ;;  %v2221_v29 = vadd.f32 %v2878_v38, %v4411_v26 }
 0x775   :  { %2360 = vadd.xlane.f32.xlu1 %v2359_v58 }
 0x776   :  { %v4546_v9 = vadd.f32 %v2221_v29, %v4345_v57  ;;  %v2282_v40 = vsel %vm214_vm1, %v4541_v19, 0.0  ;;  %v2318_v37 = vmul.f32 %v4541_v19, %v4541_v19 }
 0x777   :  { %2283 = vadd.xlane.f32.xlu0 %v2282_v40 }
 0x778   :  { %v2285_v33 = vsel %vm214_vm1, %v4546_v9, 0.0  ;;  %v2319_v1 = vmul.f32 %v4546_v9, %v4546_v9  ;;  %v2362_v26 = vsel %vm214_vm1, %v2318_v37, 0.0 }
 0x779   :  { %2286 = vadd.xlane.f32.xlu1 %v2285_v33 }
 0x77a   :  { %v2365_v57 = vsel %vm214_vm1, %v2319_v1, 0.0 }
 0x77b   :  { %2363 = vadd.xlane.f32.xlu0 %v2362_v26 }
 0x77d   :  { %2366 = vadd.xlane.f32.xlu1 %v2365_v57 }
 0x791   :  { %2509 = vperm.xlu0 %2954, %v2498_v14  }
 0x7cc   :  { %v2242_v27 = vpop.xlane.xlu0 %2241 }
 0x7cd   :  { %v2288_v16 = vmul.f32 0.015625, %v2242_v27 }
 0x7ce   :  { %v2245_v39 = vpop.xlane.xlu1 %2244 }
 0x7cf   :  { %v2289_v45 = vmul.f32 0.015625, %v2245_v39  ;;  %v2384_v42 = vmul.f32 %v2288_v16, %v2288_v16  ;;  %v2432_v26 = vsub.f32 %v4415_v59, %v2288_v16 }
 0x7d0   :  { %v2322_v13 = vpop.xlane.xlu0 %2321 }
 0x7d1   :  { %v2368_v50 = vmul.f32 0.015625, %v2322_v13  ;;  %v2385_v49 = vmul.f32 %v2289_v45, %v2289_v45  ;;  %v2433_v57 = vsub.f32 %v4419_v36, %v2289_v45 }
 0x7d2   :  { %v2325_v31 = vpop.xlane.xlu1 %2324 }
 0x7d3   :  { %v2400_v21 = vsub.f32 %v2368_v50, %v2384_v42  ;;  %v2369_v56 = vmul.f32 0.015625, %v2325_v31 }
 0x7d4   :  { %v2248_v24 = vpop.xlane.xlu0 %2247 }
 0x7d5   :  { %v2416_v18 = vmax.f32 %v2400_v21, 0.0  ;;  %v2401_v2 = vsub.f32 %v2369_v56, %v2385_v49  ;;  %v4562_v15 = vmul.f32 0.015625, %v2248_v24 }
 0x7d6   :  { %v2251_v3 = vpop.xlane.xlu1 %2250 }
 0x7d7   :  { %v2448_v62 = vadd.f32 1e-05, %v2416_v18  ;;  %v2417_v51 = vmax.f32 %v2401_v2, 0.0  ;;  %v4564_v28 = vmul.f32 0.015625, %v2251_v3  ;;  %v2386_v52 = vmul.f32 %v4562_v15, %v4562_v15 }
 0x7d8   :  { %v2328_v34 = vpop.xlane.xlu0 %2327 }
 0x7d9   :  { %3120 = vrsqrt.f32 %v2448_v62  ;;  %v2449_v55 = vadd.f32 1e-05, %v2417_v51  ;;  %v2370_v12 = vmul.f32 0.015625, %v2328_v34  ;;  %v2387_v17 = vmul.f32 %v4564_v28, %v4564_v28 }
 0x7da   :  { %v2331_v46 = vpop.xlane.xlu1 %2330 }
 0x7db   :  { %3122 = vrsqrt.f32 %v2449_v55  ;;  %v2402_v7 = vsub.f32 %v2370_v12, %v2386_v52  ;;  %v2371_v4 = vmul.f32 0.015625, %v2331_v46  ;;  %v2434_v52 = vsub.f32 %v4432_v53, %v4562_v15 }
 0x7dc   :  { %v2254_v23 = vpop.xlane.xlu0 %2253  ;;  %v2435_v12 = vsub.f32 %v4437_v25, %v4564_v28 }
 0x7dd   :  { %v2418_v44 = vmax.f32 %v2402_v7, 0.0  ;;  %v2403_v35 = vsub.f32 %v2371_v4, %v2387_v17  ;;  %v4570_v47 = vmul.f32 0.015625, %v2254_v23 }
 0x7de   :  { %v2257_v63 = vpop.xlane.xlu1 %2256 }
 0x7df   :  { %v2450_v32 = vadd.f32 1e-05, %v2418_v44  ;;  %v2419_v48 = vmax.f32 %v2403_v35, 0.0  ;;  %v4572_v6 = vmul.f32 0.015625, %v2257_v63  ;;  %v2388_v0 = vmul.f32 %v4570_v47, %v4570_v47 }
 0x7e0   :  { %v2334_v22 = vpop.xlane.xlu0 %2333 }
 0x7e1   :  { %3124 = vrsqrt.f32 %v2450_v32  ;;  %v2451_v38 = vadd.f32 1e-05, %v2419_v48  ;;  %v2372_v29 = vmul.f32 0.015625, %v2334_v22  ;;  %v2389_v37 = vmul.f32 %v4572_v6, %v4572_v6 }
 0x7e2   :  { %v2337_v58 = vpop.xlane.xlu1 %2336 }
 0x7e3   :  { %v3121_v40 = vpop.eup %3120  ;;  %3126 = vrsqrt.f32 %v2451_v38  ;;  %v2404_v33 = vsub.f32 %v2372_v29, %v2388_v0  ;;  %v2373_v1 = vmul.f32 0.015625, %v2337_v58 }
 0x7e4   :  { %v2260_v14 = vpop.xlane.xlu0 %2259  ;;  %v2480_v31 = vmul.f32 %v3121_v40, %v2432_v26  ;;  %v2437_v26 = vsub.f32 %v4455_v10, %v4572_v6 }
 0x7e5   :  { %v3123_v27 = vpop.eup %3122  ;;  %v2420_v39 = vmax.f32 %v2404_v33, 0.0  ;;  %v2405_v13 = vsub.f32 %v2373_v1, %v2389_v37  ;;  %v4580_v42 = vmul.f32 0.015625, %v2260_v14  ;;  %v2436_v1 = vsub.f32 %v4450_v41, %v4570_v47 }
 0x7e6   :  { %v2263_v50 = vpop.xlane.xlu1 %2262  ;;  %v2481_v49 = vmul.f32 %v3123_v27, %v2433_v57 }
 0x7e7   :  { %v2452_v21 = vadd.f32 1e-05, %v2420_v39  ;;  %v2421_v56 = vmax.f32 %v2405_v13, 0.0  ;;  %v4582_v24 = vmul.f32 0.015625, %v2263_v50  ;;  %v2390_v59 = vmul.f32 %v4580_v42, %v4580_v42 }
 0x7e8   :  { %v2340_v18 = vpop.xlane.xlu0 %2339  ;;  %v2499_v2 = vpack.c.bf16 %v2481_v49, %v2480_v31 }
 0x7e9   :  { %3128 = vrsqrt.f32 %v2452_v21  ;;  %v2453_v3 = vadd.f32 1e-05, %v2421_v56  ;;  %v2374_v36 = vmul.f32 0.015625, %v2340_v18  ;;  %v2391_v51 = vmul.f32 %v4582_v24, %v4582_v24 }
 0x7ea   :  { %v2343_v16 = vpop.xlane.xlu1 %2342  ;;  %v2516_v45 = vsel %vm214_vm1, %v2499_v2, 0 }
 0x7eb   :  { %v3125_v62 = vpop.eup %3124  ;;  %3130 = vrsqrt.f32 %v2453_v3  ;;  %v2406_v34 = vsub.f32 %v2374_v36, %v2390_v59  ;;  %v2375_v55 = vmul.f32 0.015625, %v2343_v16  ;;  %2931 = vmatpush3.bf16.xpose.msra.mxu0 %v2516_v45 }
 0x7ec   :  { %v2266_v46 = vpop.xlane.xlu0 %2265  ;;  %2932 = vmatprep.subr.bf16.mxu0 %v3177_v43  ;;  %v2482_v35 = vmul.f32 %v3125_v62, %v2434_v52 }
 0x7ed   :  { %v3127_v17 = vpop.eup %3126  ;;  %v2422_v7 = vmax.f32 %v2406_v34, 0.0  ;;  %v2407_v4 = vsub.f32 %v2375_v55, %v2391_v51  ;;  %v4594_v23 = vmul.f32 0.015625, %v2266_v46  ;;  %v2438_v51 = vsub.f32 %v4468_v11, %v4580_v42 }
 0x7ee   :  { %v2269_v44 = vpop.xlane.xlu1 %2268  ;;  %v2483_v63 = vmul.f32 %v3127_v17, %v2435_v12  ;;  %v2439_v34 = vsub.f32 %v4473_v61, %v4582_v24 }
 0x7ef   :  { %v2454_v32 = vadd.f32 1e-05, %v2422_v7  ;;  %v2423_v48 = vmax.f32 %v2407_v4, 0.0  ;;  %v4596_v22 = vmul.f32 0.015625, %v2269_v44  ;;  %v2392_v25 = vmul.f32 %v4594_v23, %v4594_v23 }
 0x7f0   :  { %v2346_v38 = vpop.xlane.xlu0 %2345  ;;  %v2500_v53 = vpack.c.bf16 %v2483_v63, %v2482_v35 }
 0x7f1   :  { %3132 = vrsqrt.f32 %v2454_v32  ;;  %v2455_v15 = vadd.f32 1e-05, %v2423_v48  ;;  %v2376_v28 = vmul.f32 0.015625, %v2346_v38  ;;  %v2393_v40 = vmul.f32 %v4596_v22, %v4596_v22 }
 0x7f2   :  { %v2349_v0 = vpop.xlane.xlu1 %2348  ;;  %v2519_v29 = vsel %vm214_vm1, %v2500_v53, 0 }
 0x7f3   :  { %v3129_v58 = vpop.eup %3128  ;;  %3134 = vrsqrt.f32 %v2455_v15  ;;  %v2408_v37 = vsub.f32 %v2376_v28, %v2392_v25  ;;  %v2377_v33 = vmul.f32 0.015625, %v2349_v0  ;;  %2933 = vmatpush3.bf16.xpose.msra.mxu0 %v2519_v29  ;;  %v2440_v29 = vsub.f32 %v4486_v20, %v4594_v23 }
 0x7f4   :  { %v2272_v57 = vpop.xlane.xlu0 %2271  ;;  %2934 = vmatprep.subr.bf16.mxu0 %v3177_v43  ;;  %v2484_v31 = vmul.f32 %v3129_v58, %v2436_v1  ;;  %v2441_v58 = vsub.f32 %v4491_v54, %v4596_v22 }
 0x7f5   :  { %v3131_v14 = vpop.eup %3130  ;;  %v2424_v27 = vmax.f32 %v2408_v37, 0.0  ;;  %v2409_v39 = vsub.f32 %v2377_v33, %v2393_v40  ;;  %v4608_v13 = vmul.f32 0.015625, %v2272_v57 }
 0x7f6   :  { %v2275_v50 = vpop.xlane.xlu1 %2274  ;;  %v2485_v49 = vmul.f32 %v3131_v14, %v2437_v26 }
 0x7f7   :  { %v2456_v21 = vadd.f32 1e-05, %v2424_v27  ;;  %v2425_v56 = vmax.f32 %v2409_v39, 0.0  ;;  %v4610_v18 = vmul.f32 0.015625, %v2275_v50  ;;  %v2394_v10 = vmul.f32 %v4608_v13, %v4608_v13 }
 0x7f8   :  { %v2352_v2 = vpop.xlane.xlu0 %2351  ;;  %v2501_v41 = vpack.c.bf16 %v2485_v49, %v2484_v31 }
 0x7f9   :  { %3136 = vrsqrt.f32 %v2456_v21  ;;  %v2457_v47 = vadd.f32 1e-05, %v2425_v56  ;;  %v2378_v6 = vmul.f32 0.015625, %v2352_v2  ;;  %v2395_v16 = vmul.f32 %v4610_v18, %v4610_v18 }
 0x7fa   :  { %v2355_v3 = vpop.xlane.xlu1 %2354  ;;  %v2522_v59 = vsel %vm214_vm1, %v2501_v41, 0 }
 0x7fb   :  { %v3133_v36 = vpop.eup %3132  ;;  %3138 = vrsqrt.f32 %v2457_v47  ;;  %v2410_v45 = vsub.f32 %v2378_v6, %v2394_v10  ;;  %v2379_v62 = vmul.f32 0.015625, %v2355_v3  ;;  %2935 = vmatpush3.bf16.xpose.msra.mxu0 %v2522_v59  ;;  %v2442_v6 = vsub.f32 %v4504_v30, %v4608_v13 }
 0x7fc   :  { %v2278_v55 = vpop.xlane.xlu0 %2277  ;;  %2936 = vmatprep.subr.bf16.mxu0 %v3177_v43  ;;  %v2486_v4 = vmul.f32 %v3133_v36, %v2438_v51  ;;  %v2443_v3 = vsub.f32 %v4509_v60, %v4610_v18 }
 0x7fd   :  { %v3135_v52 = vpop.eup %3134  ;;  %v2426_v12 = vmax.f32 %v2410_v45, 0.0  ;;  %v2411_v46 = vsub.f32 %v2379_v62, %v2395_v16  ;;  %v4622_v17 = vmul.f32 0.015625, %v2278_v55 }
 0x7fe   :  { %v2281_v7 = vpop.xlane.xlu1 %2280  ;;  %v2487_v44 = vmul.f32 %v3135_v52, %v2439_v34 }
 0x7ff   :  { %v2458_v35 = vadd.f32 1e-05, %v2426_v12  ;;  %v2427_v63 = vmax.f32 %v2411_v46, 0.0  ;;  %v4624_v32 = vmul.f32 0.015625, %v2281_v7  ;;  %v2396_v61 = vmul.f32 %v4622_v17, %v4622_v17 }
 0x800   :  { %v2358_v48 = vpop.xlane.xlu0 %2357  ;;  %v2502_v11 = vpack.c.bf16 %v2487_v44, %v2486_v4  ;;  %v2444_v30 = vsub.f32 %v4523_v8, %v4622_v17 }
 0x801   :  { %3140 = vrsqrt.f32 %v2458_v35  ;;  %v2459_v42 = vadd.f32 1e-05, %v2427_v63  ;;  %v2380_v24 = vmul.f32 0.015625, %v2358_v48  ;;  %v2397_v25 = vmul.f32 %v4624_v32, %v4624_v32 }
 0x802   :  { %v2361_v38 = vpop.xlane.xlu1 %2360  ;;  %v2525_v53 = vsel %vm214_vm1, %v2502_v11, 0  ;;  %v2445_v60 = vsub.f32 %v4528_v5, %v4624_v32 }
 0x803   :  { %v3137_v15 = vpop.eup %3136  ;;  %3142 = vrsqrt.f32 %v2459_v42  ;;  %v2412_v28 = vsub.f32 %v2380_v24, %v2396_v61  ;;  %v2381_v0 = vmul.f32 0.015625, %v2361_v38  ;;  %2937 = vmatpush3.bf16.xpose.msra.mxu0 %v2525_v53  ;;  %v2496_v42 = vld [vmem:[%s4674_s5 + $0x1] ss:$0 sm:$0xff] }
 0x804   :  { %v2284_v40 = vpop.xlane.xlu0 %2283  ;;  %2938 = vmatprep.subr.bf16.mxu0 %v3177_v43  ;;  %v2488_v14 = vmul.f32 %v3137_v15, %v2440_v29  ;;  %v2497_v61 = vpack.c.bf16 %v2496_v42, %v2496_v42 }
 0x805   :  { %v3139_v37 = vpop.eup %3138  ;;  %v2428_v33 = vmax.f32 %v2412_v28, 0.0  ;;  %v2413_v1 = vsub.f32 %v2381_v0, %v2397_v25  ;;  %v2302_v26 = vmul.f32 0.015625, %v2284_v40 }
 0x806   :  { %v2287_v57 = vpop.xlane.xlu1 %2286  ;;  %v2489_v27 = vmul.f32 %v3139_v37, %v2441_v58 }
 0x807   :  { %v2460_v39 = vadd.f32 1e-05, %v2428_v33  ;;  %v2429_v50 = vmax.f32 %v2413_v1, 0.0  ;;  %v2303_v31 = vmul.f32 0.015625, %v2287_v57  ;;  %v2398_v23 = vmul.f32 %v2302_v26, %v2302_v26 }
 0x808   :  { %v2364_v49 = vpop.xlane.xlu0 %2363  ;;  %v2503_v21 = vpack.c.bf16 %v2489_v27, %v2488_v14  ;;  %v2446_v63 = vsub.f32 %v4541_v19, %v2302_v26 }
 0x809   :  { %3144 = vrsqrt.f32 %v2460_v39  ;;  %v2461_v20 = vadd.f32 1e-05, %v2429_v50  ;;  %v2382_v56 = vmul.f32 0.015625, %v2364_v49  ;;  %v2399_v41 = vmul.f32 %v2303_v31, %v2303_v31 }
 0x80a   :  { %v2367_v54 = vpop.xlane.xlu1 %2366  ;;  %v2528_v22 = vsel %vm214_vm1, %v2503_v21, 0  ;;  %v2447_v48 = vsub.f32 %v4546_v9, %v2303_v31 }
 0x80b   :  { %v3141_v2 = vpop.eup %3140  ;;  %3146 = vrsqrt.f32 %v2461_v20  ;;  %v2414_v47 = vsub.f32 %v2382_v56, %v2398_v23  ;;  %v2383_v10 = vmul.f32 0.015625, %v2367_v54  ;;  %2939 = vmatpush3.bf16.xpose.msra.mxu0 %v2528_v22 }
 0x80c   :  { %2940 = vmatprep.subr.bf16.mxu0 %v3177_v43  ;;  %v2490_v45 = vmul.f32 %v3141_v2, %v2442_v6 }
 0x80d   :  { %v3143_v59 = vpop.eup %3142  ;;  %v2430_v36 = vmax.f32 %v2414_v47, 0.0  ;;  %v2415_v16 = vsub.f32 %v2383_v10, %v2399_v41 }
 0x80e   :  { %v2491_v62 = vmul.f32 %v3143_v59, %v2443_v3 }
 0x80f   :  { %v2462_v51 = vadd.f32 1e-05, %v2430_v36  ;;  %v2431_v34 = vmax.f32 %v2415_v16, 0.0 }
 0x810   :  { %v2504_v55 = vpack.c.bf16 %v2491_v62, %v2490_v45  ;;  %v2510_v24 = vpop.permute.xlu0 %2509 }
 0x811   :  { %3148 = vrsqrt.f32 %v2462_v51  ;;  %v2463_v52 = vadd.f32 1e-05, %v2431_v34 }
 0x812   :  { %v2531_v12 = vsel %vm214_vm1, %v2504_v55, 0 }
 0x813   :  { %v3145_v46 = vpop.eup %3144  ;;  %3150 = vrsqrt.f32 %v2463_v52  ;;  %2941 = vmatpush3.bf16.xpose.msra.mxu0 %v2531_v12 }
 0x814   :  { %2942 = vmatprep.subr.bf16.mxu0 %v3177_v43  ;;  %v2492_v18 = vmul.f32 %v3145_v46, %v2444_v30 }
 0x815   :  { %v3147_v13 = vpop.eup %3146 }
 0x816   :  { %v2493_v7 = vmul.f32 %v3147_v13, %v2445_v60 }
 0x818   :  { %v2505_v4 = vpack.c.bf16 %v2493_v7, %v2492_v18 }
 0x81a   :  { %v2534_v44 = vsel %vm214_vm1, %v2505_v4, 0 }
 0x81b   :  { %v3149_v35 = vpop.eup %3148  ;;  %2943 = vmatpush3.bf16.xpose.msra.mxu0 %v2534_v44 }
 0x81c   :  { %2944 = vmatprep.subr.bf16.mxu0 %v3177_v43  ;;  %v2494_v17 = vmul.f32 %v3149_v35, %v2446_v63 }
 0x81d   :  { %v3151_v8 = vpop.eup %3150 }
 0x81e   :  { %v2495_v11 = vmul.f32 %v3151_v8, %v2447_v48 }
 0x820   :  { %v2506_v5 = vpack.c.bf16 %v2495_v11, %v2494_v17 }
 0x822   :  { %v2537_v32 = vsel %vm214_vm1, %v2506_v5, 0 }
 0x823   :  { %2945 = vmatpush3.bf16.xpose.msra.mxu0 %v2537_v32 }
 0x82a   :  { %2947 = vmatmul.mubr.msk.bf16.vlgmr.msra.gmra.mrb[80].mxu0 %vm214_vm1, %v2497_v61 }
 0x8fd   :  { %v2573_v19 = vpop.f32.mrb[80].mxu0 }
 0x8fe   :  { %v2948_v9 = vpop.f32.mrb[81].mxu0  ;;  %v2574_v43 = vadd.f32 %v2573_v19, %v2510_v24 }
 0x8ff   :  { %v2576_v38 = vpop.f32.mrb[82].mxu0 }
 0x900   :  { %2579 = vst [vmem:[#allocation2] sm:$0x1] %v2574_v43  ;;  %v2949_v53 = vpop.f32.mrb[83].mxu0 }
 0x901   :  { %3163 = shalt.err (!%p3160_p4)
}
 0x902   :  { %s3164_s15 = scalar_lea.hbm %s4675_s6, 16 }
 0x903   :  { %p3165_p5 = scmp.ne.s32.totalorder %s4675_s6, %s3164_s15  ;;  %p3168_p6 = scmp.lt.u32.totalorder %s3164_s15, %s4675_s6 }
 0x905   :  { %p3170_p7 = pnand %p3168_p6, %p3165_p5 }
 0x907   :  { %3173 = shalt.err (!%p3170_p7)
}
 0x908   :  { %2589 = dma.vmem_to_hbm [thread:$0]  %s2587_s11, 16, %s4675_s6, [#allocation3]  }
 0x909   :  { %3174 = dma.done.wait [#allocation3], 16  }
 0x90a   :  { %3175 = vsyncadd [#allocation3], 4294967280 }
 0x90b   :  { %2593 = vsyncpa [#allocation3], 1 }

</bundles_post_ra>
